<compile_context>
chip_gen: v7x
topology: tpu7x:2x2x1
jax: 0.10.0
libtpu: 0.0.40
codegen_flags: <defaults>
</compile_context>

<pallas_src>
import jax
import jax.numpy as jnp
from jax.experimental import pallas as pl
from jax.experimental.pallas import tpu as pltpu


# ----------------------------- Pallas kernel ------------------------------ #
def grucell_kernel(xs_ref, emb_ref, nerep_ref, ln_ref,
                   wg_in_ref, wg_gr_ref, wu_in_ref, wu_gr_ref, b_ref,
                   h_ref):
    f32 = jnp.float32
    mxu_dt = wg_in_ref.dtype          # bf16 weights => bf16 MXU operands (f32 accum)

    xs3 = xs_ref[...]                 # (TB, N, Cin) = [x | state]
    emb = emb_ref[...]                # (TB, N, D)   = node_emb + time_emb (pre-LN)
    ln = ln_ref[...]                  # (4, D)       = [gam_g; bet_g; gam_u; bet_u]
    b3 = b_ref[...]                   # (TB, 1, 3H)  = [bz | br | bu]

    TB, N, Cin = xs3.shape
    H = b3.shape[-1] // 3
    dim_in = Cin - H
    DH = nerep_ref.shape[-1]          # D * H
    R = TB * N

    # Flat (batch*node) row space for all MXU matmuls (leading-dim merges only).
    xs2 = xs3.reshape(R, Cin)
    st3 = xs3[..., dim_in:]
    st2 = xs2[:, dim_in:]

    # Hoisted broadcasts into the row space (computed once per grid step).
    nerep_rows = jnp.broadcast_to(nerep_ref[...][None], (TB, N, DH)).reshape(R, DH)
    b_rows = jnp.broadcast_to(b3, (TB, N, 3 * H)).reshape(R, 3 * H)

    # ---- shared LayerNorm statistics (eps=1e-12); gate/update differ only in affine ----
    mu = jnp.mean(emb, axis=-1, keepdims=True)
    var = jnp.mean((emb - mu) ** 2, axis=-1, keepdims=True)
    nrm = (emb - mu) * jax.lax.rsqrt(var + 1e-12)
    # TODO(synk): nn.Dropout(0.1) on the embedding is treated as identity (eval mode).

    def adjacency(gamma, beta):
        e = nrm * gamma + beta                               # (TB, N, D)
        logits = jnp.einsum('bnd,bmd->bnm', e, e,
                            preferred_element_type=f32)      # (TB, N, N)
        logits = logits - jnp.max(logits, axis=-1, keepdims=True)
        ex = jnp.exp(logits)
        return ex / jnp.sum(ex, axis=-1, keepdims=True)      # exact softmax (f32)

    def dreduce(m):
        # m: (R, D*H), column layout [d*H + o].  One full-width multiply by the
        # repeated node embedding, then a log2(D)-step lane tree reduce.
        t = m * nerep_rows
        w = DH
        while w > H:
            w //= 2
            t = t[:, :w] + t[:, w:2 * w]
        return t                                             # (R, H)

    # ============================ gate GCN -> z, r ============================
    s2g = adjacency(ln[0:1], ln[1:2])
    g_graph = jnp.einsum('bnm,bmc->bnc', s2g.astype(mxu_dt), xs3.astype(mxu_dt),
                         preferred_element_type=f32).reshape(R, Cin)
    acc_g = (jnp.dot(xs2.astype(mxu_dt), wg_in_ref[...], preferred_element_type=f32)
             + jnp.dot(g_graph.astype(mxu_dt), wg_gr_ref[...],
                       preferred_element_type=f32))          # (R, 2*D*H), [z | r]
    z2 = jax.nn.sigmoid(dreduce(acc_g[:, :DH]) + b_rows[:, :H])
    r2 = jax.nn.sigmoid(dreduce(acc_g[:, DH:]) + b_rows[:, H:2 * H])

    # ========================= update GCN -> candidate ========================
    zs3 = z2.reshape(TB, N, H) * st3
    cand3 = jnp.concatenate([xs3[..., :dim_in], zs3], axis=-1)   # one-vreg lane concat
    cand2 = cand3.reshape(R, Cin)
    s2u = adjacency(ln[2:3], ln[3:4])
    u_graph = jnp.einsum('bnm,bmc->bnc', s2u.astype(mxu_dt), cand3.astype(mxu_dt),
                         preferred_element_type=f32).reshape(R, Cin)
    acc_u = (jnp.dot(cand2.astype(mxu_dt), wu_in_ref[...], preferred_element_type=f32)
             + jnp.dot(u_graph.astype(mxu_dt), wu_gr_ref[...],
                       preferred_element_type=f32))          # (R, D*H)
    hc2 = jnp.tanh(dreduce(acc_u) + b_rows[:, 2 * H:])

    # ----------------------------- GRU combination ----------------------------
    h2 = r2 * st2 + (1.0 - r2) * hc2                         # (R, H)

    # Single lane-dense writeback: relayout (R, H) rows into one (TB, N*H) slab
    # via static node slices + lane concat, then one unmasked full-width store.
    h3 = h2.reshape(TB, N, H)
    h_lane = jnp.concatenate([h3[:, n, :] for n in range(N)], axis=-1)   # (TB, N*H)
    h_ref[:, 0, :] = h_lane.astype(h_ref.dtype)


# -------------------------------- wrapper ---------------------------------- #
def _pool_to_mat(wpool):
    """(D, Cin, O) -> (Cin, D*O) with column layout [d*O + o]."""
    D, Cin, O = wpool.shape
    return jnp.transpose(wpool, (1, 0, 2)).reshape(Cin, D * O)


def grucell_forward(x, state, node_emb, time_emb, params,
                    batch_block=None, mxu_dtype=jnp.float32):
    """params: dict with gate/update weights_pool, bias_pool, LayerNorm gamma/beta.

    mxu_dtype=jnp.bfloat16 halves weight traffic / doubles MXU rate on v6e/v7x
    (accumulation stays f32); keep f32 for bit-tight validation.
    """
    B, N, dim_in = x.shape
    H = state.shape[-1]
    D = node_emb.shape[-1]
    Cin = dim_in + H
    DH = D * H
    assert D & (D - 1) == 0, "embed_dim must be a power of two for the lane tree-reduce"

    # NB=1 (whole batch in one block) is best on single-TC v5e/v6e; on v7x pass a
    # smaller batch_block so NB is a multiple of 2 (two TensorCores) and chunk the
    # accumulator if TB*N grows into the hundreds (VMEM/vreg pressure).
    if batch_block is None:
        batch_block = B
    TB = batch_block
    assert B % TB == 0, "batch must be divisible by batch_block"
    NB = B // TB

    # ---- parameter prep (pure XLA glue; weights stay in pool form, no (N,...) expansion) ----
    gw = params['gate_wpool']                  # (D, 2, Cin, 2H)
    uw = params['upd_wpool']                   # (D, 2, Cin, H)
    # Gate lane layout [ z block (D*H) | r block (D*H) ]; rows = Cin so each
    # support contraction is a single row-stacked matmul.
    wg_in = jnp.concatenate([_pool_to_mat(gw[:, 0, :, :H]),
                             _pool_to_mat(gw[:, 0, :, H:])], axis=-1).astype(mxu_dtype)
    wg_gr = jnp.concatenate([_pool_to_mat(gw[:, 1, :, :H]),
                             _pool_to_mat(gw[:, 1, :, H:])], axis=-1).astype(mxu_dtype)
    wu_in = _pool_to_mat(uw[:, 0]).astype(mxu_dtype)
    wu_gr = _pool_to_mat(uw[:, 1]).astype(mxu_dtype)

    # Time-embedding biases as batched XLA matmuls, packed [bz | br | bu].
    bias_g = time_emb @ params['gate_bpool']                  # (B, 2H)
    bias_u = time_emb @ params['upd_bpool']                   # (B, H)
    bias_all = jnp.concatenate([bias_g, bias_u], axis=-1).reshape(B, 1, 3 * H)

    ln = jnp.stack([params['gate_gamma'], params['gate_beta'],
                    params['upd_gamma'], params['upd_beta']], axis=0)   # (4, D)
    xs = jnp.concatenate([x, state], axis=-1)                 # (B, N, Cin)
    emb = node_emb[None, :, :] + time_emb[:, None, :]         # (B, N, D)
    ne_rep = jnp.repeat(node_emb, H, axis=1)                  # (N, D*H), [d*H + o]

    def full(shape):
        return pl.BlockSpec(shape, lambda b: (0,) * len(shape))

    def bat(shape):
        return pl.BlockSpec(shape, lambda b: (b,) + (0,) * (len(shape) - 1))

    h_flat = pl.pallas_call(
        grucell_kernel,
        out_shape=jax.ShapeDtypeStruct((B, 1, N * H), x.dtype),
        grid=(NB,),
        in_specs=[
            bat((TB, N, Cin)),            # [x | state]
            bat((TB, N, D)),              # node_emb + time_emb (pre-LayerNorm)
            full((N, DH)),                # node_emb repeated H times along lanes
            full((4, D)),                 # LayerNorm gamma/beta pack
            full((Cin, 2 * DH)),          # gate W, identity support, [z | r]
            full((Cin, 2 * DH)),          # gate W, learned support,  [z | r]
            full((Cin, DH)),              # update W, identity support
            full((Cin, DH)),              # update W, learned support
            bat((TB, 1, 3 * H)),          # [bz | br | bu]
        ],
        out_specs=bat((TB, 1, N * H)),    # lane-dense output slab
        compiler_params=pltpu.CompilerParams(
            dimension_semantics=("parallel",)),
    )(xs, emb, ne_rep, ln, wg_in, wg_gr, wu_in, wu_gr, bias_all)

    return h_flat.reshape(B, N, H)


# --------------------------- pure-JAX reference ---------------------------- #
def _gcn_ref(x, node_emb, time_emb, wpool, bpool, gamma, beta):
    emb = node_emb[None, :, :] + time_emb[:, None, :]
    mu = emb.mean(-1, keepdims=True)
    var = ((emb - mu) ** 2).mean(-1, keepdims=True)
    emb = (emb - mu) / jnp.sqrt(var + 1e-12) * gamma + beta
    s2 = jax.nn.softmax(jnp.einsum('bnd,bmd->bnm', emb, emb), axis=2)
    x_g1 = x
    x_g2 = jnp.einsum('bnm,bmc->bnc', s2, x)
    x_g = jnp.stack([x_g1, x_g2], axis=1).transpose(0, 2, 1, 3)   # (B,N,2,C)
    weights = jnp.einsum('nd,dkio->nkio', node_emb, wpool)
    bias = time_emb @ bpool
    return jnp.einsum('bnki,nkio->bno', x_g, weights) + bias[:, None, :]


def grucell_ref(x, state, node_emb, time_emb, p):
    H = state.shape[-1]
    ins = jnp.concatenate([x, state], axis=-1)
    zr = jax.nn.sigmoid(_gcn_ref(ins, node_emb, time_emb,
                                 p['gate_wpool'], p['gate_bpool'],
                                 p['gate_gamma'], p['gate_beta']))
    z, r = zr[..., :H], zr[..., H:]
    cand = jnp.concatenate([x, z * state], axis=-1)
    hc = jnp.tanh(_gcn_ref(cand, node_emb, time_emb,
                           p['upd_wpool'], p['upd_bpool'],
                           p['upd_gamma'], p['upd_beta']))
    return r * state + (1 - r) * hc


# ----------------------------------- main ---------------------------------- #
if __name__ == "__main__":
    B, N, dim_in, H, D = 4, 16, 8, 32, 16   # node_num=N, hidden=H, embed_dim=D
    Cin = dim_in + H

    key = jax.random.PRNGKey(0)
    ks = jax.random.split(key, 10)
    x = jax.random.normal(ks[0], (B, N, dim_in), jnp.float32)
    state = jax.random.normal(ks[1], (B, N, H), jnp.float32)
    node_emb = jax.random.normal(ks[2], (N, D), jnp.float32)
    time_emb = jax.random.normal(ks[3], (B, D), jnp.float32)

    params = {
        'gate_wpool': 0.1 * jax.random.normal(ks[4], (D, 2, Cin, 2 * H), jnp.float32),
        'gate_bpool': 0.1 * jax.random.normal(ks[5], (D, 2 * H), jnp.float32),
        'gate_gamma': 1.0 + 0.05 * jax.random.normal(ks[6], (D,), jnp.float32),
        'gate_beta': 0.05 * jax.random.normal(ks[6], (D,), jnp.float32),
        'upd_wpool': 0.1 * jax.random.normal(ks[7], (D, 2, Cin, H), jnp.float32),
        'upd_bpool': 0.1 * jax.random.normal(ks[8], (D, H), jnp.float32),
        'upd_gamma': 1.0 + 0.05 * jax.random.normal(ks[9], (D,), jnp.float32),
        'upd_beta': 0.05 * jax.random.normal(ks[9], (D,), jnp.float32),
    }

    h = jax.jit(grucell_forward)(x, state, node_emb, time_emb, params)
    h = jax.block_until_ready(h)

    h_ref = grucell_ref(x, state, node_emb, time_emb, params)
    assert h.shape == (B, N, H)
    max_err = float(jnp.max(jnp.abs(h - h_ref)))
    # f32 everywhere + exact softmax: only reassociation-level differences remain.
    assert jnp.allclose(h, h_ref, atol=1e-3, rtol=1e-3), max_err

    print("KERNEL_OK")
</pallas_src>

<mosaic_0001>
module attributes {stable_mosaic.version = 11 : i64} {
  func.func @grucell_kernel(%arg0: i32, %arg1: memref<4x16x40xf32, #tpu.memory_space<vmem>>, %arg2: memref<4x16x16xf32, #tpu.memory_space<vmem>>, %arg3: memref<16x512xf32, #tpu.memory_space<vmem>>, %arg4: memref<4x16xf32, #tpu.memory_space<vmem>>, %arg5: memref<40x1024xf32, #tpu.memory_space<vmem>>, %arg6: memref<40x1024xf32, #tpu.memory_space<vmem>>, %arg7: memref<40x512xf32, #tpu.memory_space<vmem>>, %arg8: memref<40x512xf32, #tpu.memory_space<vmem>>, %arg9: memref<4x1x96xf32, #tpu.memory_space<vmem>>, %arg10: memref<4x1x512xf32, #tpu.memory_space<vmem>>) attributes {dimension_semantics = [#tpu.dimension_semantics<parallel>], iteration_bounds = array<i64: 1>, scalar_prefetch = 0 : i64, scratch_operands = 0 : i64, tpu.core_type = #tpu.core_type<tc>, window_params = [{transform_indices = @transform_0, window_bounds = array<i64: 4, 16, 40>}, {transform_indices = @transform_1, window_bounds = array<i64: 4, 16, 16>}, {pipeline_mode = #tpu.pipeline_mode<synchronous>, transform_indices = @transform_2, window_bounds = array<i64: 16, 512>}, {pipeline_mode = #tpu.pipeline_mode<synchronous>, transform_indices = @transform_3, window_bounds = array<i64: 4, 16>}, {pipeline_mode = #tpu.pipeline_mode<synchronous>, transform_indices = @transform_4, window_bounds = array<i64: 40, 1024>}, {pipeline_mode = #tpu.pipeline_mode<synchronous>, transform_indices = @transform_5, window_bounds = array<i64: 40, 1024>}, {pipeline_mode = #tpu.pipeline_mode<synchronous>, transform_indices = @transform_6, window_bounds = array<i64: 40, 512>}, {pipeline_mode = #tpu.pipeline_mode<synchronous>, transform_indices = @transform_7, window_bounds = array<i64: 40, 512>}, {transform_indices = @transform_8, window_bounds = array<i64: 4, 1, 96>}, {transform_indices = @transform_9, window_bounds = array<i64: 4, 1, 512>}]} {
    %c0 = arith.constant 0 : index
    %c0_0 = arith.constant 0 : index
    %c0_1 = arith.constant 0 : index
    %0 = vector.load %arg1[%c0, %c0_0, %c0_1] : memref<4x16x40xf32, #tpu.memory_space<vmem>>, vector<4x16x40xf32>
    %c0_2 = arith.constant 0 : index
    %c0_3 = arith.constant 0 : index
    %c0_4 = arith.constant 0 : index
    %1 = vector.load %arg2[%c0_2, %c0_3, %c0_4] : memref<4x16x16xf32, #tpu.memory_space<vmem>>, vector<4x16x16xf32>
    %c0_5 = arith.constant 0 : index
    %c0_6 = arith.constant 0 : index
    %2 = vector.load %arg4[%c0_5, %c0_6] : memref<4x16xf32, #tpu.memory_space<vmem>>, vector<4x16xf32>
    %c0_7 = arith.constant 0 : index
    %c0_8 = arith.constant 0 : index
    %c0_9 = arith.constant 0 : index
    %3 = vector.load %arg9[%c0_7, %c0_8, %c0_9] : memref<4x1x96xf32, #tpu.memory_space<vmem>>, vector<4x1x96xf32>
    %4 = vector.shape_cast %0 : vector<4x16x40xf32> to vector<64x40xf32>
    %5 = vector.extract_strided_slice %0 {offsets = [0, 0, 8], sizes = [4, 16, 32], strides = [1, 1, 1]} : vector<4x16x40xf32> to vector<4x16x32xf32>
    %6 = vector.extract_strided_slice %4 {offsets = [0, 8], sizes = [64, 32], strides = [1, 1]} : vector<64x40xf32> to vector<64x32xf32>
    %c0_10 = arith.constant 0 : index
    %c0_11 = arith.constant 0 : index
    %7 = vector.load %arg3[%c0_10, %c0_11] : memref<16x512xf32, #tpu.memory_space<vmem>>, vector<16x512xf32>
    %8 = vector.shape_cast %7 : vector<16x512xf32> to vector<1x16x512xf32>
    %9 = vector.shape_cast %8 : vector<1x16x512xf32> to vector<1x16x512xf32>
    %10 = vector.broadcast %9 : vector<1x16x512xf32> to vector<4x16x512xf32>
    %11 = vector.shape_cast %10 : vector<4x16x512xf32> to vector<64x512xf32>
    %12 = vector.shape_cast %3 : vector<4x1x96xf32> to vector<4x1x96xf32>
    %13 = vector.broadcast %12 : vector<4x1x96xf32> to vector<4x16x96xf32>
    %14 = vector.shape_cast %13 : vector<4x16x96xf32> to vector<64x96xf32>
    %cst = arith.constant dense<0.000000e+00> : vector<4x16xf32>
    %15 = vector.multi_reduction <add>, %1, %cst [2] : vector<4x16x16xf32> to vector<4x16xf32>
    %16 = vector.shape_cast %15 : vector<4x16xf32> to vector<4x16x1xf32>
    %cst_12 = arith.constant 1.600000e+01 : f32
    %17 = vector.broadcast %cst_12 : f32 to vector<4x16x1xf32>
    %18 = arith.divf %16, %17 : vector<4x16x1xf32>
    %19 = vector.broadcast %18 : vector<4x16x1xf32> to vector<4x16x16xf32>
    %20 = arith.subf %1, %19 : vector<4x16x16xf32>
    %21 = arith.mulf %20, %20 : vector<4x16x16xf32>
    %cst_13 = arith.constant dense<0.000000e+00> : vector<4x16xf32>
    %22 = vector.multi_reduction <add>, %21, %cst_13 [2] : vector<4x16x16xf32> to vector<4x16xf32>
    %23 = vector.shape_cast %22 : vector<4x16xf32> to vector<4x16x1xf32>
    %cst_14 = arith.constant 1.600000e+01 : f32
    %24 = vector.broadcast %cst_14 : f32 to vector<4x16x1xf32>
    %25 = arith.divf %23, %24 : vector<4x16x1xf32>
    %26 = vector.broadcast %18 : vector<4x16x1xf32> to vector<4x16x16xf32>
    %27 = arith.subf %1, %26 : vector<4x16x16xf32>
    %cst_15 = arith.constant 9.99999996E-13 : f32
    %28 = vector.broadcast %cst_15 : f32 to vector<4x16x1xf32>
    %29 = arith.addf %25, %28 : vector<4x16x1xf32>
    %30 = math.rsqrt %29 : vector<4x16x1xf32>
    %31 = vector.broadcast %30 : vector<4x16x1xf32> to vector<4x16x16xf32>
    %32 = arith.mulf %27, %31 : vector<4x16x16xf32>
    %33 = vector.extract_strided_slice %2 {offsets = [0, 0], sizes = [1, 16], strides = [1, 1]} : vector<4x16xf32> to vector<1x16xf32>
    %34 = vector.extract_strided_slice %2 {offsets = [1, 0], sizes = [1, 16], strides = [1, 1]} : vector<4x16xf32> to vector<1x16xf32>
    %35 = vector.shape_cast %33 : vector<1x16xf32> to vector<1x1x16xf32>
    %36 = vector.broadcast %35 : vector<1x1x16xf32> to vector<4x16x16xf32>
    %37 = arith.mulf %32, %36 : vector<4x16x16xf32>
    %38 = vector.shape_cast %34 : vector<1x16xf32> to vector<1x1x16xf32>
    %39 = vector.broadcast %38 : vector<1x1x16xf32> to vector<4x16x16xf32>
    %40 = arith.addf %37, %39 : vector<4x16x16xf32>
    "tpu.trace_start"() <{level = 10 : i32, message = "bnd,bmd->bnm"}> : () -> ()
    %cst_16 = arith.constant dense<0.000000e+00> : vector<4x16x16xf32>
    %41 = tpu.matmul %40, %40, %cst_16 {dimension_numbers = #tpu.dot_dimension_numbers<[2], [2], [1], [1], [0, 0, 0, 1, 1, 1], [0], [0]>} : vector<4x16x16xf32>, vector<4x16x16xf32>, vector<4x16x16xf32> -> vector<4x16x16xf32>
    "tpu.trace_stop"() : () -> ()
    %cst_17 = arith.constant dense<0xFF800000> : vector<4x16xf32>
    %42 = vector.multi_reduction <maximumf>, %41, %cst_17 [2] : vector<4x16x16xf32> to vector<4x16xf32>
    %43 = vector.shape_cast %42 : vector<4x16xf32> to vector<4x16x1xf32>
    %44 = vector.broadcast %43 : vector<4x16x1xf32> to vector<4x16x16xf32>
    %45 = arith.subf %41, %44 : vector<4x16x16xf32>
    %46 = math.exp %45 : vector<4x16x16xf32>
    %cst_18 = arith.constant dense<0.000000e+00> : vector<4x16xf32>
    %47 = vector.multi_reduction <add>, %46, %cst_18 [2] : vector<4x16x16xf32> to vector<4x16xf32>
    %48 = vector.shape_cast %47 : vector<4x16xf32> to vector<4x16x1xf32>
    %49 = vector.broadcast %48 : vector<4x16x1xf32> to vector<4x16x16xf32>
    %50 = arith.divf %46, %49 : vector<4x16x16xf32>
    "tpu.trace_start"() <{level = 10 : i32, message = "bnm,bmc->bnc"}> : () -> ()
    %cst_19 = arith.constant dense<0.000000e+00> : vector<4x16x40xf32>
    %51 = tpu.matmul %50, %0, %cst_19 {dimension_numbers = #tpu.dot_dimension_numbers<[2], [1], [1], [2], [0, 0, 0, 1, 1, 2], [0], [0]>} : vector<4x16x16xf32>, vector<4x16x40xf32>, vector<4x16x40xf32> -> vector<4x16x40xf32>
    "tpu.trace_stop"() : () -> ()
    %52 = vector.shape_cast %51 : vector<4x16x40xf32> to vector<64x40xf32>
    %c0_20 = arith.constant 0 : index
    %c0_21 = arith.constant 0 : index
    %53 = vector.load %arg5[%c0_20, %c0_21] : memref<40x1024xf32, #tpu.memory_space<vmem>>, vector<40x1024xf32>
    %cst_22 = arith.constant dense<0.000000e+00> : vector<64x1024xf32>
    %54 = tpu.matmul %4, %53, %cst_22 {dimension_numbers = #tpu.dot_dimension_numbers<[1], [0], [0], [1], [0, 0, 1, 1], [], []>} : vector<64x40xf32>, vector<40x1024xf32>, vector<64x1024xf32> -> vector<64x1024xf32>
    %c0_23 = arith.constant 0 : index
    %c0_24 = arith.constant 0 : index
    %55 = vector.load %arg6[%c0_23, %c0_24] : memref<40x1024xf32, #tpu.memory_space<vmem>>, vector<40x1024xf32>
    %cst_25 = arith.constant dense<0.000000e+00> : vector<64x1024xf32>
    %56 = tpu.matmul %52, %55, %cst_25 {dimension_numbers = #tpu.dot_dimension_numbers<[1], [0], [0], [1], [0, 0, 1, 1], [], []>} : vector<64x40xf32>, vector<40x1024xf32>, vector<64x1024xf32> -> vector<64x1024xf32>
    %57 = arith.addf %54, %56 : vector<64x1024xf32>
    %58 = vector.extract_strided_slice %57 {offsets = [0, 0], sizes = [64, 512], strides = [1, 1]} : vector<64x1024xf32> to vector<64x512xf32>
    %59 = arith.mulf %58, %11 : vector<64x512xf32>
    %60 = vector.extract_strided_slice %59 {offsets = [0, 0], sizes = [64, 256], strides = [1, 1]} : vector<64x512xf32> to vector<64x256xf32>
    %61 = vector.extract_strided_slice %59 {offsets = [0, 256], sizes = [64, 256], strides = [1, 1]} : vector<64x512xf32> to vector<64x256xf32>
    %62 = arith.addf %60, %61 : vector<64x256xf32>
    %63 = vector.extract_strided_slice %62 {offsets = [0, 0], sizes = [64, 128], strides = [1, 1]} : vector<64x256xf32> to vector<64x128xf32>
    %64 = vector.extract_strided_slice %62 {offsets = [0, 128], sizes = [64, 128], strides = [1, 1]} : vector<64x256xf32> to vector<64x128xf32>
    %65 = arith.addf %63, %64 : vector<64x128xf32>
    %66 = vector.extract_strided_slice %65 {offsets = [0, 0], sizes = [64, 64], strides = [1, 1]} : vector<64x128xf32> to vector<64x64xf32>
    %67 = vector.extract_strided_slice %65 {offsets = [0, 64], sizes = [64, 64], strides = [1, 1]} : vector<64x128xf32> to vector<64x64xf32>
    %68 = arith.addf %66, %67 : vector<64x64xf32>
    %69 = vector.extract_strided_slice %68 {offsets = [0, 0], sizes = [64, 32], strides = [1, 1]} : vector<64x64xf32> to vector<64x32xf32>
    %70 = vector.extract_strided_slice %68 {offsets = [0, 32], sizes = [64, 32], strides = [1, 1]} : vector<64x64xf32> to vector<64x32xf32>
    %71 = arith.addf %69, %70 : vector<64x32xf32>
    %72 = vector.extract_strided_slice %14 {offsets = [0, 0], sizes = [64, 32], strides = [1, 1]} : vector<64x96xf32> to vector<64x32xf32>
    %73 = arith.addf %71, %72 : vector<64x32xf32>
    %74 = arith.negf %73 : vector<64x32xf32>
    %75 = math.exp %74 : vector<64x32xf32>
    %cst_26 = arith.constant 1.000000e+00 : f32
    %76 = vector.broadcast %cst_26 : f32 to vector<64x32xf32>
    %77 = arith.addf %76, %75 : vector<64x32xf32>
    %78 = arith.divf %76, %77 : vector<64x32xf32>
    %79 = vector.extract_strided_slice %57 {offsets = [0, 512], sizes = [64, 512], strides = [1, 1]} : vector<64x1024xf32> to vector<64x512xf32>
    %80 = arith.mulf %79, %11 : vector<64x512xf32>
    %81 = vector.extract_strided_slice %80 {offsets = [0, 0], sizes = [64, 256], strides = [1, 1]} : vector<64x512xf32> to vector<64x256xf32>
    %82 = vector.extract_strided_slice %80 {offsets = [0, 256], sizes = [64, 256], strides = [1, 1]} : vector<64x512xf32> to vector<64x256xf32>
    %83 = arith.addf %81, %82 : vector<64x256xf32>
    %84 = vector.extract_strided_slice %83 {offsets = [0, 0], sizes = [64, 128], strides = [1, 1]} : vector<64x256xf32> to vector<64x128xf32>
    %85 = vector.extract_strided_slice %83 {offsets = [0, 128], sizes = [64, 128], strides = [1, 1]} : vector<64x256xf32> to vector<64x128xf32>
    %86 = arith.addf %84, %85 : vector<64x128xf32>
    %87 = vector.extract_strided_slice %86 {offsets = [0, 0], sizes = [64, 64], strides = [1, 1]} : vector<64x128xf32> to vector<64x64xf32>
    %88 = vector.extract_strided_slice %86 {offsets = [0, 64], sizes = [64, 64], strides = [1, 1]} : vector<64x128xf32> to vector<64x64xf32>
    %89 = arith.addf %87, %88 : vector<64x64xf32>
    %90 = vector.extract_strided_slice %89 {offsets = [0, 0], sizes = [64, 32], strides = [1, 1]} : vector<64x64xf32> to vector<64x32xf32>
    %91 = vector.extract_strided_slice %89 {offsets = [0, 32], sizes = [64, 32], strides = [1, 1]} : vector<64x64xf32> to vector<64x32xf32>
    %92 = arith.addf %90, %91 : vector<64x32xf32>
    %93 = vector.extract_strided_slice %14 {offsets = [0, 32], sizes = [64, 32], strides = [1, 1]} : vector<64x96xf32> to vector<64x32xf32>
    %94 = arith.addf %92, %93 : vector<64x32xf32>
    %95 = arith.negf %94 : vector<64x32xf32>
    %96 = math.exp %95 : vector<64x32xf32>
    %cst_27 = arith.constant 1.000000e+00 : f32
    %97 = vector.broadcast %cst_27 : f32 to vector<64x32xf32>
    %98 = arith.addf %97, %96 : vector<64x32xf32>
    %99 = arith.divf %97, %98 : vector<64x32xf32>
    %100 = vector.shape_cast %78 : vector<64x32xf32> to vector<4x16x32xf32>
    %101 = arith.mulf %100, %5 : vector<4x16x32xf32>
    %102 = vector.extract_strided_slice %0 {offsets = [0, 0, 0], sizes = [4, 16, 8], strides = [1, 1, 1]} : vector<4x16x40xf32> to vector<4x16x8xf32>
    %103 = tpu.concatenate %102, %101 in 2 : vector<4x16x8xf32>, vector<4x16x32xf32> -> vector<4x16x40xf32>
    %104 = vector.shape_cast %103 : vector<4x16x40xf32> to vector<64x40xf32>
    %105 = vector.extract_strided_slice %2 {offsets = [2, 0], sizes = [1, 16], strides = [1, 1]} : vector<4x16xf32> to vector<1x16xf32>
    %106 = vector.extract_strided_slice %2 {offsets = [3, 0], sizes = [1, 16], strides = [1, 1]} : vector<4x16xf32> to vector<1x16xf32>
    %107 = vector.shape_cast %105 : vector<1x16xf32> to vector<1x1x16xf32>
    %108 = vector.broadcast %107 : vector<1x1x16xf32> to vector<4x16x16xf32>
    %109 = arith.mulf %32, %108 : vector<4x16x16xf32>
    %110 = vector.shape_cast %106 : vector<1x16xf32> to vector<1x1x16xf32>
    %111 = vector.broadcast %110 : vector<1x1x16xf32> to vector<4x16x16xf32>
    %112 = arith.addf %109, %111 : vector<4x16x16xf32>
    "tpu.trace_start"() <{level = 10 : i32, message = "bnd,bmd->bnm"}> : () -> ()
    %cst_28 = arith.constant dense<0.000000e+00> : vector<4x16x16xf32>
    %113 = tpu.matmul %112, %112, %cst_28 {dimension_numbers = #tpu.dot_dimension_numbers<[2], [2], [1], [1], [0, 0, 0, 1, 1, 1], [0], [0]>} : vector<4x16x16xf32>, vector<4x16x16xf32>, vector<4x16x16xf32> -> vector<4x16x16xf32>
    "tpu.trace_stop"() : () -> ()
    %cst_29 = arith.constant dense<0xFF800000> : vector<4x16xf32>
    %114 = vector.multi_reduction <maximumf>, %113, %cst_29 [2] : vector<4x16x16xf32> to vector<4x16xf32>
    %115 = vector.shape_cast %114 : vector<4x16xf32> to vector<4x16x1xf32>
    %116 = vector.broadcast %115 : vector<4x16x1xf32> to vector<4x16x16xf32>
    %117 = arith.subf %113, %116 : vector<4x16x16xf32>
    %118 = math.exp %117 : vector<4x16x16xf32>
    %cst_30 = arith.constant dense<0.000000e+00> : vector<4x16xf32>
    %119 = vector.multi_reduction <add>, %118, %cst_30 [2] : vector<4x16x16xf32> to vector<4x16xf32>
    %120 = vector.shape_cast %119 : vector<4x16xf32> to vector<4x16x1xf32>
    %121 = vector.broadcast %120 : vector<4x16x1xf32> to vector<4x16x16xf32>
    %122 = arith.divf %118, %121 : vector<4x16x16xf32>
    "tpu.trace_start"() <{level = 10 : i32, message = "bnm,bmc->bnc"}> : () -> ()
    %cst_31 = arith.constant dense<0.000000e+00> : vector<4x16x40xf32>
    %123 = tpu.matmul %122, %103, %cst_31 {dimension_numbers = #tpu.dot_dimension_numbers<[2], [1], [1], [2], [0, 0, 0, 1, 1, 2], [0], [0]>} : vector<4x16x16xf32>, vector<4x16x40xf32>, vector<4x16x40xf32> -> vector<4x16x40xf32>
    "tpu.trace_stop"() : () -> ()
    %124 = vector.shape_cast %123 : vector<4x16x40xf32> to vector<64x40xf32>
    %c0_32 = arith.constant 0 : index
    %c0_33 = arith.constant 0 : index
    %125 = vector.load %arg7[%c0_32, %c0_33] : memref<40x512xf32, #tpu.memory_space<vmem>>, vector<40x512xf32>
    %cst_34 = arith.constant dense<0.000000e+00> : vector<64x512xf32>
    %126 = tpu.matmul %104, %125, %cst_34 {dimension_numbers = #tpu.dot_dimension_numbers<[1], [0], [0], [1], [0, 0, 1, 1], [], []>} : vector<64x40xf32>, vector<40x512xf32>, vector<64x512xf32> -> vector<64x512xf32>
    %c0_35 = arith.constant 0 : index
    %c0_36 = arith.constant 0 : index
    %127 = vector.load %arg8[%c0_35, %c0_36] : memref<40x512xf32, #tpu.memory_space<vmem>>, vector<40x512xf32>
    %cst_37 = arith.constant dense<0.000000e+00> : vector<64x512xf32>
    %128 = tpu.matmul %124, %127, %cst_37 {dimension_numbers = #tpu.dot_dimension_numbers<[1], [0], [0], [1], [0, 0, 1, 1], [], []>} : vector<64x40xf32>, vector<40x512xf32>, vector<64x512xf32> -> vector<64x512xf32>
    %129 = arith.addf %126, %128 : vector<64x512xf32>
    %130 = arith.mulf %129, %11 : vector<64x512xf32>
    %131 = vector.extract_strided_slice %130 {offsets = [0, 0], sizes = [64, 256], strides = [1, 1]} : vector<64x512xf32> to vector<64x256xf32>
    %132 = vector.extract_strided_slice %130 {offsets = [0, 256], sizes = [64, 256], strides = [1, 1]} : vector<64x512xf32> to vector<64x256xf32>
    %133 = arith.addf %131, %132 : vector<64x256xf32>
    %134 = vector.extract_strided_slice %133 {offsets = [0, 0], sizes = [64, 128], strides = [1, 1]} : vector<64x256xf32> to vector<64x128xf32>
    %135 = vector.extract_strided_slice %133 {offsets = [0, 128], sizes = [64, 128], strides = [1, 1]} : vector<64x256xf32> to vector<64x128xf32>
    %136 = arith.addf %134, %135 : vector<64x128xf32>
    %137 = vector.extract_strided_slice %136 {offsets = [0, 0], sizes = [64, 64], strides = [1, 1]} : vector<64x128xf32> to vector<64x64xf32>
    %138 = vector.extract_strided_slice %136 {offsets = [0, 64], sizes = [64, 64], strides = [1, 1]} : vector<64x128xf32> to vector<64x64xf32>
    %139 = arith.addf %137, %138 : vector<64x64xf32>
    %140 = vector.extract_strided_slice %139 {offsets = [0, 0], sizes = [64, 32], strides = [1, 1]} : vector<64x64xf32> to vector<64x32xf32>
    %141 = vector.extract_strided_slice %139 {offsets = [0, 32], sizes = [64, 32], strides = [1, 1]} : vector<64x64xf32> to vector<64x32xf32>
    %142 = arith.addf %140, %141 : vector<64x32xf32>
    %143 = vector.extract_strided_slice %14 {offsets = [0, 64], sizes = [64, 32], strides = [1, 1]} : vector<64x96xf32> to vector<64x32xf32>
    %144 = arith.addf %142, %143 : vector<64x32xf32>
    %145 = math.tanh %144 : vector<64x32xf32>
    %146 = arith.mulf %99, %6 : vector<64x32xf32>
    %cst_38 = arith.constant 1.000000e+00 : f32
    %147 = vector.broadcast %cst_38 : f32 to vector<64x32xf32>
    %148 = arith.subf %147, %99 : vector<64x32xf32>
    %149 = arith.mulf %148, %145 : vector<64x32xf32>
    %150 = arith.addf %146, %149 : vector<64x32xf32>
    %151 = vector.shape_cast %150 : vector<64x32xf32> to vector<4x16x32xf32>
    %152 = vector.extract_strided_slice %151 {offsets = [0, 0, 0], sizes = [4, 1, 32], strides = [1, 1, 1]} : vector<4x16x32xf32> to vector<4x1x32xf32>
    %153 = vector.shape_cast %152 : vector<4x1x32xf32> to vector<4x32xf32>
    %154 = vector.extract_strided_slice %151 {offsets = [0, 1, 0], sizes = [4, 1, 32], strides = [1, 1, 1]} : vector<4x16x32xf32> to vector<4x1x32xf32>
    %155 = vector.shape_cast %154 : vector<4x1x32xf32> to vector<4x32xf32>
    %156 = vector.extract_strided_slice %151 {offsets = [0, 2, 0], sizes = [4, 1, 32], strides = [1, 1, 1]} : vector<4x16x32xf32> to vector<4x1x32xf32>
    %157 = vector.shape_cast %156 : vector<4x1x32xf32> to vector<4x32xf32>
    %158 = vector.extract_strided_slice %151 {offsets = [0, 3, 0], sizes = [4, 1, 32], strides = [1, 1, 1]} : vector<4x16x32xf32> to vector<4x1x32xf32>
    %159 = vector.shape_cast %158 : vector<4x1x32xf32> to vector<4x32xf32>
    %160 = vector.extract_strided_slice %151 {offsets = [0, 4, 0], sizes = [4, 1, 32], strides = [1, 1, 1]} : vector<4x16x32xf32> to vector<4x1x32xf32>
    %161 = vector.shape_cast %160 : vector<4x1x32xf32> to vector<4x32xf32>
    %162 = vector.extract_strided_slice %151 {offsets = [0, 5, 0], sizes = [4, 1, 32], strides = [1, 1, 1]} : vector<4x16x32xf32> to vector<4x1x32xf32>
    %163 = vector.shape_cast %162 : vector<4x1x32xf32> to vector<4x32xf32>
    %164 = vector.extract_strided_slice %151 {offsets = [0, 6, 0], sizes = [4, 1, 32], strides = [1, 1, 1]} : vector<4x16x32xf32> to vector<4x1x32xf32>
    %165 = vector.shape_cast %164 : vector<4x1x32xf32> to vector<4x32xf32>
    %166 = vector.extract_strided_slice %151 {offsets = [0, 7, 0], sizes = [4, 1, 32], strides = [1, 1, 1]} : vector<4x16x32xf32> to vector<4x1x32xf32>
    %167 = vector.shape_cast %166 : vector<4x1x32xf32> to vector<4x32xf32>
    %168 = vector.extract_strided_slice %151 {offsets = [0, 8, 0], sizes = [4, 1, 32], strides = [1, 1, 1]} : vector<4x16x32xf32> to vector<4x1x32xf32>
    %169 = vector.shape_cast %168 : vector<4x1x32xf32> to vector<4x32xf32>
    %170 = vector.extract_strided_slice %151 {offsets = [0, 9, 0], sizes = [4, 1, 32], strides = [1, 1, 1]} : vector<4x16x32xf32> to vector<4x1x32xf32>
    %171 = vector.shape_cast %170 : vector<4x1x32xf32> to vector<4x32xf32>
    %172 = vector.extract_strided_slice %151 {offsets = [0, 10, 0], sizes = [4, 1, 32], strides = [1, 1, 1]} : vector<4x16x32xf32> to vector<4x1x32xf32>
    %173 = vector.shape_cast %172 : vector<4x1x32xf32> to vector<4x32xf32>
    %174 = vector.extract_strided_slice %151 {offsets = [0, 11, 0], sizes = [4, 1, 32], strides = [1, 1, 1]} : vector<4x16x32xf32> to vector<4x1x32xf32>
    %175 = vector.shape_cast %174 : vector<4x1x32xf32> to vector<4x32xf32>
    %176 = vector.extract_strided_slice %151 {offsets = [0, 12, 0], sizes = [4, 1, 32], strides = [1, 1, 1]} : vector<4x16x32xf32> to vector<4x1x32xf32>
    %177 = vector.shape_cast %176 : vector<4x1x32xf32> to vector<4x32xf32>
    %178 = vector.extract_strided_slice %151 {offsets = [0, 13, 0], sizes = [4, 1, 32], strides = [1, 1, 1]} : vector<4x16x32xf32> to vector<4x1x32xf32>
    %179 = vector.shape_cast %178 : vector<4x1x32xf32> to vector<4x32xf32>
    %180 = vector.extract_strided_slice %151 {offsets = [0, 14, 0], sizes = [4, 1, 32], strides = [1, 1, 1]} : vector<4x16x32xf32> to vector<4x1x32xf32>
    %181 = vector.shape_cast %180 : vector<4x1x32xf32> to vector<4x32xf32>
    %182 = vector.extract_strided_slice %151 {offsets = [0, 15, 0], sizes = [4, 1, 32], strides = [1, 1, 1]} : vector<4x16x32xf32> to vector<4x1x32xf32>
    %183 = vector.shape_cast %182 : vector<4x1x32xf32> to vector<4x32xf32>
    %184 = tpu.concatenate %153, %155, %157, %159, %161, %163, %165, %167, %169, %171, %173, %175, %177, %179, %181, %183 in 1 : vector<4x32xf32>, vector<4x32xf32>, vector<4x32xf32>, vector<4x32xf32>, vector<4x32xf32>, vector<4x32xf32>, vector<4x32xf32>, vector<4x32xf32>, vector<4x32xf32>, vector<4x32xf32>, vector<4x32xf32>, vector<4x32xf32>, vector<4x32xf32>, vector<4x32xf32>, vector<4x32xf32>, vector<4x32xf32> -> vector<4x512xf32>
    %c0_39 = arith.constant 0 : index
    %c0_40 = arith.constant 0 : index
    %c0_41 = arith.constant 0 : index
    %185 = vector.load %arg10[%c0_39, %c0_40, %c0_41] : memref<4x1x512xf32, #tpu.memory_space<vmem>>, vector<4x1x512xf32>
    %186 = vector.shape_cast %185 : vector<4x1x512xf32> to vector<4x512xf32>
    %187 = vector.shape_cast %184 : vector<4x512xf32> to vector<4x1x512xf32>
    tpu.vector_store %arg10[%c0_39, %c0_40, %c0_41], %187 {strides = array<i32>} : memref<4x1x512xf32, #tpu.memory_space<vmem>>, vector<4x1x512xf32>,
    return
  }
  func.func @transform_0(%arg0: i32) -> (i32, i32, i32) {
    %c0_i32 = arith.constant 0 : i32
    %c0_i32_0 = arith.constant 0 : i32
    %c0_i32_1 = arith.constant 0 : i32
    return %arg0, %c0_i32, %c0_i32_0 : i32, i32, i32
  }
  func.func @transform_1(%arg0: i32) -> (i32, i32, i32) {
    %c0_i32 = arith.constant 0 : i32
    %c0_i32_0 = arith.constant 0 : i32
    %c0_i32_1 = arith.constant 0 : i32
    return %arg0, %c0_i32, %c0_i32_0 : i32, i32, i32
  }
  func.func @transform_2(%arg0: i32) -> (i32, i32) {
    %c0_i32 = arith.constant 0 : i32
    %c0_i32_0 = arith.constant 0 : i32
    %c0_i32_1 = arith.constant 0 : i32
    return %c0_i32, %c0_i32_0 : i32, i32
  }
  func.func @transform_3(%arg0: i32) -> (i32, i32) {
    %c0_i32 = arith.constant 0 : i32
    %c0_i32_0 = arith.constant 0 : i32
    %c0_i32_1 = arith.constant 0 : i32
    return %c0_i32, %c0_i32_0 : i32, i32
  }
  func.func @transform_4(%arg0: i32) -> (i32, i32) {
    %c0_i32 = arith.constant 0 : i32
    %c0_i32_0 = arith.constant 0 : i32
    %c0_i32_1 = arith.constant 0 : i32
    return %c0_i32, %c0_i32_0 : i32, i32
  }
  func.func @transform_5(%arg0: i32) -> (i32, i32) {
    %c0_i32 = arith.constant 0 : i32
    %c0_i32_0 = arith.constant 0 : i32
    %c0_i32_1 = arith.constant 0 : i32
    return %c0_i32, %c0_i32_0 : i32, i32
  }
  func.func @transform_6(%arg0: i32) -> (i32, i32) {
    %c0_i32 = arith.constant 0 : i32
    %c0_i32_0 = arith.constant 0 : i32
    %c0_i32_1 = arith.constant 0 : i32
    return %c0_i32, %c0_i32_0 : i32, i32
  }
  func.func @transform_7(%arg0: i32) -> (i32, i32) {
    %c0_i32 = arith.constant 0 : i32
    %c0_i32_0 = arith.constant 0 : i32
    %c0_i32_1 = arith.constant 0 : i32
    return %c0_i32, %c0_i32_0 : i32, i32
  }
  func.func @transform_8(%arg0: i32) -> (i32, i32, i32) {
    %c0_i32 = arith.constant 0 : i32
    %c0_i32_0 = arith.constant 0 : i32
    %c0_i32_1 = arith.constant 0 : i32
    return %arg0, %c0_i32, %c0_i32_0 : i32, i32, i32
  }
  func.func @transform_9(%arg0: i32) -> (i32, i32, i32) {
    %c0_i32 = arith.constant 0 : i32
    %c0_i32_0 = arith.constant 0 : i32
    %c0_i32_1 = arith.constant 0 : i32
    return %arg0, %c0_i32, %c0_i32_0 : i32, i32, i32
  }
}

</mosaic_0001>

<bundles_post_ra>
// kernel: grucell_forward.1
= control target key start
LH: loop header
LB: loop body
LE: loop exit
PB: predicated region body
PF: predicated region fallthrough
CT: control target
= control target key end

     0   :  { %vm85_vm0 = vcmask 130048   ;;  %v191_v58 = vlaneseq  ;;  %vm1031_vm2 = vcmask 326656   ;;  %s4970_s29 = smov 64   ;;  %s4971_s30 = smov 96   ;;  %vm2444_vm3 = vcmask 64512   ;;  %s6811_s1 = inlined_call_operand.vmem [shape: f32[4,16,16], index: 1, kind: input, shape index: {}]   ;;  %s6812_s3 = inlined_call_operand.vmem [shape: f32[4,16], index: 3, kind: input, shape index: {}]   ;;  %s6813_s0 = inlined_call_operand.vmem [shape: f32[4,16,40], index: 0, kind: input, shape index: {}]   ;;  %s6814_s5 = inlined_call_operand.vmem [shape: f32[40,1024], index: 5, kind: input, shape index: {}]   ;;  %s6815_s4 = inlined_call_operand.vmem [shape: f32[40,1024], index: 4, kind: input, shape index: {}]   ;;  %s6816_s2 = inlined_call_operand.vmem [shape: f32[16,512], index: 2, kind: input, shape index: {}]   ;;  %s6817_s8 = inlined_call_operand.vmem [shape: f32[4,1,96], index: 8, kind: input, shape index: {}]   ;;  %s6818_s7 = inlined_call_operand.vmem [shape: f32[40,512], index: 7, kind: input, shape index: {}]   ;;  %s6819_s6 = inlined_call_operand.vmem [shape: f32[40,512], index: 6, kind: input, shape index: {}]   ;;  %s6820_s9 = inlined_call_operand.vmem [shape: f32[4,1,512], index: 9, kind: output, shape index: {}]  }
   0x1   :  { %v40_v0 = vld [vmem:[%s6811_s1] sm:$0xff]  ;;  %v42_v1 = vld [vmem:[%s6811_s1 + $0x10] sm:$0xff]  ;;  %v41_v2 = vld [vmem:[%s6811_s1 + $0x8] sm:$0xff]  ;;  %s4972_s12 = smov 8   ;;  %vm3954_vm4 = vcmask 1041409   ;;  %vm3957_vm5 = vcmask 1042434  }
   0x2   :  { %v86_v3 = vsel %vm85_vm0, %v40_v0, 0.0  ;;  %v92_v4 = vsel %vm85_vm0, %v42_v1, 0.0  ;;  %v43_v5 = vld [vmem:[%s6811_s1 + $0x18] sm:$0xff]  ;;  %v89_v6 = vsel %vm85_vm0, %v41_v2, 0.0  ;;  %v44_v8 = vld [vmem:[%s6811_s1 + $0x20] sm:$0xff]  ;;  %v45_v9 = vld [vmem:[%s6811_s1 + $0x28] sm:$0xff] }
   0x3   :  { %87 = vadd.xlane.f32.xlu0 %v86_v3  ;;  %93 = vadd.xlane.f32.xlu1 %v92_v4  ;;  %v95_v7 = vsel %vm85_vm0, %v43_v5, 0.0  ;;  %v98_v10 = vsel %vm85_vm0, %v44_v8, 0.0  ;;  %v101_v11 = vsel %vm85_vm0, %v45_v9, 0.0  ;;  %v46_v12 = vld [vmem:[%s6811_s1 + $0x30] sm:$0xff]  ;;  %v47_v13 = vld [vmem:[%s6811_s1 + $0x38] sm:$0xff]  ;;  %vm5137_vm1 = vmpackc.low %vm85_vm0, %vm85_vm0  ;;  %vm3960_vm6 = vcmask 1043459  }
   0x4   :  { %v104_v14 = vsel %vm85_vm0, %v46_v12, 0.0  ;;  %v107_v15 = vsel %vm85_vm0, %v47_v13, 0.0  ;;  %vm4104_vm7 = vcmask 261120   ;;  %vm4106_vm8 = vcmask 523264  }
   0x5   :  { %vm4108_vm9 = vcmask 785408   ;;  %vm4163_vm10 = vcmp.lt.s32.totalorder %v191_v58, 512 }
   0x7   :  { %90 = vadd.xlane.f32.xlu0 %v89_v6  ;;  %96 = vadd.xlane.f32.xlu1 %v95_v7 }
   0xb   :  { %99 = vadd.xlane.f32.xlu0 %v98_v10  ;;  %102 = vadd.xlane.f32.xlu1 %v101_v11  ;;  %v48_v11 = vld [vmem:[%s6812_s3] sm:$0xf] }
   0xf   :  { %105 = vadd.xlane.f32.xlu0 %v104_v14  ;;  %108 = vadd.xlane.f32.xlu1 %v107_v15 }
  0x90   :  { %v88_v16 = vpop.xlane.xlu0 %87  ;;  %v94_v17 = vpop.xlane.xlu1 %93 }
  0x91   :  { %v111_v18 = vmul.f32 0.0625, %v88_v16  ;;  %v113_v19 = vmul.f32 0.0625, %v94_v17 }
  0x93   :  { %v5057_v20 = vsub.f32 %v40_v0, %v111_v18  ;;  %v5059_v21 = vsub.f32 %v42_v1, %v113_v19  ;;  %v5098_v0 = vshrl.u32 %v191_v58, 7 }
  0x94   :  { %v91_v22 = vpop.xlane.xlu0 %90  ;;  %v97_v23 = vpop.xlane.xlu1 %96 }
  0x95   :  { %v112_v24 = vmul.f32 0.0625, %v91_v22  ;;  %v114_v25 = vmul.f32 0.0625, %v97_v23  ;;  %v127_v26 = vmul.f32 %v5057_v20, %v5057_v20  ;;  %v129_v27 = vmul.f32 %v5059_v21, %v5059_v21 }
  0x96   :  { %v193_v7 = vsub.s32 0, %v5098_v0  ;;  %v205_v14 = vsub.s32 1, %v5098_v0  ;;  %v2467_v15 = vsub.s32 3, %v5098_v0 }
  0x97   :  { %v5065_v28 = vsub.f32 %v41_v2, %v112_v24  ;;  %v5067_v29 = vsub.f32 %v43_v5, %v114_v25  ;;  %v135_v30 = vsel %vm85_vm0, %v127_v26, 0.0  ;;  %v141_v33 = vsel %vm85_vm0, %v129_v27, 0.0 }
  0x98   :  { %136 = vadd.xlane.f32.xlu0 %v135_v30  ;;  %v100_v31 = vpop.xlane.xlu0 %99  ;;  %v103_v32 = vpop.xlane.xlu1 %102  ;;  %v5107_v18 = vrot.slane %v48_v11, %v193_v7  ;;  %v5112_v27 = vrot.slane %v48_v11, %v205_v14  ;;  %v5114_v30 = vrot.slane %v48_v11, %v2467_v15 }
  0x99   :  { %v115_v34 = vmul.f32 0.0625, %v100_v31  ;;  %v116_v35 = vmul.f32 0.0625, %v103_v32  ;;  %v128_v36 = vmul.f32 %v5065_v28, %v5065_v28  ;;  %v130_v37 = vmul.f32 %v5067_v29, %v5067_v29 }
  0x9b   :  { %v5075_v38 = vsub.f32 %v44_v8, %v115_v34  ;;  %v5077_v39 = vsub.f32 %v45_v9, %v116_v35  ;;  %v138_v40 = vsel %vm85_vm0, %v128_v36, 0.0  ;;  %v144_v43 = vsel %vm85_vm0, %v130_v37, 0.0 }
  0x9c   :  { %142 = vadd.xlane.f32.xlu0 %v141_v33  ;;  %139 = vadd.xlane.f32.xlu1 %v138_v40  ;;  %v106_v41 = vpop.xlane.xlu0 %105  ;;  %v109_v42 = vpop.xlane.xlu1 %108  ;;  %v2455_v8 = vsub.s32 2, %v5098_v0 }
  0x9d   :  { %v117_v44 = vmul.f32 0.0625, %v106_v41  ;;  %v118_v45 = vmul.f32 0.0625, %v109_v42  ;;  %v131_v46 = vmul.f32 %v5075_v38, %v5075_v38  ;;  %v132_v47 = vmul.f32 %v5077_v39, %v5077_v39 }
  0x9e   :  { %v5109_v19 = vrot.slane %v48_v11, %v2455_v8 }
  0x9f   :  { %v5085_v48 = vsub.f32 %v46_v12, %v117_v44  ;;  %v5087_v49 = vsub.f32 %v47_v13, %v118_v45  ;;  %v147_v50 = vsel %vm85_vm0, %v131_v46, 0.0  ;;  %v150_v51 = vsel %vm85_vm0, %v132_v47, 0.0 }
  0xa0   :  { %145 = vadd.xlane.f32.xlu1 %v144_v43  ;;  %148 = vadd.xlane.f32.xlu0 %v147_v50 }
  0xa1   :  { %v133_v52 = vmul.f32 %v5085_v48, %v5085_v48  ;;  %v134_v53 = vmul.f32 %v5087_v49, %v5087_v49 }
  0xa3   :  { %v153_v54 = vsel %vm85_vm0, %v133_v52, 0.0  ;;  %v156_v55 = vsel %vm85_vm0, %v134_v53, 0.0  ;;  %v5830_v52 = vld [vmem:[%s6816_s2 + $0x8] sm:$0xff] }
  0xa4   :  { %151 = vadd.xlane.f32.xlu1 %v150_v51  ;;  %154 = vadd.xlane.f32.xlu0 %v153_v54 }
  0xa8   :  { %157 = vadd.xlane.f32.xlu1 %v156_v55 }
 0x125   :  { %v137_v56 = vpop.xlane.xlu0 %136 }
 0x126   :  { %v159_v57 = vmul.f32 0.0625, %v137_v56 }
 0x128   :  { %v167_v59 = vadd.f32 1e-12, %v159_v57 }
 0x129   :  { %v140_v60 = vpop.xlane.xlu1 %139  ;;  %v143_v61 = vpop.xlane.xlu0 %142 }
 0x12a   :  { %4792 = vrsqrt.f32 %v167_v59  ;;  %v160_v62 = vmul.f32 0.0625, %v140_v60  ;;  %v161_v63 = vmul.f32 0.0625, %v143_v61 }
 0x12c   :  { %v168_v1 = vadd.f32 1e-12, %v160_v62  ;;  %v169_v2 = vadd.f32 1e-12, %v161_v63 }
 0x12d   :  { %v146_v3 = vpop.xlane.xlu1 %145  ;;  %v149_v4 = vpop.xlane.xlu0 %148 }
 0x12e   :  { %4794 = vrsqrt.f32 %v168_v1  ;;  %v162_v5 = vmul.f32 0.0625, %v146_v3  ;;  %v163_v6 = vmul.f32 0.0625, %v149_v4 }
 0x12f   :  { %4796 = vrsqrt.f32 %v169_v2 }
 0x130   :  { %v170_v9 = vadd.f32 1e-12, %v162_v5  ;;  %v171_v10 = vadd.f32 1e-12, %v163_v6 }
 0x131   :  { %v152_v12 = vpop.xlane.xlu1 %151  ;;  %v155_v13 = vpop.xlane.xlu0 %154 }
 0x132   :  { %4798 = vrsqrt.f32 %v170_v9  ;;  %v164_v16 = vmul.f32 0.0625, %v152_v12  ;;  %v165_v17 = vmul.f32 0.0625, %v155_v13 }
 0x133   :  { %4800 = vrsqrt.f32 %v171_v10 }
 0x134   :  { %v4793_v22 = vpop.eup %4792  ;;  %v172_v23 = vadd.f32 1e-12, %v164_v16  ;;  %v173_v24 = vadd.f32 1e-12, %v165_v17 }
 0x135   :  { %v158_v25 = vpop.xlane.xlu1 %157  ;;  %v183_v26 = vmul.f32 %v4793_v22, %v5057_v20 }
 0x136   :  { %4802 = vrsqrt.f32 %v172_v23  ;;  %v166_v31 = vmul.f32 0.0625, %v158_v25 }
 0x137   :  { %4804 = vrsqrt.f32 %v173_v24  ;;  %v195_v32 = vmul.f32 %v5107_v18, %v183_v26  ;;  %v2457_v33 = vmul.f32 %v5109_v19, %v183_v26 }
 0x138   :  { %v4795_v34 = vpop.eup %4794  ;;  %v174_v35 = vadd.f32 1e-12, %v166_v31 }
 0x139   :  { %v4797_v36 = vpop.eup %4796  ;;  %v207_v37 = vadd.f32 %v5112_v27, %v195_v32  ;;  %v184_v40 = vmul.f32 %v4795_v34, %v5065_v28  ;;  %v5121_v20 = vadd.f32 %v5114_v30, %v2457_v33 }
 0x13a   :  { %4806 = vrsqrt.f32 %v174_v35  ;;  %v185_v41 = vmul.f32 %v4797_v36, %v5059_v21 }
 0x13b   :  { %4405 = vmatprep.mubr.msk.f32.mxu0 %vm85_vm0, %v207_v37  ;;  %v196_v42 = vmul.f32 %v5107_v18, %v184_v40  ;;  %v2458_v43 = vmul.f32 %v5109_v19, %v184_v40 }
 0x13c   :  { %v4799_v44 = vpop.eup %4798  ;;  %v197_v45 = vmul.f32 %v5107_v18, %v185_v41  ;;  %v2459_v46 = vmul.f32 %v5109_v19, %v185_v41 }
 0x13d   :  { %v4801_v47 = vpop.eup %4800  ;;  %v208_v28 = vadd.f32 %v5112_v27, %v196_v42  ;;  %v186_v50 = vmul.f32 %v4799_v44, %v5067_v29  ;;  %v5132_v51 = vadd.f32 %v5114_v30, %v2458_v43 }
 0x13e   :  { %v209_v21 = vadd.f32 %v5112_v27, %v197_v45  ;;  %v187_v53 = vmul.f32 %v4801_v47, %v5075_v38  ;;  %v5143_v54 = vadd.f32 %v5114_v30, %v2459_v46 }
 0x13f   :  { %v4513_v55 = vpack.c.bf16 %v208_v28, %v207_v37  ;;  %v198_v56 = vmul.f32 %v5107_v18, %v186_v50  ;;  %v2460_v29 = vmul.f32 %v5109_v19, %v186_v50  ;;  %v5149_v57 = vpack.c.bf16 %v5132_v51, %v5121_v20 }
 0x140   :  { %v4803_v59 = vpop.eup %4802  ;;  %4412 = vmatprep.mubr.msk.f32.mxu1 %vm85_vm0, %v209_v21  ;;  %v199_v60 = vmul.f32 %v5107_v18, %v187_v53  ;;  %v2461_v61 = vmul.f32 %v5109_v19, %v187_v53 }
 0x141   :  { %v4805_v38 = vpop.eup %4804  ;;  %4515 = vmatprep.subr.msk.bf16.mxu0 %vm5137_vm1, %v4513_v55  ;;  %v210_v62 = vadd.f32 %v5112_v27, %v198_v56  ;;  %v188_v63 = vmul.f32 %v4803_v59, %v5077_v39  ;;  %v5159_v1 = vadd.f32 %v5114_v30, %v2460_v29 }
 0x142   :  { %4518 = vmatpush3.bf16.xpose.msk.msra.mxu0 %vm5137_vm1, %v4513_v55  ;;  %v189_v2 = vmul.f32 %v4805_v38, %v5085_v48  ;;  %v5165_v3 = vadd.f32 %v5114_v30, %v2461_v61  ;;  %v211_v8 = vadd.f32 %v5112_v27, %v199_v60 }
 0x143   :  { %v4519_v4 = vpack.c.bf16 %v210_v62, %v209_v21  ;;  %v200_v5 = vmul.f32 %v5107_v18, %v188_v63  ;;  %v5170_v6 = vpack.c.bf16 %v5159_v1, %v5143_v54  ;;  %v2462_v39 = vmul.f32 %v5109_v19, %v188_v63 }
 0x144   :  { %v4807_v7 = vpop.eup %4806  ;;  %v2463_v9 = vmul.f32 %v5109_v19, %v189_v2  ;;  %v201_v11 = vmul.f32 %v5107_v18, %v189_v2 }
 0x145   :  { %4521 = vmatprep.subr.msk.bf16.mxu1 %vm5137_vm1, %v4519_v4  ;;  %v212_v48 = vadd.f32 %v5112_v27, %v200_v5  ;;  %v190_v10 = vmul.f32 %v4807_v7, %v5087_v49  ;;  %v5181_v12 = vadd.f32 %v5114_v30, %v2462_v39 }
 0x146   :  { %4524 = vmatpush3.bf16.xpose.msk.msra.mxu1 %vm5137_vm1, %v4519_v4  ;;  %v5186_v13 = vadd.f32 %v5114_v30, %v2463_v9  ;;  %v213_v17 = vadd.f32 %v5112_v27, %v201_v11 }
 0x147   :  { %v4525_v14 = vpack.c.bf16 %v212_v48, %v211_v8  ;;  %v202_v15 = vmul.f32 %v5107_v18, %v190_v10  ;;  %v5191_v16 = vpack.c.bf16 %v5181_v12, %v5165_v3  ;;  %v2464_v49 = vmul.f32 %v5109_v19, %v190_v10 }
 0x149   :  { %4406 = vmatmul.mubr.msk.f32.vlgmr.msra.gmra.mrb[0].mxu0 %vm85_vm0, %v208_v28  ;;  %4527 = vmatprep.subr.msk.bf16.mxu0 %vm5137_vm1, %v4525_v14  ;;  %v214_v22 = vadd.f32 %v5112_v27, %v202_v15  ;;  %v5200_v23 = vadd.f32 %v5114_v30, %v2464_v49 }
 0x14a   :  { %4530 = vmatpush3.bf16.xpose.msk.msra.mxu0 %vm5137_vm1, %v4525_v14  ;;  %4419 = vmatprep.mubr.msk.f32.mxu0 %vm85_vm0, %v211_v8 }
 0x14b   :  { %v4531_v18 = vpack.c.bf16 %v214_v22, %v213_v17  ;;  %v5207_v19 = vpack.c.bf16 %v5200_v23, %v5186_v13 }
 0x14d   :  { %4413 = vmatmul.mubr.msk.f32.vlgmr.msra.gmra.mrb[0].mxu1 %vm85_vm0, %v210_v62  ;;  %4533 = vmatprep.subr.msk.bf16.mxu1 %vm5137_vm1, %v4531_v18 }
 0x14e   :  { %4536 = vmatpush3.bf16.xpose.msk.msra.mxu1 %vm5137_vm1, %v4531_v18  ;;  %4426 = vmatprep.mubr.msk.f32.mxu1 %vm85_vm0, %v213_v17 }
 0x151   :  { %4420 = vmatmul.mubr.msk.f32.vlgmr.msra.gmra.mrb[2].mxu0 %vm85_vm0, %v212_v48 }
 0x155   :  { %4427 = vmatmul.mubr.msk.f32.vlgmr.msra.gmra.mrb[2].mxu1 %vm85_vm0, %v214_v22 }
 0x21c   :  { %v4407_v24 = vpop.f32.mrb[0].mxu0 }
 0x21d   :  { %v287_v25 = vpop.f32.mrb[1].mxu0  ;;  %v542_v26 = vsel %vm85_vm0, %v4407_v24, -inf }
 0x21e   :  { %543 = vmax.xlane.f32.xlu1 %v542_v26  ;;  %v539_v27 = vsel %vm85_vm0, %v287_v25, -inf }
 0x21f   :  { %540 = vmax.xlane.f32.xlu0 %v539_v27 }
 0x220   :  { %v4414_v30 = vpop.f32.mrb[0].mxu1 }
 0x221   :  { %v368_v31 = vpop.f32.mrb[1].mxu1  ;;  %v548_v32 = vsel %vm85_vm0, %v4414_v30, -inf }
 0x222   :  { %549 = vmax.xlane.f32.xlu1 %v548_v32  ;;  %v545_v33 = vsel %vm85_vm0, %v368_v31, -inf }
 0x223   :  { %546 = vmax.xlane.f32.xlu0 %v545_v33  ;;  %v5260_v33 = vld [vmem:[%s6813_s0] sm:$0xff] }
 0x224   :  { %v4421_v34 = vpop.f32.mrb[2].mxu0 }
 0x225   :  { %v449_v35 = vpop.f32.mrb[3].mxu0  ;;  %v554_v36 = vsel %vm85_vm0, %v4421_v34, -inf }
 0x226   :  { %555 = vmax.xlane.f32.xlu1 %v554_v36  ;;  %v551_v37 = vsel %vm85_vm0, %v449_v35, -inf  ;;  %v5272_v36 = vld [vmem:[%s6813_s0 + $0x10] sm:$0xff] }
 0x227   :  { %552 = vmax.xlane.f32.xlu0 %v551_v37  ;;  %v5277_v37 = vld [vmem:[%s6813_s0 + $0x18] sm:$0xff] }
 0x228   :  { %v4428_v40 = vpop.f32.mrb[2].mxu1 }
 0x229   :  { %v530_v41 = vpop.f32.mrb[3].mxu1  ;;  %v560_v42 = vsel %vm85_vm0, %v4428_v40, -inf }
 0x22a   :  { %561 = vmax.xlane.f32.xlu1 %v560_v42  ;;  %v557_v43 = vsel %vm85_vm0, %v530_v41, -inf  ;;  %v5289_v42 = vld [vmem:[%s6813_s0 + $0x28] sm:$0xff] }
 0x22b   :  { %558 = vmax.xlane.f32.xlu0 %v557_v43 }
 0x2ab   :  { %v544_v44 = vpop.xlane.xlu1 %543 }
 0x2ac   :  { %v564_v45 = vsub.f32 %v4407_v24, %v544_v44  ;;  %v541_v46 = vpop.xlane.xlu0 %540  ;;  %v5296_v44 = vld [vmem:[%s6813_s0 + $0x30] sm:$0xff] }
 0x2ad   :  { %v563_v47 = vsub.f32 %v287_v25, %v541_v46 }
 0x2ae   :  { %v573_v28 = vmul.f32 1.442695, %v564_v45  ;;  %v5301_v45 = vld [vmem:[%s6813_s0 + $0x38] sm:$0xff] }
 0x2af   :  { %v571_v50 = vmul.f32 1.442695, %v563_v47  ;;  %v550_v21 = vpop.xlane.xlu1 %549  ;;  %v4549_v46 = vpack.c.bf16 %v5301_v45, %v5296_v44 }
 0x2b0   :  { %4808 = vpow2.f32 %v573_v28  ;;  %v566_v53 = vsub.f32 %v4414_v30, %v550_v21  ;;  %v547_v55 = vpop.xlane.xlu0 %546 }
 0x2b1   :  { %4810 = vpow2.f32 %v571_v50  ;;  %v565_v56 = vsub.f32 %v368_v31, %v547_v55 }
 0x2b2   :  { %v577_v29 = vmul.f32 1.442695, %v566_v53 }
 0x2b3   :  { %v575_v59 = vmul.f32 1.442695, %v565_v56  ;;  %v556_v60 = vpop.xlane.xlu1 %555 }
 0x2b4   :  { %4812 = vpow2.f32 %v577_v29  ;;  %v568_v61 = vsub.f32 %v4421_v34, %v556_v60  ;;  %v553_v38 = vpop.xlane.xlu0 %552  ;;  %v5265_v34 = vld [vmem:[%s6813_s0 + $0x8] sm:$0xff] }
 0x2b5   :  { %4814 = vpow2.f32 %v575_v59  ;;  %v567_v62 = vsub.f32 %v449_v35, %v553_v38  ;;  %v4537_v35 = vpack.c.bf16 %v5265_v34, %v5260_v33  ;;  %v992_v29 = vld [vmem:[%s6814_s5 + $0x8] sm:$0xff] }
 0x2b6   :  { %v581_v63 = vmul.f32 1.442695, %v568_v61  ;;  %v1000_v59 = vld [vmem:[%s6814_s5 + $0x48] sm:$0xff] }
 0x2b7   :  { %v579_v2 = vmul.f32 1.442695, %v567_v62  ;;  %v562_v4 = vpop.xlane.xlu1 %561  ;;  %4538 = vmatprep.subr.bf16.mxu0 %v4537_v35 }
 0x2b8   :  { %4816 = vpow2.f32 %v581_v63  ;;  %v570_v5 = vsub.f32 %v4428_v40, %v562_v4  ;;  %v559_v39 = vpop.xlane.xlu0 %558  ;;  %4540 = vmatpush3.bf16.msra.mxu0 %v4537_v35  ;;  %v4541_v40 = vpack.c.bf16 %v5277_v37, %v5272_v36 }
 0x2b9   :  { %4818 = vpow2.f32 %v579_v2  ;;  %v569_v7 = vsub.f32 %v530_v41, %v559_v39  ;;  %v5284_v41 = vld [vmem:[%s6813_s0 + $0x20] sm:$0xff]  ;;  %v4553_v2 = vpack.c.bf16 %v1000_v59, %v992_v29  ;;  %v1002_v39 = vld [vmem:[%s6814_s5 + $0x58] sm:$0xff]  ;;  %v1017_v29 = vld [vmem:[%s6814_s5 + $0xd0] sm:$0xff] }
 0x2ba   :  { %v5225_v8 = vpop.eup %4808  ;;  %v585_v9 = vmul.f32 1.442695, %v570_v5  ;;  %4542 = vmatprep.subr.bf16.mxu1 %v4541_v40  ;;  %v4545_v43 = vpack.c.bf16 %v5289_v42, %v5284_v41  ;;  %v994_v5 = vld [vmem:[%s6814_s5 + $0x18] sm:$0xff] }
 0x2bb   :  { %v5227_v48 = vpop.eup %4810  ;;  %v583_v10 = vmul.f32 1.442695, %v569_v7  ;;  %v590_v11 = vsel %vm85_vm0, %v5225_v8, 0.0  ;;  %4544 = vmatpush3.bf16.msra.mxu1 %v4541_v40  ;;  %v1007_v40 = vld [vmem:[%s6814_s5 + $0x80] sm:$0xff]  ;;  %v1026_v59 = vld [vmem:[%s6814_s5 + $0x118] sm:$0xff] }
 0x2bc   :  { %4820 = vpow2.f32 %v585_v9  ;;  %591 = vadd.xlane.f32.xlu1 %v590_v11  ;;  %v587_v14 = vsel %vm85_vm0, %v5227_v48, 0.0  ;;  %4546 = vmatprep.subr.bf16.mxu0 %v4545_v43  ;;  %v999_v11 = vld [vmem:[%s6814_s5 + $0x40] sm:$0xff] }
 0x2bd   :  { %4822 = vpow2.f32 %v583_v10  ;;  %588 = vadd.xlane.f32.xlu0 %v587_v14  ;;  %4550 = vmatprep.subr.bf16.mxu1 %v4549_v46  ;;  %v991_v10 = vld [vmem:[%s6814_s5] sm:$0xff] }
 0x2be   :  { %v5233_v15 = vpop.eup %4812 }
 0x2bf   :  { %v5235_v49 = vpop.eup %4814  ;;  %v596_v17 = vsel %vm85_vm0, %v5233_v15, 0.0 }
 0x2c0   :  { %597 = vadd.xlane.f32.xlu1 %v596_v17  ;;  %v593_v22 = vsel %vm85_vm0, %v5235_v49, 0.0 }
 0x2c1   :  { %594 = vadd.xlane.f32.xlu0 %v593_v22 }
 0x2c2   :  { %v5241_v18 = vpop.eup %4816 }
 0x2c3   :  { %v5243_v24 = vpop.eup %4818  ;;  %v602_v25 = vsel %vm85_vm0, %v5241_v18, 0.0 }
 0x2c4   :  { %603 = vadd.xlane.f32.xlu1 %v602_v25  ;;  %v599_v26 = vsel %vm85_vm0, %v5243_v24, 0.0  ;;  %v4555_v25 = vpack.c.bf16 %v999_v11, %v991_v10  ;;  %v1012_v10 = vld [vmem:[%s6814_s5 + $0xa8] sm:$0xff] }
 0x2c5   :  { %600 = vadd.xlane.f32.xlu0 %v599_v26  ;;  %v993_v26 = vld [vmem:[%s6814_s5 + $0x10] sm:$0xff]  ;;  %v1020_v11 = vld [vmem:[%s6814_s5 + $0xe8] sm:$0xff] }
 0x2c6   :  { %v5249_v27 = vpop.eup %4820 }
 0x2c7   :  { %v5251_v30 = vpop.eup %4822  ;;  %v608_v31 = vsel %vm85_vm0, %v5249_v27, 0.0 }
 0x2c8   :  { %609 = vadd.xlane.f32.xlu1 %v608_v31  ;;  %v605_v32 = vsel %vm85_vm0, %v5251_v30, 0.0 }
 0x2c9   :  { %606 = vadd.xlane.f32.xlu0 %v605_v32  ;;  %v1001_v32 = vld [vmem:[%s6814_s5 + $0x50] sm:$0xff] }
 0x349   :  { %v592_v47 = vpop.xlane.xlu1 %591 }
 0x34a   :  { %4824 = vrcp.f32 %v592_v47  ;;  %v589_v28 = vpop.xlane.xlu0 %588 }
 0x34b   :  { %4826 = vrcp.f32 %v589_v28 }
 0x34d   :  { %v598_v50 = vpop.xlane.xlu1 %597 }
 0x34e   :  { %4828 = vrcp.f32 %v598_v50  ;;  %v595_v21 = vpop.xlane.xlu0 %594  ;;  %v4563_v50 = vpack.c.bf16 %v1001_v32, %v993_v26 }
 0x34f   :  { %4830 = vrcp.f32 %v595_v21 }
 0x351   :  { %v604_v53 = vpop.xlane.xlu1 %603 }
 0x352   :  { %4832 = vrcp.f32 %v604_v53  ;;  %v601_v55 = vpop.xlane.xlu0 %600 }
 0x353   :  { %4834 = vrcp.f32 %v601_v55 }
 0x354   :  { %v4825_v56 = vpop.eup %4824 }
 0x355   :  { %v4827_v60 = vpop.eup %4826  ;;  %v610_v61 = vpop.xlane.xlu1 %609  ;;  %v614_v63 = vmul.f32 %v4825_v56, %v5225_v8  ;;  %v1009_v56 = vld [vmem:[%s6814_s5 + $0x90] sm:$0xff] }
 0x356   :  { %4836 = vrcp.f32 %v610_v61  ;;  %v607_v38 = vpop.xlane.xlu0 %606  ;;  %v612_v62 = vmul.f32 %v4827_v60, %v5227_v48  ;;  %v4561_v48 = vpack.c.bf16 %v1002_v39, %v994_v5  ;;  %v1023_v60 = vld [vmem:[%s6814_s5 + $0x100] sm:$0xff]  ;;  %v1025_v61 = vld [vmem:[%s6814_s5 + $0x110] sm:$0xff]  ;;  %v1006_v5 = vld [vmem:[%s6814_s5 + $0x78] sm:$0xff] }
 0x357   :  { %4838 = vrcp.f32 %v607_v38  ;;  %v4968_v38 = vmov 0.0  }
 0x358   :  { %v4829_v4 = vpop.eup %4828  ;;  %4433 = vmatprep.mubr.msk.f32.mxu0 %vm85_vm0, %v612_v62  ;;  %v996_v62 = vld [vmem:[%s6814_s5 + $0x28] sm:$0xff] }
 0x359   :  { %v4831_v7 = vpop.eup %4830  ;;  %4434 = vmatmul.mubr.msk.f32.vlgmr.msra.gmra.mrb[4].mxu0 %vm85_vm0, %v614_v63  ;;  %v618_v8 = vmul.f32 %v4829_v4, %v5233_v15  ;;  %v1016_v15 = vld [vmem:[%s6814_s5 + $0xc8] sm:$0xff] }
 0x35a   :  { %v616_v9 = vmul.f32 %v4831_v7, %v5235_v49  ;;  %4548 = vmatpush3.bf16.msra.mxu0 %v4545_v43  ;;  %v1008_v49 = vld [vmem:[%s6814_s5 + $0x88] sm:$0xff]  ;;  %v995_v7 = vld [vmem:[%s6814_s5 + $0x20] sm:$0xff] }
 0x35b   :  { %4554 = vmatprep.subr.bf16.mxu0 %v4553_v2  ;;  %v4557_v35 = vpack.c.bf16 %v1016_v15, %v1008_v49  ;;  %v1004_v63 = vld [vmem:[%s6814_s5 + $0x68] sm:$0xff]  ;;  %v998_v2 = vld [vmem:[%s6814_s5 + $0x38] sm:$0xff] }
 0x35c   :  { %v4833_v14 = vpop.eup %4832  ;;  %4440 = vmatprep.mubr.msk.f32.mxu1 %vm85_vm0, %v616_v9  ;;  %v4569_v4 = vpack.c.bf16 %v1004_v63, %v996_v62  ;;  %v4577_v39 = vpack.c.bf16 %v1006_v5, %v998_v2  ;;  %v1003_v9 = vld [vmem:[%s6814_s5 + $0x60] sm:$0xff]  ;;  %v1022_v49 = vld [vmem:[%s6814_s5 + $0xf8] sm:$0xff]  ;;  %v953_v5 = vld [vmem:[%s6815_s4 + $0x10] sm:$0xff] }
 0x35d   :  { %v4835_v17 = vpop.eup %4834  ;;  %4441 = vmatmul.mubr.msk.f32.vlgmr.msra.gmra.mrb[4].mxu1 %vm85_vm0, %v618_v8  ;;  %v622_v31 = vmul.f32 %v4833_v14, %v5241_v18  ;;  %v1010_v18 = vld [vmem:[%s6814_s5 + $0x98] sm:$0xff]  ;;  %v997_v8 = vld [vmem:[%s6814_s5 + $0x30] sm:$0xff]  ;;  %v4571_v15 = vpack.c.bf16 %v1003_v9, %v995_v7  ;;  %v951_v2 = vld [vmem:[%s6815_s4] sm:$0xff] }
 0x35e   :  { %v620_v22 = vmul.f32 %v4835_v17, %v5243_v24  ;;  %4552 = vmatpush3.bf16.msra.mxu1 %v4549_v46  ;;  %v1015_v24 = vld [vmem:[%s6814_s5 + $0xc0] sm:$0xff]  ;;  %v1018_v46 = vld [vmem:[%s6814_s5 + $0xd8] sm:$0xff]  ;;  %v968_v7 = vld [vmem:[%s6815_s4 + $0x88] sm:$0xff] }
 0x35f   :  { %4562 = vmatprep.subr.bf16.mxu1 %v4561_v48  ;;  %v4559_v21 = vpack.c.bf16 %v1015_v24, %v1007_v40  ;;  %v4565_v55 = vpack.c.bf16 %v1018_v46, %v1010_v18  ;;  %v1005_v48 = vld [vmem:[%s6814_s5 + $0x70] sm:$0xff]  ;;  %v1014_v14 = vld [vmem:[%s6814_s5 + $0xb8] sm:$0xff]  ;;  %v976_v9 = vld [vmem:[%s6815_s4 + $0xc8] sm:$0xff] }
 0x360   :  { %v4837_v43 = vpop.eup %4836  ;;  %4447 = vmatprep.mubr.msk.f32.mxu0 %vm85_vm0, %v620_v22  ;;  %v4579_v17 = vpack.c.bf16 %v1005_v48, %v997_v8  ;;  %v4581_v32 = vpack.c.bf16 %v1022_v49, %v1014_v14  ;;  %v1013_v40 = vld [vmem:[%s6814_s5 + $0xb0] sm:$0xff]  ;;  %v970_v8 = vld [vmem:[%s6815_s4 + $0x98] sm:$0xff]  ;;  %v967_v14 = vld [vmem:[%s6815_s4 + $0x80] sm:$0xff]  ;;  %v4589_v49 = vpack.c.bf16 %v976_v9, %v968_v7 }
 0x361   :  { %v4839_v47 = vpop.eup %4838  ;;  %4448 = vmatmul.mubr.msk.f32.vlgmr.msra.gmra.mrb[6].mxu0 %vm85_vm0, %v622_v31  ;;  %v626_v53 = vmul.f32 %v4837_v43, %v5249_v27  ;;  %v1024_v27 = vld [vmem:[%s6814_s5 + $0x108] sm:$0xff]  ;;  %v4573_v31 = vpack.c.bf16 %v1020_v11, %v1012_v10  ;;  %v1021_v24 = vld [vmem:[%s6814_s5 + $0xf0] sm:$0xff]  ;;  %v978_v48 = vld [vmem:[%s6815_s4 + $0xd8] sm:$0xff] }
 0x362   :  { %v624_v28 = vmul.f32 %v4839_v47, %v5251_v30  ;;  %4556 = vmatpush1.bf16.msra.mxu0 %v4555_v25  ;;  %v4567_v30 = vpack.c.bf16 %v1017_v29, %v1009_v56  ;;  %1120 = vmatprep.mubr.f32.mxu0 %v4968_v38  ;;  %v1011_v25 = vld [vmem:[%s6814_s5 + $0xa0] sm:$0xff]  ;;  %v4583_v46 = vpack.c.bf16 %v1021_v24, %v1013_v40  ;;  %v962_v56 = vld [vmem:[%s6815_s4 + $0x58] sm:$0xff]  ;;  %v984_v40 = vld [vmem:[%s6815_s4 + $0x108] sm:$0xff] }
 0x363   :  { %4558 = vmatprep.subr.bf16.mxu0 %v4557_v35  ;;  %v1019_v35 = vld [vmem:[%s6814_s5 + $0xe0] sm:$0xff]  ;;  %v986_v24 = vld [vmem:[%s6815_s4 + $0x118] sm:$0xff] }
 0x364   :  { %4454 = vmatprep.mubr.msk.f32.mxu1 %vm85_vm0, %v624_v28  ;;  %v4575_v18 = vpack.c.bf16 %v1019_v35, %v1011_v25  ;;  %v1028_v28 = vld [vmem:[%s6814_s5 + $0x128] sm:$0xff]  ;;  %v969_v25 = vld [vmem:[%s6815_s4 + $0x90] sm:$0xff] }
 0x365   :  { %4455 = vmatmul.mubr.msk.f32.vlgmr.msra.gmra.mrb[6].mxu1 %vm85_vm0, %v626_v53  ;;  %v960_v53 = vld [vmem:[%s6815_s4 + $0x48] sm:$0xff] }
 0x366   :  { %4564 = vmatpush1.bf16.msra.mxu1 %v4563_v50  ;;  %4560 = vmatpush1.bf16.msra.mxu0 %v4559_v21  ;;  %v1030_v50 = vld [vmem:[%s6814_s5 + $0x138] sm:$0xff]  ;;  %v952_v21 = vld [vmem:[%s6815_s4 + $0x8] sm:$0xff] }
 0x367   :  { %4566 = vmatprep.subr.bf16.mxu1 %v4565_v55  ;;  %1064 = vmatprep.subr.mxu0 %v1024_v27  ;;  %v954_v55 = vld [vmem:[%s6815_s4 + $0x18] sm:$0xff]  ;;  %v1027_v27 = vld [vmem:[%s6814_s5 + $0x120] sm:$0xff] }
 0x368   :  { %1233 = vmatprep.mubr.f32.mxu1 %v4968_v38 }
 0x36a   :  { %4568 = vmatpush1.bf16.msra.mxu1 %v4567_v30  ;;  %1065 = vmatpush1.msra.mxu0 %v1023_v60  ;;  %v4585_v60 = vpack.c.bf16 %v960_v53, %v952_v21 }
 0x36b   :  { %1177 = vmatprep.subr.mxu1 %v1026_v59  ;;  %4570 = vmatprep.subr.bf16.mxu0 %v4569_v4  ;;  %v1029_v59 = vld [vmem:[%s6814_s5 + $0x130] sm:$0xff]  ;;  %s4969_s5 = smov 120   ;;  %v959_v4 = vld [vmem:[%s6815_s4 + $0x40] sm:$0xff] }
 0x36c   :  { %2380 = vrot.lane.b32.xlu0 %v5260_v33, %s4969_s5  ;;  %2382 = vrot.lane.b32.xlu1 %v5265_v34, %s4969_s5  ;;  %v4587_v10 = vpack.c.bf16 %v959_v4, %v951_v2  ;;  %v973_v2 = vld [vmem:[%s6815_s4 + $0xb0] sm:$0xff] }
 0x36d   :  { %v981_v4 = vld [vmem:[%s6815_s4 + $0xf0] sm:$0xff] }
 0x36e   :  { %1178 = vmatpush1.msra.mxu1 %v1025_v61  ;;  %v4593_v61 = vpack.c.bf16 %v962_v56, %v954_v55  ;;  %v957_v55 = vld [vmem:[%s6815_s4 + $0x30] sm:$0xff]  ;;  %v4615_v9 = vpack.c.bf16 %v981_v4, %v973_v2 }
 0x36f   :  { %4578 = vmatprep.subr.bf16.mxu1 %v4577_v39  ;;  %v961_v39 = vld [vmem:[%s6815_s4 + $0x50] sm:$0xff] }
 0x370   :  { %2384 = vrot.lane.b32.xlu0 %v5272_v36, %s4969_s5  ;;  %2386 = vrot.lane.b32.xlu1 %v5277_v37, %s4969_s5  ;;  %v4595_v11 = vpack.c.bf16 %v961_v39, %v953_v5  ;;  %v965_v56 = vld [vmem:[%s6815_s4 + $0x70] sm:$0xff] }
 0x374   :  { %2388 = vrot.lane.b32.xlu0 %v5284_v41, %s4969_s5  ;;  %2390 = vrot.lane.b32.xlu1 %v5289_v42, %s4969_s5 }
 0x378   :  { %2392 = vrot.lane.b32.xlu0 %v5296_v44, %s4969_s5  ;;  %2394 = vrot.lane.b32.xlu1 %v5301_v45, %s4969_s5 }
 0x42c   :  { %v5419_v22 = vpop.f32.mrb[4].mxu0 }
 0x42d   :  { %v5424_v26 = vpop.f32.mrb[5].mxu0 }
 0x42e   :  { %4201 = vmatmul.mubr.msk.f32.vlgmr.msra.gmra.mrb[8].mxu0 %vm1031_vm2, %v5424_v26  ;;  %4209 = vmatmul.mubr.msk.f32.vlgmr.msra.gmra.mrb[8].mxu1 %vm1031_vm2, %v5424_v26 }
 0x42f   :  { %4572 = vmatpush1.bf16.msra.mxu0 %v4571_v15  ;;  %4580 = vmatpush1.bf16.msra.mxu1 %v4579_v17  ;;  %v4597_v15 = vpack.c.bf16 %v978_v48, %v970_v8  ;;  %v975_v17 = vld [vmem:[%s6815_s4 + $0xc0] sm:$0xff]  ;;  %v988_v8 = vld [vmem:[%s6815_s4 + $0x128] sm:$0xff]  ;;  %v990_v48 = vld [vmem:[%s6815_s4 + $0x138] sm:$0xff] }
 0x430   :  { %v5439_v43 = vpop.f32.mrb[4].mxu1  ;;  %1126 = vmatprep.mubr.f32.mxu0 %v4968_v38  ;;  %1239 = vmatprep.mubr.f32.mxu1 %v4968_v38 }
 0x431   :  { %v5443_v47 = vpop.f32.mrb[5].mxu1  ;;  %4574 = vmatprep.subr.bf16.mxu0 %v4573_v31  ;;  %4582 = vmatprep.subr.bf16.mxu1 %v4581_v32  ;;  %v977_v31 = vld [vmem:[%s6815_s4 + $0xd0] sm:$0xff]  ;;  %v4591_v32 = vpack.c.bf16 %v975_v17, %v967_v14 }
 0x432   :  { %4202 = vmatmul.mubr.msk.f32.gmra.mrb[10].mxu0 %vm1031_vm2, %v5419_v22  ;;  %4210 = vmatmul.mubr.msk.f32.gmra.mrb[10].mxu1 %vm1031_vm2, %v5419_v22  ;;  %v4599_v35 = vpack.c.bf16 %v977_v31, %v969_v25 }
 0x433   :  { %1132 = vmatprep.mubr.f32.mxu0 %v4968_v38  ;;  %1245 = vmatprep.mubr.f32.mxu1 %v4968_v38 }
 0x434   :  { %v5469_v29 = vpop.f32.mrb[6].mxu0  ;;  %4576 = vmatpush1.bf16.msra.mxu0 %v4575_v18  ;;  %4584 = vmatpush1.bf16.msra.mxu1 %v4583_v46  ;;  %v964_v18 = vld [vmem:[%s6815_s4 + $0x68] sm:$0xff]  ;;  %v958_v46 = vld [vmem:[%s6815_s4 + $0x38] sm:$0xff] }
 0x435   :  { %v5471_v30 = vpop.f32.mrb[7].mxu0  ;;  %1290 = vmatprep.subr.mxu0 %v1028_v28  ;;  %1403 = vmatprep.subr.mxu1 %v1030_v50  ;;  %v966_v28 = vld [vmem:[%s6815_s4 + $0x78] sm:$0xff]  ;;  %v985_v50 = vld [vmem:[%s6815_s4 + $0x110] sm:$0xff] }
 0x436   :  { %4203 = vmatmul.mubr.msk.f32.gmra.mrb[12].mxu0 %vm1031_vm2, %v5443_v47  ;;  %4211 = vmatmul.mubr.msk.f32.gmra.mrb[12].mxu1 %vm1031_vm2, %v5443_v47  ;;  %v4609_v53 = vpack.c.bf16 %v966_v28, %v958_v46 }
 0x437   :  { %1138 = vmatprep.mubr.f32.mxu0 %v4968_v38  ;;  %1251 = vmatprep.mubr.f32.mxu1 %v4968_v38 }
 0x438   :  { %v5485_v62 = vpop.f32.mrb[6].mxu1  ;;  %1291 = vmatpush1.msra.mxu0 %v1027_v27  ;;  %1404 = vmatpush1.msra.mxu1 %v1029_v59  ;;  %v974_v27 = vld [vmem:[%s6815_s4 + $0xb8] sm:$0xff] }
 0x439   :  { %v5487_v63 = vpop.f32.mrb[7].mxu1  ;;  %4586 = vmatprep.subr.bf16.mxu0 %v4585_v60  ;;  %4594 = vmatprep.subr.bf16.mxu1 %v4593_v61  ;;  %v982_v59 = vld [vmem:[%s6815_s4 + $0xf8] sm:$0xff]  ;;  %v4611_v61 = vpack.c.bf16 %v965_v56, %v957_v55 }
 0x43a   :  { %4204 = vmatmul.mubr.msk.f32.gmra.mrb[14].mxu0 %vm1031_vm2, %v5439_v43  ;;  %4212 = vmatmul.mubr.msk.f32.gmra.mrb[14].mxu1 %vm1031_vm2, %v5439_v43  ;;  %v4613_v39 = vpack.c.bf16 %v982_v59, %v974_v27 }
 0x43b   :  { %1144 = vmatprep.mubr.f32.mxu0 %v4968_v38  ;;  %1257 = vmatprep.mubr.f32.mxu1 %v4968_v38 }
 0x43e   :  { %4205 = vmatmul.mubr.msk.f32.gmra.mrb[16].mxu0 %vm1031_vm2, %v5471_v30  ;;  %4213 = vmatmul.mubr.msk.f32.gmra.mrb[16].mxu1 %vm1031_vm2, %v5471_v30 }
 0x43f   :  { %1150 = vmatprep.mubr.f32.mxu0 %v4968_v38  ;;  %1263 = vmatprep.mubr.f32.mxu1 %v4968_v38 }
 0x442   :  { %4206 = vmatmul.mubr.msk.f32.gmra.mrb[18].mxu0 %vm1031_vm2, %v5469_v29  ;;  %4214 = vmatmul.mubr.msk.f32.gmra.mrb[18].mxu1 %vm1031_vm2, %v5469_v29 }
 0x443   :  { %1156 = vmatprep.mubr.f32.mxu0 %v4968_v38  ;;  %1269 = vmatprep.mubr.f32.mxu1 %v4968_v38 }
 0x446   :  { %4207 = vmatmul.mubr.msk.f32.gmra.mrb[20].mxu0 %vm1031_vm2, %v5487_v63  ;;  %4215 = vmatmul.mubr.msk.f32.gmra.mrb[20].mxu1 %vm1031_vm2, %v5487_v63 }
 0x447   :  { %1162 = vmatprep.mubr.f32.mxu0 %v4968_v38  ;;  %1275 = vmatprep.mubr.f32.mxu1 %v4968_v38 }
 0x44a   :  { %4208 = vmatmul.mubr.msk.f32.gmra.mrb[22].mxu0 %vm1031_vm2, %v5485_v62  ;;  %4216 = vmatmul.mubr.msk.f32.gmra.mrb[22].mxu1 %vm1031_vm2, %v5485_v62 }
 0x44b   :  { %1346 = vmatprep.mubr.f32.mxu0 %v4968_v38  ;;  %1459 = vmatprep.mubr.f32.mxu1 %v4968_v38 }
 0x44e   :  { %4217 = vmatmul.mubr.msk.f32.vlgmr.msra.gmra.mrb[24].mxu0 %vm1031_vm2, %v5424_v26  ;;  %4225 = vmatmul.mubr.msk.f32.vlgmr.msra.gmra.mrb[24].mxu1 %vm1031_vm2, %v5424_v26  ;;  %v956_v26 = vld [vmem:[%s6815_s4 + $0x28] sm:$0xff] }
 0x44f   :  { %4588 = vmatpush1.bf16.msra.mxu0 %v4587_v10  ;;  %4596 = vmatpush1.bf16.msra.mxu1 %v4595_v11  ;;  %v4601_v21 = vpack.c.bf16 %v964_v18, %v956_v26  ;;  %v987_v10 = vld [vmem:[%s6815_s4 + $0x120] sm:$0xff]  ;;  %v989_v11 = vld [vmem:[%s6815_s4 + $0x130] sm:$0xff] }
 0x450   :  { %1352 = vmatprep.mubr.f32.mxu0 %v4968_v38  ;;  %1465 = vmatprep.mubr.f32.mxu1 %v4968_v38 }
 0x451   :  { %4590 = vmatprep.subr.bf16.mxu0 %v4589_v49  ;;  %4598 = vmatprep.subr.bf16.mxu1 %v4597_v15 }
 0x452   :  { %4218 = vmatmul.mubr.msk.f32.gmra.mrb[26].mxu0 %vm1031_vm2, %v5419_v22  ;;  %4226 = vmatmul.mubr.msk.f32.gmra.mrb[26].mxu1 %vm1031_vm2, %v5419_v22  ;;  %v983_v22 = vld [vmem:[%s6815_s4 + $0x100] sm:$0xff] }
 0x453   :  { %1358 = vmatprep.mubr.f32.mxu0 %v4968_v38  ;;  %1471 = vmatprep.mubr.f32.mxu1 %v4968_v38 }
 0x454   :  { %4592 = vmatpush1.bf16.msra.mxu0 %v4591_v32  ;;  %4600 = vmatpush1.bf16.msra.mxu1 %v4599_v35 }
 0x455   :  { %1540 = vmatprep.subr.mxu0 %v984_v40  ;;  %1653 = vmatprep.subr.mxu1 %v986_v24 }
 0x456   :  { %4219 = vmatmul.mubr.msk.f32.gmra.mrb[28].mxu0 %vm1031_vm2, %v5443_v47  ;;  %4227 = vmatmul.mubr.msk.f32.gmra.mrb[28].mxu1 %vm1031_vm2, %v5443_v47  ;;  %v963_v47 = vld [vmem:[%s6815_s4 + $0x60] sm:$0xff] }
 0x457   :  { %1364 = vmatprep.mubr.f32.mxu0 %v4968_v38  ;;  %1477 = vmatprep.mubr.f32.mxu1 %v4968_v38 }
 0x458   :  { %1541 = vmatpush1.msra.mxu0 %v983_v22  ;;  %1654 = vmatpush1.msra.mxu1 %v985_v50 }
 0x459   :  { %4602 = vmatprep.subr.bf16.mxu0 %v4601_v21  ;;  %4610 = vmatprep.subr.bf16.mxu1 %v4609_v53 }
 0x45a   :  { %4220 = vmatmul.mubr.msk.f32.gmra.mrb[30].mxu0 %vm1031_vm2, %v5439_v43  ;;  %4228 = vmatmul.mubr.msk.f32.gmra.mrb[30].mxu1 %vm1031_vm2, %v5439_v43  ;;  %v955_v43 = vld [vmem:[%s6815_s4 + $0x20] sm:$0xff] }
 0x45b   :  { %1370 = vmatprep.mubr.f32.mxu0 %v4968_v38  ;;  %1483 = vmatprep.mubr.f32.mxu1 %v4968_v38  ;;  %v4603_v60 = vpack.c.bf16 %v963_v47, %v955_v43 }
 0x45e   :  { %4221 = vmatmul.mubr.msk.f32.gmra.mrb[32].mxu0 %vm1031_vm2, %v5471_v30  ;;  %4229 = vmatmul.mubr.msk.f32.gmra.mrb[32].mxu1 %vm1031_vm2, %v5471_v30  ;;  %v980_v30 = vld [vmem:[%s6815_s4 + $0xe8] sm:$0xff] }
 0x45f   :  { %1376 = vmatprep.mubr.f32.mxu0 %v4968_v38  ;;  %1489 = vmatprep.mubr.f32.mxu1 %v4968_v38 }
 0x462   :  { %4222 = vmatmul.mubr.msk.f32.gmra.mrb[34].mxu0 %vm1031_vm2, %v5469_v29  ;;  %4230 = vmatmul.mubr.msk.f32.gmra.mrb[34].mxu1 %vm1031_vm2, %v5469_v29  ;;  %v972_v29 = vld [vmem:[%s6815_s4 + $0xa8] sm:$0xff] }
 0x463   :  { %1382 = vmatprep.mubr.f32.mxu0 %v4968_v38  ;;  %1495 = vmatprep.mubr.f32.mxu1 %v4968_v38  ;;  %v4605_v5 = vpack.c.bf16 %v980_v30, %v972_v29 }
 0x466   :  { %4223 = vmatmul.mubr.msk.f32.gmra.mrb[36].mxu0 %vm1031_vm2, %v5487_v63  ;;  %4231 = vmatmul.mubr.msk.f32.gmra.mrb[36].mxu1 %vm1031_vm2, %v5487_v63  ;;  %v979_v63 = vld [vmem:[%s6815_s4 + $0xe0] sm:$0xff] }
 0x467   :  { %1388 = vmatprep.mubr.f32.mxu0 %v4968_v38  ;;  %1501 = vmatprep.mubr.f32.mxu1 %v4968_v38 }
 0x46a   :  { %4224 = vmatmul.mubr.msk.f32.gmra.mrb[38].mxu0 %vm1031_vm2, %v5485_v62  ;;  %4232 = vmatmul.mubr.msk.f32.gmra.mrb[38].mxu1 %vm1031_vm2, %v5485_v62  ;;  %v971_v62 = vld [vmem:[%s6815_s4 + $0xa0] sm:$0xff] }
 0x46b   :  { %1596 = vmatprep.mubr.f32.mxu0 %v4968_v38  ;;  %1709 = vmatprep.mubr.f32.mxu1 %v4968_v38  ;;  %v4607_v7 = vpack.c.bf16 %v979_v63, %v971_v62 }
 0x46e   :  { %4233 = vmatmul.mubr.msk.f32.vlgmr.msra.gmra.mrb[8].mxu0 %vm1031_vm2, %v5260_v33  ;;  %4241 = vmatmul.mubr.msk.f32.vlgmr.msra.gmra.mrb[8].mxu1 %vm1031_vm2, %v5260_v33 }
 0x46f   :  { %4604 = vmatpush1.bf16.msra.mxu0 %v4603_v60  ;;  %4612 = vmatpush1.bf16.msra.mxu1 %v4611_v61 }
 0x470   :  { %1602 = vmatprep.mubr.f32.mxu0 %v4968_v38  ;;  %1715 = vmatprep.mubr.f32.mxu1 %v4968_v38 }
 0x471   :  { %4606 = vmatprep.subr.bf16.mxu0 %v4605_v5  ;;  %4614 = vmatprep.subr.bf16.mxu1 %v4613_v39 }
 0x472   :  { %4234 = vmatmul.mubr.msk.f32.gmra.mrb[10].mxu0 %vm1031_vm2, %v5265_v34  ;;  %4242 = vmatmul.mubr.msk.f32.gmra.mrb[10].mxu1 %vm1031_vm2, %v5265_v34 }
 0x473   :  { %4608 = vmatpush1.bf16.msra.mxu0 %v4607_v7  ;;  %4616 = vmatpush1.bf16.msra.mxu1 %v4615_v9 }
 0x474   :  { %1608 = vmatprep.mubr.f32.mxu0 %v4968_v38  ;;  %1721 = vmatprep.mubr.f32.mxu1 %v4968_v38 }
 0x475   :  { %1766 = vmatprep.subr.mxu0 %v988_v8  ;;  %1879 = vmatprep.subr.mxu1 %v990_v48 }
 0x476   :  { %4235 = vmatmul.mubr.msk.f32.gmra.mrb[12].mxu0 %vm1031_vm2, %v5272_v36  ;;  %4243 = vmatmul.mubr.msk.f32.gmra.mrb[12].mxu1 %vm1031_vm2, %v5272_v36 }
 0x477   :  { %1767 = vmatpush1.msra.mxu0 %v987_v10  ;;  %1880 = vmatpush1.msra.mxu1 %v989_v11 }
 0x478   :  { %4619 = vmatprep.subr.msk.bf16.mxu0 %vm5137_vm1, %v5149_v57  ;;  %4625 = vmatprep.subr.msk.bf16.mxu1 %vm5137_vm1, %v5170_v6 }
 0x479   :  { %1614 = vmatprep.mubr.f32.mxu0 %v4968_v38  ;;  %1727 = vmatprep.mubr.f32.mxu1 %v4968_v38 }
 0x47a   :  { %4236 = vmatmul.mubr.msk.f32.gmra.mrb[14].mxu0 %vm1031_vm2, %v5277_v37  ;;  %4244 = vmatmul.mubr.msk.f32.gmra.mrb[14].mxu1 %vm1031_vm2, %v5277_v37 }
 0x47b   :  { %1620 = vmatprep.mubr.f32.mxu0 %v4968_v38  ;;  %1733 = vmatprep.mubr.f32.mxu1 %v4968_v38 }
 0x47e   :  { %4237 = vmatmul.mubr.msk.f32.gmra.mrb[16].mxu0 %vm1031_vm2, %v5284_v41  ;;  %4245 = vmatmul.mubr.msk.f32.gmra.mrb[16].mxu1 %vm1031_vm2, %v5284_v41 }
 0x47f   :  { %1626 = vmatprep.mubr.f32.mxu0 %v4968_v38  ;;  %1739 = vmatprep.mubr.f32.mxu1 %v4968_v38 }
 0x482   :  { %4238 = vmatmul.mubr.msk.f32.gmra.mrb[18].mxu0 %vm1031_vm2, %v5289_v42  ;;  %4246 = vmatmul.mubr.msk.f32.gmra.mrb[18].mxu1 %vm1031_vm2, %v5289_v42 }
 0x483   :  { %1632 = vmatprep.mubr.f32.mxu0 %v4968_v38  ;;  %1745 = vmatprep.mubr.f32.mxu1 %v4968_v38 }
 0x486   :  { %4239 = vmatmul.mubr.msk.f32.gmra.mrb[20].mxu0 %vm1031_vm2, %v5296_v44  ;;  %4247 = vmatmul.mubr.msk.f32.gmra.mrb[20].mxu1 %vm1031_vm2, %v5296_v44 }
 0x487   :  { %1638 = vmatprep.mubr.f32.mxu0 %v4968_v38  ;;  %1751 = vmatprep.mubr.f32.mxu1 %v4968_v38 }
 0x48a   :  { %4240 = vmatmul.mubr.msk.f32.gmra.mrb[22].mxu0 %vm1031_vm2, %v5301_v45  ;;  %4248 = vmatmul.mubr.msk.f32.gmra.mrb[22].mxu1 %vm1031_vm2, %v5301_v45 }
 0x48b   :  { %1822 = vmatprep.mubr.f32.mxu0 %v4968_v38  ;;  %1935 = vmatprep.mubr.f32.mxu1 %v4968_v38 }
 0x48e   :  { %4249 = vmatmul.mubr.msk.f32.vlgmr.msra.gmra.mrb[24].mxu0 %vm1031_vm2, %v5260_v33  ;;  %4257 = vmatmul.mubr.msk.f32.vlgmr.msra.gmra.mrb[24].mxu1 %vm1031_vm2, %v5260_v33  ;;  %v5849_v33 = vld [vmem:[%s6816_s2 + $0x30] sm:$0xff] }
 0x48f   :  { %4622 = vmatpush3.bf16.xpose.msk.msra.mxu0 %vm5137_vm1, %v5149_v57  ;;  %4628 = vmatpush3.bf16.xpose.msk.msra.mxu1 %vm5137_vm1, %v5170_v6 }
 0x490   :  { %4631 = vmatprep.subr.msk.bf16.mxu0 %vm5137_vm1, %v5191_v16  ;;  %4637 = vmatprep.subr.msk.bf16.mxu1 %vm5137_vm1, %v5207_v19 }
 0x491   :  { %1828 = vmatprep.mubr.f32.mxu0 %v4968_v38  ;;  %1941 = vmatprep.mubr.f32.mxu1 %v4968_v38 }
 0x492   :  { %4250 = vmatmul.mubr.msk.f32.gmra.mrb[26].mxu0 %vm1031_vm2, %v5265_v34  ;;  %4258 = vmatmul.mubr.msk.f32.gmra.mrb[26].mxu1 %vm1031_vm2, %v5265_v34 }
 0x493   :  { %1834 = vmatprep.mubr.f32.mxu0 %v4968_v38  ;;  %1947 = vmatprep.mubr.f32.mxu1 %v4968_v38 }
 0x496   :  { %4251 = vmatmul.mubr.msk.f32.gmra.mrb[28].mxu0 %vm1031_vm2, %v5272_v36  ;;  %4259 = vmatmul.mubr.msk.f32.gmra.mrb[28].mxu1 %vm1031_vm2, %v5272_v36  ;;  %v5854_v36 = vld [vmem:[%s6816_s2 + $0x28] sm:$0xff] }
 0x497   :  { %1840 = vmatprep.mubr.f32.mxu0 %v4968_v38  ;;  %1953 = vmatprep.mubr.f32.mxu1 %v4968_v38 }
 0x49a   :  { %4252 = vmatmul.mubr.msk.f32.gmra.mrb[30].mxu0 %vm1031_vm2, %v5277_v37  ;;  %4260 = vmatmul.mubr.msk.f32.gmra.mrb[30].mxu1 %vm1031_vm2, %v5277_v37  ;;  %v5859_v37 = vld [vmem:[%s6816_s2 + $0x38] sm:$0xff] }
 0x49b   :  { %1846 = vmatprep.mubr.f32.mxu0 %v4968_v38  ;;  %1959 = vmatprep.mubr.f32.mxu1 %v4968_v38 }
 0x49e   :  { %4253 = vmatmul.mubr.msk.f32.gmra.mrb[32].mxu0 %vm1031_vm2, %v5284_v41  ;;  %4261 = vmatmul.mubr.msk.f32.gmra.mrb[32].mxu1 %vm1031_vm2, %v5284_v41 }
 0x49f   :  { %1852 = vmatprep.mubr.f32.mxu0 %v4968_v38  ;;  %1965 = vmatprep.mubr.f32.mxu1 %v4968_v38 }
 0x4a2   :  { %4254 = vmatmul.mubr.msk.f32.gmra.mrb[34].mxu0 %vm1031_vm2, %v5289_v42  ;;  %4262 = vmatmul.mubr.msk.f32.gmra.mrb[34].mxu1 %vm1031_vm2, %v5289_v42 }
 0x4a3   :  { %1858 = vmatprep.mubr.f32.mxu0 %v4968_v38  ;;  %1971 = vmatprep.mubr.f32.mxu1 %v4968_v38 }
 0x4a6   :  { %4255 = vmatmul.mubr.msk.f32.gmra.mrb[36].mxu0 %vm1031_vm2, %v5296_v44  ;;  %4263 = vmatmul.mubr.msk.f32.gmra.mrb[36].mxu1 %vm1031_vm2, %v5296_v44 }
 0x4a7   :  { %1864 = vmatprep.mubr.f32.mxu0 %v4968_v38  ;;  %1977 = vmatprep.mubr.f32.mxu1 %v4968_v38 }
 0x4aa   :  { %4256 = vmatmul.mubr.msk.f32.gmra.mrb[38].mxu0 %vm1031_vm2, %v5301_v45  ;;  %4264 = vmatmul.mubr.msk.f32.gmra.mrb[38].mxu1 %vm1031_vm2, %v5301_v45 }
 0x4ab   :  { %4461 = vmatprep.mubr.msk.f32.mxu0 %vm85_vm0, %v5121_v20  ;;  %4468 = vmatprep.mubr.msk.f32.mxu1 %vm85_vm0, %v5143_v54  ;;  %v5820_v20 = vld [vmem:[%s6816_s2] sm:$0xff]  ;;  %v5835_v54 = vld [vmem:[%s6816_s2 + $0x18] sm:$0xff] }
 0x4ae   :  { %4462 = vmatmul.mubr.msk.f32.vlgmr.msra.gmra.mrb[40].mxu0 %vm85_vm0, %v5132_v51  ;;  %4469 = vmatmul.mubr.msk.f32.vlgmr.msra.gmra.mrb[40].mxu1 %vm85_vm0, %v5159_v1  ;;  %v5825_v51 = vld [vmem:[%s6816_s2 + $0x10] sm:$0xff] }
 0x4af   :  { %4634 = vmatpush3.bf16.xpose.msk.msra.mxu0 %vm5137_vm1, %v5191_v16  ;;  %4640 = vmatpush3.bf16.xpose.msk.msra.mxu1 %vm5137_vm1, %v5207_v19  ;;  %v5844_v19 = vld [vmem:[%s6816_s2 + $0x20] sm:$0xff] }
 0x4b0   :  { %4475 = vmatprep.mubr.msk.f32.mxu0 %vm85_vm0, %v5165_v3  ;;  %4482 = vmatprep.mubr.msk.f32.mxu1 %vm85_vm0, %v5186_v13 }
 0x4b6   :  { %4476 = vmatmul.mubr.msk.f32.vlgmr.msra.gmra.mrb[42].mxu0 %vm85_vm0, %v5181_v12  ;;  %4483 = vmatmul.mubr.msk.f32.vlgmr.msra.gmra.mrb[42].mxu1 %vm85_vm0, %v5200_v23 }
 0x541   :  { %v1598_v57 = vpop.f32.mrb[8].mxu0  ;;  %v1711_v1 = vpop.f32.mrb[8].mxu1 }
 0x542   :  { %v1984_v3 = vmul.f32 %v1598_v57, %v5820_v20  ;;  %v1986_v6 = vmul.f32 %v1711_v1, %v5825_v51  ;;  %v1600_v12 = vpop.f32.mrb[9].mxu0  ;;  %v1713_v13 = vpop.f32.mrb[9].mxu1 }
 0x543   :  { %v1985_v16 = vmul.f32 %v1600_v12, %v5830_v52  ;;  %v1987_v23 = vmul.f32 %v1713_v13, %v5835_v54 }
 0x544   :  { %v2016_v34 = vadd.f32 %v1986_v6, %v1984_v3 }
 0x545   :  { %v2017_v41 = vadd.f32 %v1987_v23, %v1985_v16  ;;  %v1604_v42 = vpop.f32.mrb[10].mxu0  ;;  %v1717_v44 = vpop.f32.mrb[10].mxu1 }
 0x546   :  { %v1988_v45 = vmul.f32 %v1604_v42, %v5844_v19  ;;  %v1990_v14 = vmul.f32 %v1717_v44, %v5849_v33  ;;  %v1606_v49 = vpop.f32.mrb[11].mxu0  ;;  %v1719_v15 = vpop.f32.mrb[11].mxu1 }
 0x547   :  { %v1989_v17 = vmul.f32 %v1606_v49, %v5854_v36  ;;  %v1991_v25 = vmul.f32 %v1719_v15, %v5859_v37  ;;  %v5865_v31 = vadd.f32 %v2017_v41, %v2016_v34 }
 0x548   :  { %v2018_v32 = vadd.f32 %v1990_v14, %v1988_v45 }
 0x549   :  { %v2019_v35 = vadd.f32 %v1991_v25, %v1989_v17  ;;  %v1723_v40 = vpop.f32.mrb[12].mxu1  ;;  %2048 = vrot.lane.b32.xlu0 %v5865_v31, %s4970_s29  ;;  %v1610_v24 = vpop.f32.mrb[12].mxu0 }
 0x54a   :  { %v1994_v26 = vmul.f32 %v1723_v40, %v5825_v51  ;;  %v1992_v18 = vmul.f32 %v1610_v24, %v5820_v20  ;;  %v1612_v46 = vpop.f32.mrb[13].mxu0  ;;  %v1725_v28 = vpop.f32.mrb[13].mxu1 }
 0x54b   :  { %v1993_v22 = vmul.f32 %v1612_v46, %v5830_v52  ;;  %v1995_v50 = vmul.f32 %v1725_v28, %v5835_v54  ;;  %v5873_v21 = vadd.f32 %v2019_v35, %v2018_v32 }
 0x54c   :  { %v2020_v53 = vadd.f32 %v1994_v26, %v1992_v18 }
 0x54d   :  { %v2021_v43 = vadd.f32 %v1995_v50, %v1993_v22  ;;  %v1729_v47 = vpop.f32.mrb[14].mxu1  ;;  %2050 = vrot.lane.b32.xlu1 %v5873_v21, %s4970_s29  ;;  %v1616_v55 = vpop.f32.mrb[14].mxu0 }
 0x54e   :  { %v1998_v56 = vmul.f32 %v1729_v47, %v5849_v33  ;;  %v1996_v29 = vmul.f32 %v1616_v55, %v5844_v19  ;;  %v1618_v30 = vpop.f32.mrb[15].mxu0  ;;  %v1731_v27 = vpop.f32.mrb[15].mxu1 }
 0x54f   :  { %v1997_v59 = vmul.f32 %v1618_v30, %v5854_v36  ;;  %v1999_v60 = vmul.f32 %v1731_v27, %v5859_v37  ;;  %v5881_v61 = vadd.f32 %v2021_v43, %v2020_v53 }
 0x550   :  { %v2022_v62 = vadd.f32 %v1998_v56, %v1996_v29 }
 0x551   :  { %v2023_v63 = vadd.f32 %v1999_v60, %v1997_v59  ;;  %v1735_v2 = vpop.f32.mrb[16].mxu1  ;;  %2052 = vrot.lane.b32.xlu1 %v5881_v61, %s4970_s29  ;;  %v1622_v4 = vpop.f32.mrb[16].mxu0 }
 0x552   :  { %v2002_v5 = vmul.f32 %v1735_v2, %v5825_v51  ;;  %v2000_v39 = vmul.f32 %v1622_v4, %v5820_v20  ;;  %v1624_v7 = vpop.f32.mrb[17].mxu0  ;;  %v1737_v9 = vpop.f32.mrb[17].mxu1 }
 0x553   :  { %v2001_v8 = vmul.f32 %v1624_v7, %v5830_v52  ;;  %v2003_v48 = vmul.f32 %v1737_v9, %v5835_v54  ;;  %v5889_v10 = vadd.f32 %v2023_v63, %v2022_v62 }
 0x554   :  { %v2024_v11 = vadd.f32 %v2002_v5, %v2000_v39 }
 0x555   :  { %v2025_v57 = vadd.f32 %v2003_v48, %v2001_v8  ;;  %v1741_v1 = vpop.f32.mrb[18].mxu1  ;;  %2054 = vrot.lane.b32.xlu1 %v5889_v10, %s4970_s29  ;;  %v1628_v3 = vpop.f32.mrb[18].mxu0 }
 0x556   :  { %v2006_v6 = vmul.f32 %v1741_v1, %v5849_v33  ;;  %v2004_v12 = vmul.f32 %v1628_v3, %v5844_v19  ;;  %v1630_v13 = vpop.f32.mrb[19].mxu0  ;;  %v1743_v16 = vpop.f32.mrb[19].mxu1 }
 0x557   :  { %v2005_v23 = vmul.f32 %v1630_v13, %v5854_v36  ;;  %v2007_v34 = vmul.f32 %v1743_v16, %v5859_v37  ;;  %v5897_v41 = vadd.f32 %v2025_v57, %v2024_v11 }
 0x558   :  { %v2026_v42 = vadd.f32 %v2006_v6, %v2004_v12 }
 0x559   :  { %v2027_v44 = vadd.f32 %v2007_v34, %v2005_v23  ;;  %v1747_v45 = vpop.f32.mrb[20].mxu1  ;;  %2056 = vrot.lane.b32.xlu0 %v5897_v41, %s4970_s29  ;;  %v1634_v14 = vpop.f32.mrb[20].mxu0 }
 0x55a   :  { %v2010_v49 = vmul.f32 %v1747_v45, %v5825_v51  ;;  %v2008_v15 = vmul.f32 %v1634_v14, %v5820_v20  ;;  %v1636_v17 = vpop.f32.mrb[21].mxu0  ;;  %v1749_v25 = vpop.f32.mrb[21].mxu1 }
 0x55b   :  { %v2009_v32 = vmul.f32 %v1636_v17, %v5830_v52  ;;  %v2011_v35 = vmul.f32 %v1749_v25, %v5835_v54  ;;  %v5905_v40 = vadd.f32 %v2027_v44, %v2026_v42 }
 0x55c   :  { %v2028_v24 = vadd.f32 %v2010_v49, %v2008_v15 }
 0x55d   :  { %v2029_v26 = vadd.f32 %v2011_v35, %v2009_v32  ;;  %v1753_v18 = vpop.f32.mrb[22].mxu1  ;;  %2058 = vrot.lane.b32.xlu1 %v5905_v40, %s4970_s29  ;;  %v1640_v46 = vpop.f32.mrb[22].mxu0 }
 0x55e   :  { %v2014_v28 = vmul.f32 %v1753_v18, %v5849_v33  ;;  %v2012_v22 = vmul.f32 %v1640_v46, %v5844_v19  ;;  %v1642_v50 = vpop.f32.mrb[23].mxu0  ;;  %v1755_v53 = vpop.f32.mrb[23].mxu1 }
 0x55f   :  { %v2013_v43 = vmul.f32 %v1642_v50, %v5854_v36  ;;  %v2015_v47 = vmul.f32 %v1755_v53, %v5859_v37  ;;  %v5913_v55 = vadd.f32 %v2029_v26, %v2028_v24 }
 0x560   :  { %v2030_v56 = vadd.f32 %v2014_v28, %v2012_v22 }
 0x561   :  { %v2031_v29 = vadd.f32 %v2015_v47, %v2013_v43  ;;  %v1937_v30 = vpop.f32.mrb[24].mxu1  ;;  %2060 = vrot.lane.b32.xlu0 %v5913_v55, %s4970_s29  ;;  %v1824_v27 = vpop.f32.mrb[24].mxu0 }
 0x562   :  { %v2178_v59 = vmul.f32 %v1937_v30, %v5825_v51  ;;  %v2176_v60 = vmul.f32 %v1824_v27, %v5820_v20  ;;  %v1826_v62 = vpop.f32.mrb[25].mxu0  ;;  %v1939_v63 = vpop.f32.mrb[25].mxu1 }
 0x563   :  { %v2177_v2 = vmul.f32 %v1826_v62, %v5830_v52  ;;  %v2179_v4 = vmul.f32 %v1939_v63, %v5835_v54  ;;  %v5921_v5 = vadd.f32 %v2031_v29, %v2030_v56 }
 0x564   :  { %v2208_v39 = vadd.f32 %v2178_v59, %v2176_v60 }
 0x565   :  { %v2209_v7 = vadd.f32 %v2179_v4, %v2177_v2  ;;  %v1943_v9 = vpop.f32.mrb[26].mxu1  ;;  %2062 = vrot.lane.b32.xlu1 %v5921_v5, %s4970_s29  ;;  %v1830_v8 = vpop.f32.mrb[26].mxu0 }
 0x566   :  { %v2182_v48 = vmul.f32 %v1943_v9, %v5849_v33  ;;  %v2180_v11 = vmul.f32 %v1830_v8, %v5844_v19  ;;  %v1832_v57 = vpop.f32.mrb[27].mxu0  ;;  %v1945_v1 = vpop.f32.mrb[27].mxu1 }
 0x567   :  { %v2181_v3 = vmul.f32 %v1832_v57, %v5854_v36  ;;  %v2183_v6 = vmul.f32 %v1945_v1, %v5859_v37  ;;  %v5929_v12 = vadd.f32 %v2209_v7, %v2208_v39 }
 0x568   :  { %v2210_v13 = vadd.f32 %v2182_v48, %v2180_v11 }
 0x569   :  { %v2211_v16 = vadd.f32 %v2183_v6, %v2181_v3  ;;  %v1836_v23 = vpop.f32.mrb[28].mxu0  ;;  %v1949_v34 = vpop.f32.mrb[28].mxu1 }
 0x56a   :  { %v2184_v42 = vmul.f32 %v1836_v23, %v5820_v20  ;;  %v2186_v44 = vmul.f32 %v1949_v34, %v5825_v51  ;;  %v1838_v45 = vpop.f32.mrb[29].mxu0  ;;  %v1951_v14 = vpop.f32.mrb[29].mxu1 }
 0x56b   :  { %v2185_v49 = vmul.f32 %v1838_v45, %v5830_v52  ;;  %v2187_v15 = vmul.f32 %v1951_v14, %v5835_v54  ;;  %v5935_v17 = vadd.f32 %v2211_v16, %v2210_v13 }
 0x56c   :  { %v2212_v25 = vadd.f32 %v2186_v44, %v2184_v42 }
 0x56d   :  { %v2213_v32 = vadd.f32 %v2187_v15, %v2185_v49  ;;  %v1842_v35 = vpop.f32.mrb[30].mxu0  ;;  %v1955_v24 = vpop.f32.mrb[30].mxu1 }
 0x56e   :  { %v2188_v26 = vmul.f32 %v1842_v35, %v5844_v19  ;;  %v2190_v18 = vmul.f32 %v1955_v24, %v5849_v33  ;;  %v1844_v46 = vpop.f32.mrb[31].mxu0  ;;  %v1957_v28 = vpop.f32.mrb[31].mxu1 }
 0x56f   :  { %v2189_v22 = vmul.f32 %v1844_v46, %v5854_v36  ;;  %v2191_v50 = vmul.f32 %v1957_v28, %v5859_v37  ;;  %v5941_v53 = vadd.f32 %v2213_v32, %v2212_v25 }
 0x570   :  { %v2214_v43 = vadd.f32 %v2190_v18, %v2188_v26 }
 0x571   :  { %v2215_v47 = vadd.f32 %v2191_v50, %v2189_v22  ;;  %v1848_v56 = vpop.f32.mrb[32].mxu0  ;;  %v1961_v29 = vpop.f32.mrb[32].mxu1 }
 0x572   :  { %v2192_v30 = vmul.f32 %v1848_v56, %v5820_v20  ;;  %v2194_v27 = vmul.f32 %v1961_v29, %v5825_v51  ;;  %v1850_v59 = vpop.f32.mrb[33].mxu0  ;;  %v1963_v60 = vpop.f32.mrb[33].mxu1 }
 0x573   :  { %v2193_v62 = vmul.f32 %v1850_v59, %v5830_v52  ;;  %v2195_v63 = vmul.f32 %v1963_v60, %v5835_v54  ;;  %v5947_v2 = vadd.f32 %v2215_v47, %v2214_v43 }
 0x574   :  { %v2216_v4 = vadd.f32 %v2194_v27, %v2192_v30 }
 0x575   :  { %v2217_v39 = vadd.f32 %v2195_v63, %v2193_v62  ;;  %v1854_v7 = vpop.f32.mrb[34].mxu0  ;;  %v1967_v9 = vpop.f32.mrb[34].mxu1 }
 0x576   :  { %v2196_v8 = vmul.f32 %v1854_v7, %v5844_v19  ;;  %v2198_v48 = vmul.f32 %v1967_v9, %v5849_v33  ;;  %v1856_v11 = vpop.f32.mrb[35].mxu0  ;;  %v1969_v57 = vpop.f32.mrb[35].mxu1 }
 0x577   :  { %v2197_v1 = vmul.f32 %v1856_v11, %v5854_v36  ;;  %v2199_v3 = vmul.f32 %v1969_v57, %v5859_v37  ;;  %v5953_v6 = vadd.f32 %v2217_v39, %v2216_v4  ;;  %v5998_v9 = vpop.permute.xlu0 %2380 }
 0x578   :  { %v2218_v13 = vadd.f32 %v2198_v48, %v2196_v8  ;;  %v6000_v8 = vpop.permute.xlu1 %2382 }
 0x579   :  { %v2219_v16 = vadd.f32 %v2199_v3, %v2197_v1  ;;  %v1860_v23 = vpop.f32.mrb[36].mxu0  ;;  %v1973_v34 = vpop.f32.mrb[36].mxu1 }
 0x57a   :  { %v2200_v42 = vmul.f32 %v1860_v23, %v5820_v20  ;;  %v2202_v44 = vmul.f32 %v1973_v34, %v5825_v51  ;;  %v1862_v45 = vpop.f32.mrb[37].mxu0  ;;  %v1975_v14 = vpop.f32.mrb[37].mxu1 }
 0x57b   :  { %v2201_v49 = vmul.f32 %v1862_v45, %v5830_v52  ;;  %v2203_v15 = vmul.f32 %v1975_v14, %v5835_v54  ;;  %v5959_v25 = vadd.f32 %v2219_v16, %v2218_v13  ;;  %v6002_v48 = vpop.permute.xlu0 %2384 }
 0x57c   :  { %v2220_v32 = vadd.f32 %v2202_v44, %v2200_v42  ;;  %v6004_v11 = vpop.permute.xlu1 %2386 }
 0x57d   :  { %v2221_v35 = vadd.f32 %v2203_v15, %v2201_v49  ;;  %v1866_v24 = vpop.f32.mrb[38].mxu0  ;;  %v1979_v26 = vpop.f32.mrb[38].mxu1 }
 0x57e   :  { %v2204_v18 = vmul.f32 %v1866_v24, %v5844_v19  ;;  %v2206_v46 = vmul.f32 %v1979_v26, %v5849_v33  ;;  %v1868_v28 = vpop.f32.mrb[39].mxu0  ;;  %v1981_v20 = vpop.f32.mrb[39].mxu1 }
 0x57f   :  { %v2205_v51 = vmul.f32 %v1868_v28, %v5854_v36  ;;  %v2207_v22 = vmul.f32 %v1981_v20, %v5859_v37  ;;  %v5965_v50 = vadd.f32 %v2221_v35, %v2220_v32  ;;  %v6006_v57 = vpop.permute.xlu0 %2388 }
 0x580   :  { %v2222_v52 = vadd.f32 %v2206_v46, %v2204_v18  ;;  %v6008_v1 = vpop.permute.xlu1 %2390 }
 0x581   :  { %v2223_v54 = vadd.f32 %v2207_v22, %v2205_v51  ;;  %v5967_v43 = vpop.f32.mrb[40].mxu0  ;;  %v4470_v47 = vpop.f32.mrb[40].mxu1 }
 0x582   :  { %v5969_v56 = vpop.f32.mrb[41].mxu0  ;;  %v5971_v29 = vpop.f32.mrb[41].mxu1  ;;  %v2810_v19 = vsel %vm85_vm0, %v4470_v47, -inf  ;;  %v2804_v37 = vsel %vm85_vm0, %v5967_v43, -inf }
 0x583   :  { %2811 = vmax.xlane.f32.xlu0 %v2810_v19  ;;  %v5974_v33 = vadd.f32 %v2223_v54, %v2222_v52  ;;  %v2801_v36 = vsel %vm85_vm0, %v5969_v56, -inf  ;;  %v2807_v62 = vsel %vm85_vm0, %v5971_v29, -inf  ;;  %v6010_v3 = vpop.permute.xlu0 %2392 }
 0x584   :  { %v6012_v13 = vpop.permute.xlu1 %2394 }
 0x587   :  { %2802 = vmax.xlane.f32.xlu0 %v2801_v36 }
 0x589   :  { %v5980_v30 = vpop.f32.mrb[42].mxu0  ;;  %v5982_v27 = vpop.f32.mrb[42].mxu1  ;;  %2805 = vmax.xlane.f32.xlu1 %v2804_v37 }
 0x58a   :  { %v5984_v59 = vpop.f32.mrb[43].mxu1  ;;  %v5986_v60 = vpop.f32.mrb[43].mxu0  ;;  %v2816_v63 = vsel %vm85_vm0, %v5980_v30, -inf  ;;  %v2822_v4 = vsel %vm85_vm0, %v5982_v27, -inf }
 0x58b   :  { %2808 = vmax.xlane.f32.xlu0 %v2807_v62  ;;  %v2819_v39 = vsel %vm85_vm0, %v5984_v59, -inf  ;;  %v2813_v7 = vsel %vm85_vm0, %v5986_v60, -inf }
 0x58d   :  { %2817 = vmax.xlane.f32.xlu1 %v2816_v63 }
 0x58f   :  { %2823 = vmax.xlane.f32.xlu0 %v2822_v4 }
 0x591   :  { %2820 = vmax.xlane.f32.xlu1 %v2819_v39 }
 0x593   :  { %2814 = vmax.xlane.f32.xlu0 %v2813_v7 }
 0x5bb   :  { %v2049_v16 = vpop.permute.xlu0 %2048 }
 0x5bc   :  { %v6015_v23 = vadd.f32 %v2049_v16, %v5865_v31 }
 0x5be   :  { %2088 = vrot.lane.b32.xlu0 %v6015_v23, %s4971_s30 }
 0x5bf   :  { %v2051_v34 = vpop.permute.xlu1 %2050 }
 0x5c0   :  { %v6020_v42 = vadd.f32 %v2051_v34, %v5873_v21 }
 0x5c2   :  { %2090 = vrot.lane.b32.xlu1 %v6020_v42, %s4971_s30 }
 0x5c3   :  { %v2053_v44 = vpop.permute.xlu1 %2052 }
 0x5c4   :  { %v6025_v45 = vadd.f32 %v2053_v44, %v5881_v61 }
 0x5c6   :  { %2092 = vrot.lane.b32.xlu0 %v6025_v45, %s4971_s30 }
 0x5c7   :  { %v2055_v31 = vpop.permute.xlu1 %2054 }
 0x5c8   :  { %v6030_v14 = vadd.f32 %v2055_v31, %v5889_v10 }
 0x5ca   :  { %2094 = vrot.lane.b32.xlu1 %v6030_v14, %s4971_s30 }
 0x5cb   :  { %v2057_v49 = vpop.permute.xlu0 %2056 }
 0x5cc   :  { %v6035_v21 = vadd.f32 %v2057_v49, %v5897_v41  ;;  %v6085_v49 = vld [vmem:[%s6817_s8] ss:$0 sm:$0xff] }
 0x5ce   :  { %2096 = vrot.lane.b32.xlu1 %v6035_v21, %s4971_s30 }
 0x5cf   :  { %v2059_v15 = vpop.permute.xlu1 %2058 }
 0x5d0   :  { %v6040_v61 = vadd.f32 %v2059_v15, %v5905_v40 }
 0x5d2   :  { %2098 = vrot.lane.b32.xlu1 %v6040_v61, %s4971_s30 }
 0x5d3   :  { %v2061_v32 = vpop.permute.xlu0 %2060 }
 0x5d4   :  { %v6045_v10 = vadd.f32 %v2061_v32, %v5913_v55 }
 0x5d6   :  { %2100 = vrot.lane.b32.xlu0 %v6045_v10, %s4971_s30 }
 0x5d7   :  { %v2063_v35 = vpop.permute.xlu1 %2062 }
 0x5d8   :  { %v6050_v41 = vadd.f32 %v2063_v35, %v5921_v5 }
 0x5da   :  { %2102 = vrot.lane.b32.xlu1 %v6050_v41, %s4971_s30 }
 0x610   :  { %v2812_v24 = vpop.xlane.xlu0 %2811 }
 0x611   :  { %v2828_v40 = vsub.f32 %v4470_v47, %v2812_v24 }
 0x613   :  { %v2839_v26 = vmul.f32 1.442695, %v2828_v40 }
 0x614   :  { %v2803_v18 = vpop.xlane.xlu0 %2802 }
 0x615   :  { %4840 = vpow2.f32 %v2839_v26  ;;  %v2825_v46 = vsub.f32 %v5969_v56, %v2803_v18 }
 0x616   :  { %v2806_v28 = vpop.xlane.xlu1 %2805 }
 0x617   :  { %v2833_v55 = vmul.f32 1.442695, %v2825_v46  ;;  %v2826_v20 = vsub.f32 %v5967_v43, %v2806_v28 }
 0x618   :  { %v2809_v51 = vpop.xlane.xlu0 %2808 }
 0x619   :  { %4842 = vpow2.f32 %v2833_v55  ;;  %v2835_v22 = vmul.f32 1.442695, %v2826_v20  ;;  %v2827_v5 = vsub.f32 %v5971_v29, %v2809_v51 }
 0x61a   :  { %v2818_v52 = vpop.xlane.xlu1 %2817 }
 0x61b   :  { %4844 = vpow2.f32 %v2835_v22  ;;  %v2837_v54 = vmul.f32 1.442695, %v2827_v5  ;;  %v2830_v19 = vsub.f32 %v5980_v30, %v2818_v52 }
 0x61c   :  { %v2824_v47 = vpop.xlane.xlu0 %2823 }
 0x61d   :  { %4846 = vpow2.f32 %v2837_v54  ;;  %v2843_v36 = vmul.f32 1.442695, %v2830_v19  ;;  %v2832_v37 = vsub.f32 %v5982_v27, %v2824_v47 }
 0x61e   :  { %v2821_v31 = vpop.xlane.xlu1 %2820 }
 0x61f   :  { %v6059_v56 = vpop.eup %4840  ;;  %4848 = vpow2.f32 %v2843_v36  ;;  %v6101_v36 = vld [vmem:[%s6817_s8 + $0x1] ss:$0 sm:$0xff] }
 0x620   :  { %v2815_v62 = vpop.xlane.xlu0 %2814  ;;  %v2858_v43 = vsel %vm85_vm0, %v6059_v56, 0.0 }
 0x621   :  { %v2829_v63 = vsub.f32 %v5986_v60, %v2815_v62  ;;  %2859 = vadd.xlane.f32.xlu0 %v2858_v43 }
 0x623   :  { %v6064_v29 = vpop.eup %4842  ;;  %v2841_v4 = vmul.f32 1.442695, %v2829_v63 }
 0x624   :  { %v2849_v30 = vsel %vm85_vm0, %v6064_v29, 0.0 }
 0x625   :  { %v6068_v39 = vpop.eup %4844  ;;  %4850 = vpow2.f32 %v2841_v4  ;;  %2850 = vadd.xlane.f32.xlu0 %v2849_v30  ;;  %v2847_v4 = vmul.f32 1.442695, %v2832_v37  ;;  %v6118_v37 = vld [vmem:[%s6817_s8 + $0x2] ss:$0 sm:$0xff] }
 0x626   :  { %v2852_v27 = vsel %vm85_vm0, %v6068_v39, 0.0 }
 0x627   :  { %v6072_v7 = vpop.eup %4846  ;;  %2853 = vadd.xlane.f32.xlu1 %v2852_v27 }
 0x628   :  { %v2855_v60 = vsel %vm85_vm0, %v6072_v7, 0.0 }
 0x629   :  { %v6076_v16 = vpop.eup %4848  ;;  %2856 = vadd.xlane.f32.xlu0 %v2855_v60  ;;  %v6109_v60 = vld [vmem:[%s6817_s8 + $0x3] ss:$0 sm:$0xff] }
 0x62a   :  { %v2864_v34 = vsel %vm85_vm0, %v6076_v16, 0.0 }
 0x62b   :  { %2865 = vadd.xlane.f32.xlu1 %v2864_v34 }
 0x62f   :  { %v6080_v44 = vpop.eup %4850 }
 0x630   :  { %v2089_v15 = vpop.permute.xlu0 %2088  ;;  %v2861_v32 = vsel %vm85_vm0, %v6080_v44, 0.0 }
 0x631   :  { %v2112_v35 = vadd.f32 %v2089_v15, %v6015_v23  ;;  %2862 = vadd.xlane.f32.xlu0 %v2861_v32 }
 0x633   :  { %v2120_v24 = vadd.f32 %v6085_v49, %v2112_v35 }
 0x634   :  { %v2091_v40 = vpop.permute.xlu1 %2090 }
 0x635   :  { %v4265_v26 = vmul.f32 -1.442695, %v2120_v24  ;;  %v2113_v18 = vadd.f32 %v2091_v40, %v6020_v42 }
 0x637   :  { %4852 = vpow2.f32 %v4265_v26  ;;  %v2121_v46 = vadd.f32 %v6085_v49, %v2113_v18 }
 0x638   :  { %v2093_v54 = vpop.permute.xlu0 %2092 }
 0x639   :  { %v4266_v28 = vmul.f32 -1.442695, %v2121_v46  ;;  %v2114_v47 = vadd.f32 %v2093_v54, %v6025_v45 }
 0x63b   :  { %4854 = vpow2.f32 %v4266_v28  ;;  %v2122_v30 = vadd.f32 %v6101_v36, %v2114_v47 }
 0x63c   :  { %v2095_v19 = vpop.permute.xlu1 %2094 }
 0x63d   :  { %v2115_v43 = vadd.f32 %v2095_v19, %v6030_v14  ;;  %v4267_v34 = vmul.f32 -1.442695, %v2122_v30  ;;  %v2831_v14 = vsub.f32 %v5984_v59, %v2821_v31 }
 0x63f   :  { %v2123_v45 = vadd.f32 %v6101_v36, %v2115_v43  ;;  %v2845_v18 = vmul.f32 1.442695, %v2831_v14 }
 0x640   :  { %v2097_v63 = vpop.permute.xlu1 %2096 }
 0x641   :  { %v4853_v55 = vpop.eup %4852  ;;  %v2116_v15 = vadd.f32 %v2097_v63, %v6035_v21  ;;  %v4268_v35 = vmul.f32 -1.442695, %v2123_v45 }
 0x642   :  { %v2152_v20 = vadd.f32 1.0, %v4853_v55 }
 0x643   :  { %v2124_v24 = vadd.f32 %v6118_v37, %v2116_v15 }
 0x644   :  { %4856 = vrcp.f32 %v2152_v20 }
 0x645   :  { %v4855_v51 = vpop.eup %4854  ;;  %v4269_v21 = vmul.f32 -1.442695, %v2124_v24 }
 0x646   :  { %v2153_v22 = vadd.f32 1.0, %v4855_v51 }
 0x648   :  { %4858 = vrcp.f32 %v2153_v22  ;;  %v2101_v62 = vpop.permute.xlu0 %2100 }
 0x649   :  { %v2118_v27 = vadd.f32 %v2101_v62, %v6045_v10  ;;  %4860 = vpow2.f32 %v2847_v4  ;;  %v2099_v10 = vpop.permute.xlu1 %2098 }
 0x64a   :  { %4862 = vpow2.f32 %v4267_v34  ;;  %v2117_v40 = vadd.f32 %v2099_v10, %v6040_v61 }
 0x64b   :  { %v2126_v32 = vadd.f32 %v6109_v60, %v2118_v27  ;;  %4864 = vpow2.f32 %v4268_v35 }
 0x64c   :  { %v2125_v28 = vadd.f32 %v6118_v37, %v2117_v40 }
 0x64d   :  { %v4271_v26 = vmul.f32 -1.442695, %v2126_v32  ;;  %v2103_v46 = vpop.permute.xlu1 %2102 }
 0x64e   :  { %v4857_v5 = vpop.eup %4856  ;;  %v2119_v59 = vadd.f32 %v2103_v46, %v6050_v41  ;;  %v4270_v55 = vmul.f32 -1.442695, %v2125_v28 }
 0x64f   :  { %v2404_v23 = vmul.f32 %v4857_v5, %v5998_v9  ;;  %4866 = vpow2.f32 %v4271_v26 }
 0x650   :  { %4868 = vpow2.f32 %v2845_v18  ;;  %v2127_v20 = vadd.f32 %v6109_v60, %v2119_v59 }
 0x651   :  { %2420 = vrot.lane.b32.xlu0 %v2404_v23, %s4972_s12  ;;  %4870 = vpow2.f32 %v4269_v21 }
 0x652   :  { %v4859_v52 = vpop.eup %4858  ;;  %4872 = vpow2.f32 %v4270_v55  ;;  %v4272_v22 = vmul.f32 -1.442695, %v2127_v20 }
 0x653   :  { %v2405_v42 = vmul.f32 %v4859_v52, %v6000_v8  ;;  %v6124_v31 = vpop.eup %4860 }
 0x654   :  { %v2870_v61 = vsel %vm85_vm0, %v6124_v31, 0.0  ;;  %v4863_v51 = vpop.eup %4862  ;;  %4874 = vpow2.f32 %v4272_v22 }
 0x655   :  { %2422 = vrot.lane.b32.xlu1 %v2405_v42, %s4972_s12  ;;  %v4865_v5 = vpop.eup %4864  ;;  %v2154_v23 = vadd.f32 1.0, %v4863_v51 }
 0x656   :  { %v2155_v41 = vadd.f32 1.0, %v4865_v5 }
 0x657   :  { %4876 = vrcp.f32 %v2154_v23 }
 0x658   :  { %4878 = vrcp.f32 %v2155_v41  ;;  %v4952_v41 = vld [vmem:[%s6813_s0] sm:$0xff] }
 0x659   :  { %v4867_v52 = vpop.eup %4866 }
 0x65a   :  { %v6129_v42 = vpop.eup %4868  ;;  %v2158_v54 = vadd.f32 1.0, %v4867_v52 }
 0x65b   :  { %v4871_v19 = vpop.eup %4870  ;;  %v2867_v47 = vsel %vm85_vm0, %v6129_v42, 0.0 }
 0x65c   :  { %v2156_v62 = vadd.f32 1.0, %v4871_v19  ;;  %4880 = vrcp.f32 %v2158_v54  ;;  %v4873_v43 = vpop.eup %4872 }
 0x65d   :  { %v2157_v63 = vadd.f32 1.0, %v4873_v43 }
 0x65e   :  { %4882 = vrcp.f32 %v2156_v62  ;;  %v4875_v4 = vpop.eup %4874 }
 0x65f   :  { %4884 = vrcp.f32 %v2157_v63  ;;  %v2159_v27 = vadd.f32 1.0, %v4875_v4 }
 0x661   :  { %v4877_v30 = vpop.eup %4876  ;;  %4886 = vrcp.f32 %v2159_v27 }
 0x662   :  { %v4879_v45 = vpop.eup %4878  ;;  %v2406_v34 = vmul.f32 %v4877_v30, %v6002_v48 }
 0x663   :  { %v2407_v32 = vmul.f32 %v4879_v45, %v6004_v11 }
 0x666   :  { %v4881_v15 = vpop.eup %4880 }
 0x667   :  { %v2410_v14 = vmul.f32 %v4881_v15, %v6010_v3 }
 0x668   :  { %v4883_v10 = vpop.eup %4882 }
 0x669   :  { %v2408_v35 = vmul.f32 %v4883_v10, %v6006_v57  ;;  %v4885_v24 = vpop.eup %4884 }
 0x66a   :  { %v2409_v40 = vmul.f32 %v4885_v24, %v6008_v1 }
 0x66b   :  { %v4887_v26 = vpop.eup %4886 }
 0x66c   :  { %v2411_v18 = vmul.f32 %v4887_v26, %v6012_v13  ;;  %v3238_v26 = vld [vmem:[%s6818_s7 + $0x28] sm:$0xff] }
 0x670   :  { %2871 = vadd.xlane.f32.xlu0 %v2870_v61 }
 0x679   :  { %2868 = vadd.xlane.f32.xlu1 %v2867_v47 }
 0x686   :  { %2424 = vrot.lane.b32.xlu0 %v2406_v34, %s4972_s12  ;;  %v4954_v34 = vld [vmem:[%s6813_s0 + $0x10] sm:$0xff] }
 0x68a   :  { %2426 = vrot.lane.b32.xlu1 %v2407_v32, %s4972_s12  ;;  %2432 = vrot.lane.b32.xlu0 %v2410_v14, %s4972_s12 }
 0x68e   :  { %2428 = vrot.lane.b32.xlu1 %v2408_v35, %s4972_s12  ;;  %2240 = vrot.lane.b32.xlu0 %v5929_v12, %s4970_s29 }
 0x692   :  { %2430 = vrot.lane.b32.xlu1 %v2409_v40, %s4972_s12  ;;  %2244 = vrot.lane.b32.xlu0 %v5941_v53, %s4970_s29  ;;  %v3234_v40 = vld [vmem:[%s6818_s7 + $0x8] sm:$0xff] }
 0x696   :  { %2434 = vrot.lane.b32.xlu1 %v2411_v18, %s4972_s12  ;;  %2248 = vrot.lane.b32.xlu0 %v5953_v6, %s4970_s29 }
 0x69a   :  { %2242 = vrot.lane.b32.xlu1 %v5935_v17, %s4970_s29  ;;  %2252 = vrot.lane.b32.xlu0 %v5965_v50, %s4970_s29 }
 0x69e   :  { %2246 = vrot.lane.b32.xlu1 %v5947_v2, %s4970_s29 }
 0x6a2   :  { %2250 = vrot.lane.b32.xlu1 %v5959_v25, %s4970_s29 }
 0x6a6   :  { %2254 = vrot.lane.b32.xlu1 %v5974_v33, %s4970_s29 }
 0x6ae   :  { %v2860_v46 = vpop.xlane.xlu0 %2859 }
 0x6b2   :  { %v2851_v21 = vpop.xlane.xlu0 %2850 }
 0x6b3   :  { %4888 = vrcp.f32 %v2851_v21  ;;  %v4956_v21 = vld [vmem:[%s6813_s0 + $0x20] sm:$0xff] }
 0x6b4   :  { %v2854_v55 = vpop.xlane.xlu1 %2853 }
 0x6b6   :  { %v2857_v28 = vpop.xlane.xlu0 %2856 }
 0x6b7   :  { %4890 = vrcp.f32 %v2857_v28  ;;  %v4957_v28 = vld [vmem:[%s6813_s0 + $0x28] sm:$0xff] }
 0x6b8   :  { %4892 = vrcp.f32 %v2854_v55  ;;  %v2866_v5 = vpop.xlane.xlu1 %2865 }
 0x6bd   :  { %v4889_v59 = vpop.eup %4888 }
 0x6be   :  { %v2863_v20 = vpop.xlane.xlu0 %2862  ;;  %v2874_v61 = vmul.f32 %v4889_v59, %v6064_v29  ;;  %v4953_v29 = vld [vmem:[%s6813_s0 + $0x8] sm:$0xff] }
 0x6bf   :  { %4894 = vrcp.f32 %v2863_v20  ;;  %v4657_v20 = vpack.c.bf16 %v3238_v26, %v3234_v40 }
 0x6c0   :  { %4489 = vmatprep.mubr.msk.f32.mxu0 %vm85_vm0, %v2874_v61  ;;  %4896 = vrcp.f32 %v2860_v46  ;;  %v3236_v61 = vld [vmem:[%s6818_s7 + $0x18] sm:$0xff] }
 0x6c1   :  { %v4891_v51 = vpop.eup %4890 }
 0x6c2   :  { %v2878_v22 = vmul.f32 %v4891_v51, %v6072_v7  ;;  %v4893_v47 = vpop.eup %4892  ;;  %v3233_v51 = vld [vmem:[%s6818_s7] sm:$0xff] }
 0x6c3   :  { %v2421_v23 = vpop.permute.xlu0 %2420  ;;  %v2876_v43 = vmul.f32 %v4893_v47, %v6068_v39  ;;  %v4955_v39 = vld [vmem:[%s6813_s0 + $0x18] sm:$0xff] }
 0x6c4   :  { %4496 = vmatprep.mubr.msk.f32.mxu1 %vm85_vm0, %v2878_v22  ;;  %v6169_v54 = vsel %vm2444_vm3, %v4952_v41, %v2421_v23  ;;  %v3237_v22 = vld [vmem:[%s6818_s7 + $0x20] sm:$0xff]  ;;  %v3240_v23 = vld [vmem:[%s6818_s7 + $0x38] sm:$0xff]  ;;  %v3246_v41 = vld [vmem:[%s6818_s7 + $0x68] sm:$0xff] }
 0x6c7   :  { %v2423_v52 = vpop.permute.xlu1 %2422 }
 0x6c8   :  { %v6175_v19 = vsel %vm2444_vm3, %v4953_v29, %v2423_v52  ;;  %v3242_v52 = vld [vmem:[%s6818_s7 + $0x48] sm:$0xff] }
 0x6c9   :  { %v4641_v7 = vpack.c.bf16 %v6175_v19, %v6169_v54  ;;  %v4895_v62 = vpop.eup %4894 }
 0x6ca   :  { %v2882_v63 = vmul.f32 %v4895_v62, %v6080_v44  ;;  %v4897_v14 = vpop.eup %4896  ;;  %v4959_v62 = vld [vmem:[%s6813_s0 + $0x38] sm:$0xff] }
 0x6cb   :  { %4642 = vmatprep.subr.bf16.mxu0 %v4641_v7  ;;  %v2880_v35 = vmul.f32 %v4897_v14, %v6059_v56  ;;  %v3245_v14 = vld [vmem:[%s6818_s7 + $0x60] sm:$0xff] }
 0x6cc   :  { %4644 = vmatpush3.bf16.msra.mxu0 %v4641_v7  ;;  %v4958_v7 = vld [vmem:[%s6813_s0 + $0x30] sm:$0xff] }
 0x6cf   :  { %4490 = vmatmul.mubr.msk.f32.vlgmr.msra.gmra.mrb[44].mxu0 %vm85_vm0, %v2876_v43 }
 0x6d0   :  { %4503 = vmatprep.mubr.msk.f32.mxu0 %vm85_vm0, %v2882_v63  ;;  %v4659_v63 = vpack.c.bf16 %v3237_v22, %v3233_v51  ;;  %v3218_v51 = vld [vmem:[%s6819_s6 + $0x28] sm:$0xff]  ;;  %v3216_v22 = vld [vmem:[%s6819_s6 + $0x18] sm:$0xff] }
 0x6fd   :  { %v2872_v4 = vpop.xlane.xlu0 %2871 }
 0x701   :  { %v2425_v27 = vpop.permute.xlu0 %2424 }
 0x702   :  { %v6187_v15 = vsel %vm2444_vm3, %v4954_v34, %v2425_v27  ;;  %v3239_v34 = vld [vmem:[%s6818_s7 + $0x30] sm:$0xff] }
 0x705   :  { %v2433_v55 = vpop.permute.xlu0 %2432 }
 0x706   :  { %v2869_v30 = vpop.xlane.xlu1 %2868  ;;  %v6243_v47 = vsel %vm2444_vm3, %v4958_v7, %v2433_v55  ;;  %v3252_v55 = vld [vmem:[%s6818_s7 + $0x98] sm:$0xff]  ;;  %v3215_v7 = vld [vmem:[%s6819_s6 + $0x10] sm:$0xff] }
 0x707   :  { %4898 = vrcp.f32 %v2869_v30 }
 0x708   :  { %4900 = vrcp.f32 %v2866_v5 }
 0x709   :  { %4902 = vrcp.f32 %v2872_v4  ;;  %v3235_v4 = vld [vmem:[%s6818_s7 + $0x10] sm:$0xff] }
 0x70a   :  { %v2427_v45 = vpop.permute.xlu1 %2426 }
 0x70b   :  { %v6193_v44 = vsel %vm2444_vm3, %v4955_v39, %v2427_v45  ;;  %v4665_v45 = vpack.c.bf16 %v3240_v23, %v3236_v61  ;;  %v4661_v39 = vpack.c.bf16 %v3246_v41, %v3242_v52  ;;  %v3214_v61 = vld [vmem:[%s6819_s6 + $0x8] sm:$0xff]  ;;  %v3220_v23 = vld [vmem:[%s6819_s6 + $0x38] sm:$0xff]  ;;  %v3213_v41 = vld [vmem:[%s6819_s6] sm:$0xff] }
 0x70c   :  { %v4645_v32 = vpack.c.bf16 %v6193_v44, %v6187_v15  ;;  %v4681_v52 = vpack.c.bf16 %v3220_v23, %v3216_v22  ;;  %v6454_v23 = vld [vmem:[%s6816_s2 + $0x18] sm:$0xff] }
 0x70e   :  { %v2429_v10 = vpop.permute.xlu1 %2428  ;;  %4646 = vmatprep.subr.bf16.mxu1 %v4645_v32 }
 0x70f   :  { %4648 = vmatpush3.bf16.msra.mxu1 %v4645_v32  ;;  %v6210_v56 = vsel %vm2444_vm3, %v4956_v21, %v2429_v10  ;;  %v3241_v32 = vld [vmem:[%s6818_s7 + $0x40] sm:$0xff]  ;;  %v3247_v21 = vld [vmem:[%s6818_s7 + $0x70] sm:$0xff] }
 0x710   :  { %v4663_v40 = vpack.c.bf16 %v3245_v14, %v3241_v32  ;;  %v3221_v32 = vld [vmem:[%s6819_s6 + $0x40] sm:$0xff] }
 0x711   :  { %v4899_v24 = vpop.eup %4898 }
 0x712   :  { %v2431_v18 = vpop.permute.xlu1 %2430  ;;  %4497 = vmatmul.mubr.msk.f32.vlgmr.msra.gmra.mrb[44].mxu1 %vm85_vm0, %v2880_v35  ;;  %v2886_v46 = vmul.f32 %v4899_v24, %v6129_v42  ;;  %v4901_v5 = vpop.eup %4900  ;;  %v3248_v35 = vld [vmem:[%s6818_s7 + $0x78] sm:$0xff]  ;;  %v4667_v24 = vpack.c.bf16 %v3239_v34, %v3235_v4  ;;  %v3226_v4 = vld [vmem:[%s6819_s6 + $0x68] sm:$0xff] }
 0x713   :  { %v6216_v59 = vsel %vm2444_vm3, %v4957_v28, %v2431_v18  ;;  %v2884_v30 = vmul.f32 %v4901_v5, %v6076_v16  ;;  %v4903_v10 = vpop.eup %4902  ;;  %v3244_v16 = vld [vmem:[%s6818_s7 + $0x58] sm:$0xff]  ;;  %v4673_v5 = vpack.c.bf16 %v3218_v51, %v3214_v61 }
 0x714   :  { %4510 = vmatprep.mubr.msk.f32.mxu1 %vm85_vm0, %v2886_v46  ;;  %v4649_v42 = vpack.c.bf16 %v6216_v59, %v6210_v56  ;;  %v2888_v26 = vmul.f32 %v4903_v10, %v6124_v31  ;;  %v4669_v18 = vpack.c.bf16 %v3248_v35, %v3244_v16  ;;  %v3243_v46 = vld [vmem:[%s6818_s7 + $0x50] sm:$0xff]  ;;  %v3250_v31 = vld [vmem:[%s6818_s7 + $0x88] sm:$0xff]  ;;  %v3225_v35 = vld [vmem:[%s6819_s6 + $0x60] sm:$0xff] }
 0x715   :  { %v4671_v28 = vpack.c.bf16 %v3247_v21, %v3243_v46  ;;  %v3230_v46 = vld [vmem:[%s6819_s6 + $0x88] sm:$0xff]  ;;  %v3232_v21 = vld [vmem:[%s6819_s6 + $0x98] sm:$0xff] }
 0x716   :  { %v2435_v29 = vpop.permute.xlu1 %2434  ;;  %4650 = vmatprep.subr.bf16.mxu0 %v4649_v42 }
 0x717   :  { %v6249_v43 = vsel %vm2444_vm3, %v4959_v62, %v2435_v29  ;;  %4652 = vmatpush3.bf16.msra.mxu0 %v4649_v42  ;;  %v3249_v42 = vld [vmem:[%s6818_s7 + $0x80] sm:$0xff]  ;;  %v3219_v62 = vld [vmem:[%s6819_s6 + $0x30] sm:$0xff] }
 0x718   :  { %v4653_v27 = vpack.c.bf16 %v6249_v43, %v6243_v47  ;;  %4658 = vmatprep.subr.bf16.mxu0 %v4657_v20  ;;  %v3251_v20 = vld [vmem:[%s6818_s7 + $0x90] sm:$0xff]  ;;  %v3217_v29 = vld [vmem:[%s6819_s6 + $0x20] sm:$0xff] }
 0x719   :  { %v4675_v34 = vpack.c.bf16 %v3217_v29, %v3213_v41 }
 0x71a   :  { %4504 = vmatmul.mubr.msk.f32.vlgmr.msra.gmra.mrb[46].mxu0 %vm85_vm0, %v2884_v30  ;;  %4654 = vmatprep.subr.bf16.mxu1 %v4653_v27  ;;  %v3224_v30 = vld [vmem:[%s6819_s6 + $0x58] sm:$0xff] }
 0x71b   :  { %4656 = vmatpush3.bf16.msra.mxu1 %v4653_v27  ;;  %4660 = vmatpush1.bf16.msra.mxu0 %v4659_v63  ;;  %v3222_v63 = vld [vmem:[%s6819_s6 + $0x48] sm:$0xff]  ;;  %v3228_v27 = vld [vmem:[%s6819_s6 + $0x78] sm:$0xff] }
 0x71c   :  { %4666 = vmatprep.subr.bf16.mxu1 %v4665_v45  ;;  %4662 = vmatprep.subr.bf16.mxu0 %v4661_v39  ;;  %v4683_v39 = vpack.c.bf16 %v3219_v62, %v3215_v7  ;;  %v4677_v10 = vpack.c.bf16 %v3226_v4, %v3222_v63  ;;  %v4685_v16 = vpack.c.bf16 %v3228_v27, %v3224_v30  ;;  %v6460_v63 = vld [vmem:[%s6816_s2 + $0x20] sm:$0xff]  ;;  %v6466_v30 = vld [vmem:[%s6816_s2 + $0x30] sm:$0xff] }
 0x71d   :  { %3341 = vmatprep.mubr.f32.mxu0 %v4968_v38 }
 0x71e   :  { %4511 = vmatmul.mubr.msk.f32.vlgmr.msra.gmra.mrb[46].mxu1 %vm85_vm0, %v2888_v26  ;;  %v4679_v26 = vpack.c.bf16 %v3225_v35, %v3221_v32 }
 0x71f   :  { %4668 = vmatpush1.bf16.msra.mxu1 %v4667_v24  ;;  %4664 = vmatpush1.bf16.msra.mxu0 %v4663_v40  ;;  %v3223_v24 = vld [vmem:[%s6819_s6 + $0x50] sm:$0xff] }
 0x720   :  { %4670 = vmatprep.subr.bf16.mxu1 %v4669_v18  ;;  %3454 = vmatprep.mubr.f32.mxu1 %v4968_v38  ;;  %v3227_v40 = vld [vmem:[%s6819_s6 + $0x70] sm:$0xff] }
 0x721   :  { %3285 = vmatprep.subr.mxu0 %v3250_v31  ;;  %v4687_v18 = vpack.c.bf16 %v3227_v40, %v3223_v24  ;;  %v3231_v31 = vld [vmem:[%s6819_s6 + $0x90] sm:$0xff] }
 0x723   :  { %4672 = vmatpush1.bf16.msra.mxu1 %v4671_v28  ;;  %3286 = vmatpush1.msra.mxu0 %v3249_v42  ;;  %v3229_v28 = vld [vmem:[%s6819_s6 + $0x80] sm:$0xff] }
 0x724   :  { %3398 = vmatprep.subr.mxu1 %v3252_v55  ;;  %4674 = vmatprep.subr.bf16.mxu0 %v4673_v5 }
 0x727   :  { %3399 = vmatpush1.msra.mxu1 %v3251_v20 }
 0x728   :  { %4682 = vmatprep.subr.bf16.mxu1 %v4681_v52 }
 0x7a2   :  { %v4491_v45 = vpop.f32.mrb[44].mxu0 }
 0x7a3   :  { %v2961_v14 = vpop.f32.mrb[45].mxu0 }
 0x7a4   :  { %4305 = vmatmul.mubr.msk.f32.vlgmr.msra.gmra.mrb[48].mxu0 %vm1031_vm2, %v2961_v14  ;;  %4313 = vmatmul.mubr.msk.f32.vlgmr.msra.gmra.mrb[48].mxu1 %vm1031_vm2, %v2961_v14  ;;  %v6478_v14 = vld [vmem:[%s6816_s2 + $0x38] sm:$0xff] }
 0x7a5   :  { %3347 = vmatprep.mubr.f32.mxu0 %v4968_v38  ;;  %3460 = vmatprep.mubr.f32.mxu1 %v4968_v38 }
 0x7a6   :  { %4676 = vmatpush1.bf16.msra.mxu0 %v4675_v34  ;;  %4684 = vmatpush1.bf16.msra.mxu1 %v4683_v39  ;;  %v6472_v39 = vld [vmem:[%s6816_s2 + $0x28] sm:$0xff] }
 0x7a7   :  { %4678 = vmatprep.subr.bf16.mxu0 %v4677_v10  ;;  %4686 = vmatprep.subr.bf16.mxu1 %v4685_v16 }
 0x7a8   :  { %4306 = vmatmul.mubr.msk.f32.gmra.mrb[50].mxu0 %vm1031_vm2, %v4491_v45  ;;  %4314 = vmatmul.mubr.msk.f32.gmra.mrb[50].mxu1 %vm1031_vm2, %v4491_v45 }
 0x7a9   :  { %3353 = vmatprep.mubr.f32.mxu0 %v4968_v38  ;;  %3466 = vmatprep.mubr.f32.mxu1 %v4968_v38 }
 0x7aa   :  { %4680 = vmatpush1.bf16.msra.mxu0 %v4679_v26  ;;  %4688 = vmatpush1.bf16.msra.mxu1 %v4687_v18 }
 0x7ab   :  { %3535 = vmatprep.subr.mxu0 %v3230_v46  ;;  %3648 = vmatprep.subr.mxu1 %v3232_v21 }
 0x7ae   :  { %3536 = vmatpush1.msra.mxu0 %v3229_v28  ;;  %3649 = vmatpush1.msra.mxu1 %v3231_v31 }
 0x7e5   :  { %v4498_v55 = vpop.f32.mrb[44].mxu1 }
 0x7e6   :  { %v3042_v42 = vpop.f32.mrb[45].mxu1 }
 0x7e7   :  { %4307 = vmatmul.mubr.msk.f32.gmra.mrb[52].mxu0 %vm1031_vm2, %v3042_v42  ;;  %4315 = vmatmul.mubr.msk.f32.gmra.mrb[52].mxu1 %vm1031_vm2, %v3042_v42 }
 0x7e8   :  { %3359 = vmatprep.mubr.f32.mxu0 %v4968_v38  ;;  %3472 = vmatprep.mubr.f32.mxu1 %v4968_v38 }
 0x7eb   :  { %4308 = vmatmul.mubr.msk.f32.gmra.mrb[54].mxu0 %vm1031_vm2, %v4498_v55  ;;  %4316 = vmatmul.mubr.msk.f32.gmra.mrb[54].mxu1 %vm1031_vm2, %v4498_v55 }
 0x7ec   :  { %3365 = vmatprep.mubr.f32.mxu0 %v4968_v38  ;;  %3478 = vmatprep.mubr.f32.mxu1 %v4968_v38 }
 0x7ed   :  { %v4505_v20 = vpop.f32.mrb[46].mxu0 }
 0x7ee   :  { %v3123_v61 = vpop.f32.mrb[47].mxu0 }
 0x7ef   :  { %4309 = vmatmul.mubr.msk.f32.gmra.mrb[56].mxu0 %vm1031_vm2, %v3123_v61  ;;  %4317 = vmatmul.mubr.msk.f32.gmra.mrb[56].mxu1 %vm1031_vm2, %v3123_v61 }
 0x7f0   :  { %3371 = vmatprep.mubr.f32.mxu0 %v4968_v38  ;;  %3484 = vmatprep.mubr.f32.mxu1 %v4968_v38 }
 0x7f1   :  { %v4512_v51 = vpop.f32.mrb[46].mxu1 }
 0x7f2   :  { %v3204_v22 = vpop.f32.mrb[47].mxu1 }
 0x7f3   :  { %4310 = vmatmul.mubr.msk.f32.gmra.mrb[58].mxu0 %vm1031_vm2, %v4505_v20  ;;  %4318 = vmatmul.mubr.msk.f32.gmra.mrb[58].mxu1 %vm1031_vm2, %v4505_v20 }
 0x7f4   :  { %3377 = vmatprep.mubr.f32.mxu0 %v4968_v38  ;;  %3490 = vmatprep.mubr.f32.mxu1 %v4968_v38 }
 0x7f7   :  { %4311 = vmatmul.mubr.msk.f32.gmra.mrb[60].mxu0 %vm1031_vm2, %v3204_v22  ;;  %4319 = vmatmul.mubr.msk.f32.gmra.mrb[60].mxu1 %vm1031_vm2, %v3204_v22 }
 0x7f8   :  { %3383 = vmatprep.mubr.f32.mxu0 %v4968_v38  ;;  %3496 = vmatprep.mubr.f32.mxu1 %v4968_v38 }
 0x7fb   :  { %4312 = vmatmul.mubr.msk.f32.gmra.mrb[62].mxu0 %vm1031_vm2, %v4512_v51  ;;  %4320 = vmatmul.mubr.msk.f32.gmra.mrb[62].mxu1 %vm1031_vm2, %v4512_v51 }
 0x7fc   :  { %3591 = vmatprep.mubr.f32.mxu0 %v4968_v38  ;;  %3704 = vmatprep.mubr.f32.mxu1 %v4968_v38 }
 0x7ff   :  { %4321 = vmatmul.mubr.msk.f32.vlgmr.msra.gmra.mrb[48].mxu0 %vm1031_vm2, %v6169_v54  ;;  %4329 = vmatmul.mubr.msk.f32.vlgmr.msra.gmra.mrb[48].mxu1 %vm1031_vm2, %v6169_v54 }
 0x800   :  { %3597 = vmatprep.mubr.f32.mxu0 %v4968_v38  ;;  %3710 = vmatprep.mubr.f32.mxu1 %v4968_v38 }
 0x803   :  { %4322 = vmatmul.mubr.msk.f32.gmra.mrb[50].mxu0 %vm1031_vm2, %v6175_v19  ;;  %4330 = vmatmul.mubr.msk.f32.gmra.mrb[50].mxu1 %vm1031_vm2, %v6175_v19 }
 0x804   :  { %3603 = vmatprep.mubr.f32.mxu0 %v4968_v38  ;;  %3716 = vmatprep.mubr.f32.mxu1 %v4968_v38 }
 0x807   :  { %4323 = vmatmul.mubr.msk.f32.gmra.mrb[52].mxu0 %vm1031_vm2, %v6187_v15  ;;  %4331 = vmatmul.mubr.msk.f32.gmra.mrb[52].mxu1 %vm1031_vm2, %v6187_v15  ;;  %v6436_v15 = vld [vmem:[%s6816_s2] sm:$0xff] }
 0x808   :  { %3609 = vmatprep.mubr.f32.mxu0 %v4968_v38  ;;  %3722 = vmatprep.mubr.f32.mxu1 %v4968_v38 }
 0x80b   :  { %4324 = vmatmul.mubr.msk.f32.gmra.mrb[54].mxu0 %vm1031_vm2, %v6193_v44  ;;  %4332 = vmatmul.mubr.msk.f32.gmra.mrb[54].mxu1 %vm1031_vm2, %v6193_v44 }
 0x80c   :  { %3615 = vmatprep.mubr.f32.mxu0 %v4968_v38  ;;  %3728 = vmatprep.mubr.f32.mxu1 %v4968_v38 }
 0x80f   :  { %4325 = vmatmul.mubr.msk.f32.gmra.mrb[56].mxu0 %vm1031_vm2, %v6210_v56  ;;  %4333 = vmatmul.mubr.msk.f32.gmra.mrb[56].mxu1 %vm1031_vm2, %v6210_v56  ;;  %v6442_v56 = vld [vmem:[%s6816_s2 + $0x10] sm:$0xff] }
 0x810   :  { %3621 = vmatprep.mubr.f32.mxu0 %v4968_v38  ;;  %3734 = vmatprep.mubr.f32.mxu1 %v4968_v38 }
 0x813   :  { %4326 = vmatmul.mubr.msk.f32.gmra.mrb[58].mxu0 %vm1031_vm2, %v6216_v59  ;;  %4334 = vmatmul.mubr.msk.f32.gmra.mrb[58].mxu1 %vm1031_vm2, %v6216_v59 }
 0x814   :  { %3627 = vmatprep.mubr.f32.mxu0 %v4968_v38  ;;  %3740 = vmatprep.mubr.f32.mxu1 %v4968_v38 }
 0x817   :  { %4327 = vmatmul.mubr.msk.f32.gmra.mrb[60].mxu0 %vm1031_vm2, %v6243_v47  ;;  %4335 = vmatmul.mubr.msk.f32.gmra.mrb[60].mxu1 %vm1031_vm2, %v6243_v47 }
 0x818   :  { %3633 = vmatprep.mubr.f32.mxu0 %v4968_v38  ;;  %3746 = vmatprep.mubr.f32.mxu1 %v4968_v38 }
 0x81b   :  { %4328 = vmatmul.mubr.msk.f32.gmra.mrb[62].mxu0 %vm1031_vm2, %v6249_v43  ;;  %4336 = vmatmul.mubr.msk.f32.gmra.mrb[62].mxu1 %vm1031_vm2, %v6249_v43  ;;  %v6448_v43 = vld [vmem:[%s6816_s2 + $0x8] sm:$0xff]  ;;  %s4973_s2 = smov 32  }
 0x8d2   :  { %v3593_v54 = vpop.f32.mrb[48].mxu0  ;;  %v3706_v19 = vpop.f32.mrb[48].mxu1 }
 0x8d3   :  { %v3753_v44 = vmul.f32 %v6436_v15, %v3593_v54  ;;  %v3755_v38 = vmul.f32 %v6442_v56, %v3706_v19  ;;  %v3595_v59 = vpop.f32.mrb[49].mxu0  ;;  %v3708_v47 = vpop.f32.mrb[49].mxu1 }
 0x8d4   :  { %v3754_v5 = vmul.f32 %v6448_v43, %v3595_v59  ;;  %v3756_v52 = vmul.f32 %v6454_v23, %v3708_v47 }
 0x8d5   :  { %v3785_v41 = vadd.f32 %v3755_v38, %v3753_v44 }
 0x8d6   :  { %v3786_v29 = vadd.f32 %v3756_v52, %v3754_v5  ;;  %v3599_v7 = vpop.f32.mrb[50].mxu0  ;;  %v3712_v62 = vpop.f32.mrb[50].mxu1 }
 0x8d7   :  { %v3757_v4 = vmul.f32 %v6460_v63, %v3599_v7  ;;  %v3759_v27 = vmul.f32 %v6466_v30, %v3712_v62  ;;  %v3601_v45 = vpop.f32.mrb[51].mxu0  ;;  %v3714_v34 = vpop.f32.mrb[51].mxu1 }
 0x8d8   :  { %v3758_v32 = vmul.f32 %v6472_v39, %v3601_v45  ;;  %v3760_v10 = vmul.f32 %v6478_v14, %v3714_v34  ;;  %v6481_v16 = vadd.f32 %v3786_v29, %v3785_v41 }
 0x8d9   :  { %v3787_v35 = vadd.f32 %v3759_v27, %v3757_v4 }
 0x8da   :  { %v3788_v24 = vadd.f32 %v3760_v10, %v3758_v32  ;;  %v3718_v40 = vpop.f32.mrb[52].mxu1  ;;  %3817 = vrot.lane.b32.xlu0 %v6481_v16, %s4970_s29  ;;  %v3605_v26 = vpop.f32.mrb[52].mxu0 }
 0x8db   :  { %v3763_v18 = vmul.f32 %v6442_v56, %v3718_v40  ;;  %v3761_v46 = vmul.f32 %v6436_v15, %v3605_v26  ;;  %v3607_v21 = vpop.f32.mrb[53].mxu0  ;;  %v3720_v28 = vpop.f32.mrb[53].mxu1 }
 0x8dc   :  { %v3762_v31 = vmul.f32 %v6448_v43, %v3607_v21  ;;  %v3764_v55 = vmul.f32 %v6454_v23, %v3720_v28  ;;  %v6489_v42 = vadd.f32 %v3788_v24, %v3787_v35 }
 0x8dd   :  { %v3789_v20 = vadd.f32 %v3763_v18, %v3761_v46 }
 0x8de   :  { %v3790_v61 = vadd.f32 %v3764_v55, %v3762_v31  ;;  %v3611_v51 = vpop.f32.mrb[54].mxu0  ;;  %v3724_v22 = vpop.f32.mrb[54].mxu1  ;;  %3819 = vrot.lane.b32.xlu1 %v6489_v42, %s4970_s29 }
 0x8df   :  { %v3765_v54 = vmul.f32 %v6460_v63, %v3611_v51  ;;  %v3767_v19 = vmul.f32 %v6466_v30, %v3724_v22  ;;  %v3613_v44 = vpop.f32.mrb[55].mxu0  ;;  %v3726_v38 = vpop.f32.mrb[55].mxu1 }
 0x8e0   :  { %v3766_v59 = vmul.f32 %v6472_v39, %v3613_v44  ;;  %v3768_v47 = vmul.f32 %v6478_v14, %v3726_v38  ;;  %v6497_v5 = vadd.f32 %v3790_v61, %v3789_v20  ;;  %v2241_v61 = vpop.permute.xlu0 %2240 }
 0x8e1   :  { %v3791_v52 = vadd.f32 %v3767_v19, %v3765_v54 }
 0x8e2   :  { %v3792_v41 = vadd.f32 %v3768_v47, %v3766_v59  ;;  %v3730_v29 = vpop.f32.mrb[56].mxu1  ;;  %3821 = vrot.lane.b32.xlu0 %v6497_v5, %s4970_s29  ;;  %v3617_v7 = vpop.f32.mrb[56].mxu0 }
 0x8e3   :  { %v3771_v62 = vmul.f32 %v6442_v56, %v3730_v29  ;;  %v3769_v4 = vmul.f32 %v6436_v15, %v3617_v7  ;;  %v3619_v27 = vpop.f32.mrb[57].mxu0  ;;  %v3732_v45 = vpop.f32.mrb[57].mxu1 }
 0x8e4   :  { %v3770_v34 = vmul.f32 %v6448_v43, %v3619_v27  ;;  %v3772_v32 = vmul.f32 %v6454_v23, %v3732_v45  ;;  %v6505_v10 = vadd.f32 %v3792_v41, %v3791_v52  ;;  %v2243_v7 = vpop.permute.xlu1 %2242 }
 0x8e5   :  { %v3793_v35 = vadd.f32 %v3771_v62, %v3769_v4 }
 0x8e6   :  { %v3794_v24 = vadd.f32 %v3772_v32, %v3770_v34  ;;  %v3623_v40 = vpop.f32.mrb[58].mxu0  ;;  %v3736_v26 = vpop.f32.mrb[58].mxu1  ;;  %3823 = vrot.lane.b32.xlu1 %v6505_v10, %s4970_s29 }
 0x8e7   :  { %v3773_v18 = vmul.f32 %v6460_v63, %v3623_v40  ;;  %v3775_v46 = vmul.f32 %v6466_v30, %v3736_v26  ;;  %v3625_v21 = vpop.f32.mrb[59].mxu0  ;;  %v3738_v28 = vpop.f32.mrb[59].mxu1 }
 0x8e8   :  { %v3774_v31 = vmul.f32 %v6472_v39, %v3625_v21  ;;  %v3776_v55 = vmul.f32 %v6478_v14, %v3738_v28  ;;  %v6513_v20 = vadd.f32 %v3794_v24, %v3793_v35  ;;  %v2245_v24 = vpop.permute.xlu0 %2244  ;;  %v2247_v21 = vpop.permute.xlu1 %2246 }
 0x8e9   :  { %v3795_v51 = vadd.f32 %v3775_v46, %v3773_v18  ;;  %v6531_v18 = vadd.f32 %v2241_v61, %v5929_v12  ;;  %v2267_v28 = vadd.f32 %v2247_v21, %v5947_v2 }
 0x8ea   :  { %v3796_v22 = vadd.f32 %v3776_v55, %v3774_v31  ;;  %v3742_v54 = vpop.f32.mrb[60].mxu1  ;;  %3825 = vrot.lane.b32.xlu0 %v6513_v20, %s4970_s29  ;;  %v3629_v19 = vpop.f32.mrb[60].mxu0 }
 0x8eb   :  { %v3779_v44 = vmul.f32 %v6442_v56, %v3742_v54  ;;  %v3777_v38 = vmul.f32 %v6436_v15, %v3629_v19  ;;  %v3631_v59 = vpop.f32.mrb[61].mxu0  ;;  %v3744_v47 = vpop.f32.mrb[61].mxu1 }
 0x8ec   :  { %v3778_v52 = vmul.f32 %v6448_v43, %v3631_v59  ;;  %v3780_v41 = vmul.f32 %v6454_v23, %v3744_v47  ;;  %v6521_v29 = vadd.f32 %v3796_v22, %v3795_v51 }
 0x8ed   :  { %v3797_v62 = vadd.f32 %v3779_v44, %v3777_v38 }
 0x8ee   :  { %v3798_v4 = vadd.f32 %v3780_v41, %v3778_v52  ;;  %v3635_v27 = vpop.f32.mrb[62].mxu0  ;;  %v3748_v45 = vpop.f32.mrb[62].mxu1  ;;  %3827 = vrot.lane.b32.xlu1 %v6521_v29, %s4970_s29 }
 0x8ef   :  { %v3781_v56 = vmul.f32 %v6460_v63, %v3635_v27  ;;  %v3783_v15 = vmul.f32 %v6466_v30, %v3748_v45  ;;  %v3637_v34 = vpop.f32.mrb[63].mxu0  ;;  %v3750_v32 = vpop.f32.mrb[63].mxu1  ;;  %v2266_v30 = vadd.f32 %v2245_v24, %v5941_v53 }
 0x8f0   :  { %v3782_v43 = vmul.f32 %v6472_v39, %v3637_v34  ;;  %v3784_v23 = vmul.f32 %v6478_v14, %v3750_v32  ;;  %v3807_v35 = vadd.f32 %v3798_v4, %v3797_v62  ;;  %v2249_v63 = vpop.permute.xlu0 %2248  ;;  %v2265_v39 = vadd.f32 %v2243_v7, %v5935_v17  ;;  %v2251_v14 = vpop.permute.xlu1 %2250 }
 0x8f1   :  { %v3799_v40 = vadd.f32 %v3783_v15, %v3781_v56  ;;  %v6541_v12 = vadd.f32 %v2249_v63, %v5953_v6  ;;  %v6551_v17 = vadd.f32 %v2251_v14, %v5959_v25 }
 0x8f2   :  { %v3800_v26 = vadd.f32 %v3784_v23, %v3782_v43  ;;  %3829 = vrot.lane.b32.xlu0 %v3807_v35, %s4970_s29 }
 0x8f4   :  { %v3808_v46 = vadd.f32 %v3800_v26, %v3799_v40  ;;  %v2253_v31 = vpop.permute.xlu0 %2252  ;;  %v2255_v55 = vpop.permute.xlu1 %2254 }
 0x8f5   :  { %v6548_v53 = vadd.f32 %v2253_v31, %v5965_v50  ;;  %v6558_v2 = vadd.f32 %v2255_v55, %v5974_v33 }
 0x8f6   :  { %2280 = vrot.lane.b32.xlu0 %v6531_v18, %s4971_s30  ;;  %3831 = vrot.lane.b32.xlu1 %v3808_v46, %s4970_s29 }
 0x8fa   :  { %2284 = vrot.lane.b32.xlu0 %v2266_v30, %s4971_s30  ;;  %2282 = vrot.lane.b32.xlu1 %v2265_v39, %s4971_s30 }
 0x8fe   :  { %2288 = vrot.lane.b32.xlu0 %v6541_v12, %s4971_s30  ;;  %2286 = vrot.lane.b32.xlu1 %v2267_v28, %s4971_s30 }
 0x902   :  { %2292 = vrot.lane.b32.xlu0 %v6548_v53, %s4971_s30  ;;  %2290 = vrot.lane.b32.xlu1 %v6551_v17, %s4971_s30 }
 0x906   :  { %2312 = vrot.lane.b32.xlu0 %v6085_v49, %s4971_s30  ;;  %2294 = vrot.lane.b32.xlu1 %v6558_v2, %s4971_s30 }
 0x90a   :  { %2316 = vrot.lane.b32.xlu0 %v6118_v37, %s4971_s30  ;;  %2314 = vrot.lane.b32.xlu1 %v6101_v36, %s4971_s30 }
 0x90e   :  { %2318 = vrot.lane.b32.xlu1 %v6109_v60, %s4971_s30  ;;  %3889 = vrot.lane.b32.xlu0 %v6085_v49, %s4970_s29 }
 0x912   :  { %3891 = vrot.lane.b32.xlu1 %v6101_v36, %s4970_s29 }
 0x94c   :  { %v3818_v6 = vpop.permute.xlu0 %3817 }
 0x94d   :  { %v6575_v25 = vadd.f32 %v3818_v6, %v6481_v16 }
 0x94f   :  { %3857 = vrot.lane.b32.xlu0 %v6575_v25, %s4971_s30 }
 0x950   :  { %v3820_v50 = vpop.permute.xlu1 %3819 }
 0x951   :  { %v6580_v33 = vadd.f32 %v3820_v50, %v6489_v42 }
 0x953   :  { %3859 = vrot.lane.b32.xlu1 %v6580_v33, %s4971_s30 }
 0x954   :  { %v3822_v61 = vpop.permute.xlu0 %3821 }
 0x955   :  { %v6585_v49 = vadd.f32 %v3822_v61, %v6497_v5 }
 0x957   :  { %3861 = vrot.lane.b32.xlu0 %v6585_v49, %s4971_s30 }
 0x958   :  { %v3824_v36 = vpop.permute.xlu1 %3823 }
 0x959   :  { %v6590_v16 = vadd.f32 %v3824_v36, %v6505_v10 }
 0x95b   :  { %3863 = vrot.lane.b32.xlu1 %v6590_v16, %s4971_s30 }
 0x95c   :  { %v3826_v51 = vpop.permute.xlu0 %3825 }
 0x95d   :  { %v6595_v42 = vadd.f32 %v3826_v51, %v6513_v20 }
 0x95f   :  { %3865 = vrot.lane.b32.xlu0 %v6595_v42, %s4971_s30 }
 0x960   :  { %v3828_v22 = vpop.permute.xlu1 %3827 }
 0x961   :  { %v6600_v5 = vadd.f32 %v3828_v22, %v6521_v29 }
 0x963   :  { %3867 = vrot.lane.b32.xlu1 %v6600_v5, %s4971_s30 }
 0x964   :  { %v3830_v54 = vpop.permute.xlu0 %3829 }
 0x965   :  { %v6604_v10 = vadd.f32 %v3830_v54, %v3807_v35 }
 0x967   :  { %3869 = vrot.lane.b32.xlu0 %v6604_v10, %s4971_s30 }
 0x968   :  { %v3832_v19 = vpop.permute.xlu1 %3831  ;;  %v2281_v38 = vpop.permute.xlu0 %2280 }
 0x969   :  { %v6608_v44 = vadd.f32 %v3832_v19, %v3808_v46  ;;  %v2304_v45 = vadd.f32 %v2281_v38, %v6531_v18 }
 0x96b   :  { %3893 = vrot.lane.b32.xlu0 %v6118_v37, %s4970_s29  ;;  %3871 = vrot.lane.b32.xlu1 %v6608_v44, %s4971_s30 }
 0x96c   :  { %v2283_v20 = vpop.permute.xlu1 %2282  ;;  %v2285_v47 = vpop.permute.xlu0 %2284 }
 0x96d   :  { %v2306_v4 = vadd.f32 %v2285_v47, %v2266_v30  ;;  %v2305_v37 = vadd.f32 %v2283_v20, %v2265_v39 }
 0x96f   :  { %3895 = vrot.lane.b32.xlu1 %v6109_v60, %s4970_s29 }
 0x970   :  { %v2287_v59 = vpop.permute.xlu1 %2286  ;;  %v2289_v41 = vpop.permute.xlu0 %2288 }
 0x971   :  { %v2307_v32 = vadd.f32 %v2287_v59, %v2267_v28  ;;  %v2308_v46 = vadd.f32 %v2289_v41, %v6541_v12 }
 0x974   :  { %v2291_v52 = vpop.permute.xlu1 %2290  ;;  %v2293_v7 = vpop.permute.xlu0 %2292 }
 0x975   :  { %v2309_v18 = vadd.f32 %v2291_v52, %v6551_v17  ;;  %v2310_v63 = vadd.f32 %v2293_v7, %v6548_v53 }
 0x978   :  { %v2295_v29 = vpop.permute.xlu1 %2294  ;;  %v2313_v27 = vpop.permute.xlu0 %2312 }
 0x979   :  { %v2324_v15 = vadd.f32 %v2313_v27, %v2304_v45  ;;  %v2325_v34 = vadd.f32 %v2313_v27, %v2305_v37  ;;  %v2311_v39 = vadd.f32 %v2295_v29, %v6558_v2 }
 0x97b   :  { %v4273_v60 = vmul.f32 -1.442695, %v2324_v15  ;;  %v4274_v35 = vmul.f32 -1.442695, %v2325_v34 }
 0x97c   :  { %v2315_v62 = vpop.permute.xlu1 %2314  ;;  %v2317_v24 = vpop.permute.xlu0 %2316 }
 0x97d   :  { %v2326_v56 = vadd.f32 %v2315_v62, %v2306_v4  ;;  %v2327_v23 = vadd.f32 %v2315_v62, %v2307_v32  ;;  %v2328_v30 = vadd.f32 %v2317_v24, %v2308_v46  ;;  %v2329_v14 = vadd.f32 %v2317_v24, %v2309_v18 }
 0x97f   :  { %v4275_v43 = vmul.f32 -1.442695, %v2326_v56  ;;  %v4276_v40 = vmul.f32 -1.442695, %v2327_v23  ;;  %v4277_v6 = vmul.f32 -1.442695, %v2328_v30 }
 0x980   :  { %v2319_v26 = vpop.permute.xlu1 %2318  ;;  %v3890_v21 = vpop.permute.xlu0 %3889  ;;  %v4278_v36 = vmul.f32 -1.442695, %v2329_v14 }
 0x981   :  { %4904 = vpow2.f32 %v4275_v43  ;;  %v2330_v31 = vadd.f32 %v2319_v26, %v2310_v63  ;;  %v2331_v55 = vadd.f32 %v2319_v26, %v2311_v39 }
 0x982   :  { %4906 = vpow2.f32 %v4273_v60 }
 0x983   :  { %4908 = vpow2.f32 %v4274_v35  ;;  %v4279_v22 = vmul.f32 -1.442695, %v2330_v31  ;;  %v4280_v54 = vmul.f32 -1.442695, %v2331_v55 }
 0x984   :  { %4910 = vpow2.f32 %v4276_v40  ;;  %v3892_v28 = vpop.permute.xlu1 %3891 }
 0x985   :  { %4912 = vpow2.f32 %v4277_v6 }
 0x986   :  { %4914 = vpow2.f32 %v4278_v36 }
 0x987   :  { %4916 = vpow2.f32 %v4279_v22 }
 0x988   :  { %4918 = vpow2.f32 %v4280_v54 }
 0x98b   :  { %v4905_v61 = vpop.eup %4904 }
 0x98c   :  { %v4907_v51 = vpop.eup %4906  ;;  %v2358_v53 = vadd.f32 1.0, %v4905_v61 }
 0x98d   :  { %v4909_v12 = vpop.eup %4908  ;;  %v2356_v20 = vadd.f32 1.0, %v4907_v51 }
 0x98e   :  { %v4911_v2 = vpop.eup %4910  ;;  %v2357_v38 = vadd.f32 1.0, %v4909_v12  ;;  %4920 = vrcp.f32 %v2358_v53 }
 0x98f   :  { %4922 = vrcp.f32 %v2356_v20  ;;  %v2359_v29 = vadd.f32 1.0, %v4911_v2  ;;  %v4913_v27 = vpop.eup %4912 }
 0x990   :  { %4924 = vrcp.f32 %v2357_v38  ;;  %v4915_v45 = vpop.eup %4914  ;;  %v2360_v60 = vadd.f32 1.0, %v4913_v27 }
 0x991   :  { %v4917_v37 = vpop.eup %4916  ;;  %v2361_v26 = vadd.f32 1.0, %v4915_v45 }
 0x992   :  { %v4919_v56 = vpop.eup %4918  ;;  %v2362_v30 = vadd.f32 1.0, %v4917_v37 }
 0x993   :  { %v2363_v14 = vadd.f32 1.0, %v4919_v56 }
 0x998   :  { %v4921_v15 = vpop.eup %4920 }
 0x999   :  { %v3927_v23 = vsub.f32 1.0, %v4921_v15  ;;  %v3919_v63 = vmul.f32 %v4921_v15, %v6002_v48 }
 0x9c1   :  { %v3858_v50 = vpop.permute.xlu0 %3857 }
 0x9c2   :  { %v3881_v17 = vadd.f32 %v3858_v50, %v6575_v25 }
 0x9c4   :  { %v3901_v47 = vadd.f32 %v3890_v21, %v3881_v17 }
 0x9c5   :  { %v3860_v19 = vpop.permute.xlu1 %3859 }
 0x9c6   :  { %v3882_v59 = vadd.f32 %v3860_v19, %v6580_v33  ;;  %4926 = vtanh.f32 %v3901_v47 }
 0x9c8   :  { %v3902_v25 = vadd.f32 %v3890_v21, %v3882_v59 }
 0x9c9   :  { %v3862_v52 = vpop.permute.xlu0 %3861 }
 0x9ca   :  { %v3883_v41 = vadd.f32 %v3862_v52, %v6585_v49  ;;  %v4923_v49 = vpop.eup %4922 }
 0x9cb   :  { %v4925_v32 = vpop.eup %4924  ;;  %v3925_v24 = vsub.f32 1.0, %v4923_v49  ;;  %v3917_v55 = vmul.f32 %v4923_v49, %v5998_v9 }
 0x9cc   :  { %v3903_v7 = vadd.f32 %v3892_v28, %v3883_v41  ;;  %v3918_v19 = vmul.f32 %v4925_v32, %v6000_v8 }
 0x9cd   :  { %v3864_v62 = vpop.permute.xlu1 %3863 }
 0x9ce   :  { %4928 = vtanh.f32 %v3903_v7  ;;  %v3884_v4 = vadd.f32 %v3864_v62, %v6590_v16 }
 0x9cf   :  { %4930 = vrcp.f32 %v2359_v29 }
 0x9d0   :  { %4932 = vtanh.f32 %v3902_v25  ;;  %v3904_v33 = vadd.f32 %v3892_v28, %v3884_v4  ;;  %v4927_v43 = vpop.eup %4926  ;;  %v3926_v28 = vsub.f32 1.0, %v4925_v32 }
 0x9d1   :  { %v3866_v34 = vpop.permute.xlu0 %3865  ;;  %v3933_v39 = vmul.f32 %v4927_v43, %v3925_v24 }
 0x9d2   :  { %4934 = vtanh.f32 %v3904_v33  ;;  %v3885_v61 = vadd.f32 %v3866_v34, %v6595_v42 }
 0x9d3   :  { %4936 = vrcp.f32 %v2360_v60  ;;  %v6631_v48 = vadd.f32 %v3933_v39, %v3917_v55 }
 0x9d4   :  { %4938 = vrcp.f32 %v2361_v26 }
 0x9d5   :  { %v3868_v46 = vpop.permute.xlu1 %3867  ;;  %4940 = vrcp.f32 %v2362_v30  ;;  %v3990_v8 = vrot.slane %v6631_v48, 4  ;;  %v3981_v24 = vrot.slane %v6631_v48, 3 }
 0x9d6   :  { %v3886_v51 = vadd.f32 %v3868_v46, %v6600_v5  ;;  %4942 = vrcp.f32 %v2363_v14  ;;  %v4008_v46 = vrot.slane %v6631_v48, 6 }
 0x9d8   :  { %v4929_v35 = vpop.eup %4928 }
 0x9d9   :  { %v4931_v40 = vpop.eup %4930  ;;  %v3935_v16 = vmul.f32 %v4929_v35, %v3927_v23  ;;  %v3870_v21 = vpop.permute.xlu0 %3869 }
 0x9da   :  { %v4933_v18 = vpop.eup %4932  ;;  %v3928_v50 = vsub.f32 1.0, %v4931_v40  ;;  %v3920_v9 = vmul.f32 %v4931_v40, %v6004_v11  ;;  %v3887_v20 = vadd.f32 %v3870_v21, %v6604_v10 }
 0x9db   :  { %v6627_v6 = vadd.f32 %v3935_v16, %v3919_v63  ;;  %v3934_v36 = vmul.f32 %v4933_v18, %v3926_v28  ;;  %v3972_v18 = vrot.slane %v6631_v48, 2 }
 0x9dc   :  { %v4935_v31 = vpop.eup %4934 }
 0x9dd   :  { %v3894_v22 = vpop.permute.xlu0 %3893  ;;  %v3872_v12 = vpop.permute.xlu1 %3871  ;;  %v3936_v54 = vmul.f32 %v4935_v31, %v3928_v50  ;;  %v3991_v5 = vrot.slane %v6627_v6, 3  ;;  %v6638_v2 = vadd.f32 %v3934_v36, %v3918_v19  ;;  %v3953_v10 = vrot.slane %v6627_v6, 7 }
 0x9de   :  { %v3905_v17 = vadd.f32 %v3894_v22, %v3885_v61  ;;  %v3906_v53 = vadd.f32 %v3894_v22, %v3886_v51  ;;  %v3888_v42 = vadd.f32 %v3872_v12, %v6608_v44  ;;  %v4937_v44 = vpop.eup %4936  ;;  %v3982_v40 = vrot.slane %v6627_v6, 2 }
 0x9df   :  { %v6640_v59 = vadd.f32 %v3936_v54, %v3920_v9  ;;  %v6644_v11 = vsel %vm3954_vm4, %v3991_v5, %v3990_v8  ;;  %v6649_v41 = vsel %vm3954_vm4, %v3953_v10, %v6631_v48  ;;  %v4066_v25 = vrot.slane %v6638_v2, 4  ;;  %v4939_v62 = vpop.eup %4938 }
 0x9e0   :  { %4944 = vtanh.f32 %v3905_v17  ;;  %v4941_v4 = vpop.eup %4940  ;;  %v3929_v37 = vsub.f32 1.0, %v4937_v44  ;;  %v3921_v15 = vmul.f32 %v4937_v44, %v6006_v57  ;;  %v3922_v49 = vmul.f32 %v4939_v62, %v6008_v1 }
 0x9e1   :  { %v3896_v38 = vpop.permute.xlu1 %3895  ;;  %4946 = vtanh.f32 %v3906_v53  ;;  %v4032_v29 = vrot.slane %v6640_v59, 7  ;;  %v4067_v7 = vrot.slane %v6640_v59, 3  ;;  %v4943_v45 = vpop.eup %4942  ;;  %v3923_v34 = vmul.f32 %v4941_v4, %v6010_v3 }
 0x9e2   :  { %v3907_v47 = vadd.f32 %v3896_v38, %v3887_v20  ;;  %v3908_v52 = vadd.f32 %v3896_v38, %v3888_v42  ;;  %v3930_v32 = vsub.f32 1.0, %v4939_v62  ;;  %v3931_v60 = vsub.f32 1.0, %v4941_v4 }
 0x9e3   :  { %v6656_v27 = vsel %vm3954_vm4, %v4032_v29, %v6638_v2  ;;  %v6659_v33 = vsel %vm3954_vm4, %v4067_v7, %v4066_v25  ;;  %v3924_v23 = vmul.f32 %v4943_v45, %v6012_v13  ;;  %v3932_v35 = vsub.f32 1.0, %v4943_v45 }
 0x9e4   :  { %4948 = vtanh.f32 %v3907_v47  ;;  %v3998_v57 = vrot.slane %v6631_v48, 5  ;;  %v3963_v1 = vrot.slane %v6631_v48, 1  ;;  %v3999_v21 = vrot.slane %v6627_v6, 4 }
 0x9e5   :  { %4950 = vtanh.f32 %v3908_v52  ;;  %v4018_v13 = vrot.slane %v6631_v48, 7  ;;  %v4039_v63 = vrot.slane %v6638_v2, 1  ;;  %v4074_v28 = vrot.slane %v6638_v2, 5 }
 0x9e6   :  { %v4048_v31 = vrot.slane %v6638_v2, 2  ;;  %v3983_v55 = vsel %vm3954_vm4, %v3982_v40, %v3981_v24  ;;  %v4084_v61 = vrot.slane %v6638_v2, 6  ;;  %v4057_v36 = vrot.slane %v6638_v2, 3 }
 0x9e7   :  { %v4009_v12 = vrot.slane %v6627_v6, 5  ;;  %v3973_v48 = vrot.slane %v6627_v6, 1  ;;  %v4000_v19 = vsel %vm3954_vm4, %v3999_v21, %v3998_v57  ;;  %v4019_v5 = vrot.slane %v6627_v6, 6 }
 0x9e8   :  { %v3964_v47 = vsel %vm3954_vm4, %v6627_v6, %v3963_v1  ;;  %v4075_v8 = vrot.slane %v6640_v59, 4 }
 0x9e9   :  { %v4010_v44 = vsel %vm3954_vm4, %v4009_v12, %v4008_v46  ;;  %v3974_v25 = vsel %vm3954_vm4, %v3973_v48, %v3972_v18 }
 0x9ea   :  { %v4945_v56 = vpop.eup %4944 }
 0x9eb   :  { %v3937_v43 = vmul.f32 %v4945_v56, %v3929_v37  ;;  %v4947_v26 = vpop.eup %4946  ;;  %v4020_v56 = vsel %vm3954_vm4, %v4019_v5, %v4018_v13 }
 0x9ec   :  { %v3938_v54 = vmul.f32 %v4947_v26, %v3930_v32  ;;  %v4076_v32 = vsel %vm3954_vm4, %v4075_v8, %v4074_v28 }
 0x9ed   :  { %v6667_v16 = vadd.f32 %v3937_v43, %v3921_v15  ;;  %v4040_v15 = vsel %vm3954_vm4, %v6640_v59, %v4039_v63  ;;  %v4049_v43 = vrot.slane %v6640_v59, 1  ;;  %v4058_v63 = vrot.slane %v6640_v59, 2 }
 0x9ee   :  { %v4949_v3 = vpop.eup %4948  ;;  %v6699_v7 = vadd.f32 %v3938_v54, %v3922_v49 }
 0x9ef   :  { %v4951_v30 = vpop.eup %4950  ;;  %v3939_v39 = vmul.f32 %v4949_v3, %v3931_v60  ;;  %v3984_v14 = vrot.slane %v6667_v16, 1  ;;  %v4001_v50 = vrot.slane %v6667_v16, 3  ;;  %v3965_v9 = vrot.slane %v6667_v16, 7 }
 0x9f0   :  { %v3940_v17 = vmul.f32 %v4951_v30, %v3932_v35  ;;  %v4011_v52 = vrot.slane %v6667_v16, 4  ;;  %v4021_v4 = vrot.slane %v6667_v16, 5  ;;  %v4085_v35 = vrot.slane %v6640_v59, 5 }
 0x9f1   :  { %v3947_v51 = vadd.f32 %v3939_v39, %v3923_v34  ;;  %v3985_v22 = vsel %vm3957_vm5, %v3984_v14, %v3983_v55  ;;  %v4002_v38 = vsel %vm3957_vm5, %v4001_v50, %v4000_v19  ;;  %v3966_v6 = vsel %vm3957_vm5, %v3965_v9, %v3964_v47 }
 0x9f2   :  { %v6701_v62 = vadd.f32 %v3940_v17, %v3924_v23  ;;  %v4012_v49 = vsel %vm3957_vm5, %v4011_v52, %v4010_v44  ;;  %v3975_v23 = vsel %vm3957_vm5, %v6667_v16, %v3974_v25  ;;  %v3993_v24 = vrot.slane %v6667_v16, 2 }
 0x9f3   :  { %v3986_v53 = vsel %vm3960_vm6, %v3947_v51, %v3985_v22  ;;  %v4003_v20 = vrot.slane %v3947_v51, 2  ;;  %v3967_v42 = vrot.slane %v3947_v51, 6  ;;  %v4013_v29 = vrot.slane %v3947_v51, 3 }
 0x9f4   :  { %3987 = vrot.lane.b32.xlu0 %v3986_v53, %s4971_s30  ;;  %v3976_v37 = vrot.slane %v3947_v51, 7  ;;  %v4023_v34 = vrot.slane %v3947_v51, 4  ;;  %v4022_v40 = vsel %vm3957_vm5, %v4021_v4, %v4020_v56  ;;  %v4041_v26 = vrot.slane %v6699_v7, 7 }
 0x9f5   :  { %v4004_v10 = vsel %vm3960_vm6, %v4003_v20, %v4002_v38  ;;  %v3968_v45 = vsel %vm3960_vm6, %v3967_v42, %v3966_v6  ;;  %v4014_v60 = vsel %vm3960_vm6, %v4013_v29, %v4012_v49  ;;  %v4043_v57 = vrot.slane %v6701_v62, 6 }
 0x9f6   :  { %4005 = vrot.lane.b32.xlu1 %v4004_v10, %s4973_s2  ;;  %v3995_v1 = vrot.slane %v3947_v51, 1  ;;  %v3977_v46 = vsel %vm3960_vm6, %v3976_v37, %v3975_v23  ;;  %v4077_v3 = vrot.slane %v6699_v7, 3  ;;  %v3994_v21 = vsel %vm3957_vm5, %v3993_v24, %v6644_v11 }
 0x9f7   :  { %v3956_v18 = vrot.slane %v6667_v16, 6  ;;  %v4024_v13 = vsel %vm3960_vm6, %v4023_v34, %v4022_v40  ;;  %v3959_v39 = vrot.slane %v3947_v51, 5  ;;  %v4079_v14 = vrot.slane %v6701_v62, 2 }
 0x9f8   :  { %3969 = vrot.lane.b32.xlu0 %v3968_v45, %s4973_s2  ;;  %v3996_v30 = vsel %vm3960_vm6, %v3995_v1, %v3994_v21  ;;  %v4034_v55 = vrot.slane %v6699_v7, 6  ;;  %v4036_v11 = vrot.slane %v6701_v62, 5  ;;  %v4042_v16 = vsel %vm3957_vm5, %v4041_v26, %v4040_v15 }
 0x9f9   :  { %v3958_v28 = vsel %vm3957_vm5, %v3956_v18, %v6649_v41  ;;  %v4069_v22 = vrot.slane %v6699_v7, 2  ;;  %v4071_v12 = vrot.slane %v6701_v62, 1  ;;  %v4044_v51 = vsel %vm3960_vm6, %v4043_v57, %v4042_v16 }
 0x9fa   :  { %4015 = vrot.lane.b32.xlu1 %v4014_v60, %s4970_s29  ;;  %v3961_v50 = vsel %vm3960_vm6, %v3959_v39, %v3958_v28  ;;  %v4078_v48 = vsel %vm3957_vm5, %v4077_v3, %v4076_v32  ;;  %v4052_v41 = vrot.slane %v6701_v62, 7  ;;  %v4035_v54 = vsel %vm3957_vm5, %v4034_v55, %v6656_v27 }
 0x9fb   :  { %v4087_v17 = vrot.slane %v6699_v7, 4  ;;  %v4060_v19 = vrot.slane %v6699_v7, 1  ;;  %v4037_v9 = vsel %vm3960_vm6, %v4036_v11, %v4035_v54  ;;  %v4070_v53 = vsel %vm3957_vm5, %v4069_v22, %v6659_v33 }
 0x9fc   :  { %3978 = vrot.lane.b32.xlu0 %v3977_v46, %s4970_s29  ;;  %v4080_v20 = vsel %vm3960_vm6, %v4079_v14, %v4078_v48  ;;  %v4050_v42 = vsel %vm3954_vm4, %v4049_v43, %v4048_v31  ;;  %v4089_v5 = vrot.slane %v6701_v62, 3  ;;  %v4072_v27 = vsel %vm3960_vm6, %v4071_v12, %v4070_v53 }
 0x9fd   :  { %v4051_v38 = vsel %vm3957_vm5, %v6699_v7, %v4050_v42  ;;  %v4086_v33 = vsel %vm3954_vm4, %v4085_v35, %v4084_v61  ;;  %v4059_v52 = vsel %vm3954_vm4, %v4058_v63, %v4057_v36  ;;  %v4095_v31 = vrot.slane %v6640_v59, 6 }
 0x9fe   :  { %4025 = vrot.lane.b32.xlu1 %v4024_v13, %s4971_s30  ;;  %v4053_v47 = vsel %vm3960_vm6, %v4052_v41, %v4051_v38  ;;  %v4088_v8 = vsel %vm3957_vm5, %v4087_v17, %v4086_v33  ;;  %v4061_v10 = vsel %vm3957_vm5, %v4060_v19, %v4059_v52  ;;  %v4097_v44 = vrot.slane %v6699_v7, 5 }
 0x9ff   :  { %v4090_v29 = vsel %vm3960_vm6, %v4089_v5, %v4088_v8  ;;  %v4094_v25 = vrot.slane %v6638_v2, 7  ;;  %v4099_v61 = vrot.slane %v6701_v62, 4  ;;  %v4062_v36 = vsel %vm3960_vm6, %v6701_v62, %v4061_v10 }
 0xa00   :  { %4045 = vrot.lane.b32.xlu0 %v4044_v51, %s4973_s2  ;;  %v4974_v24 = vmov 1966171168  }
 0xa01   :  { %v4096_v59 = vsel %vm3954_vm4, %v4095_v31, %v4094_v25  ;;  %v4126_v40 = vunpack.c.l.s4 %v4974_v24 }
 0xa02   :  { %4081 = vrot.lane.b32.xlu1 %v4080_v20, %s4973_s2  ;;  %v4098_v6 = vsel %vm3957_vm5, %v4097_v44, %v4096_v59 }
 0xa03   :  { %v4100_v4 = vsel %vm3960_vm6, %v4099_v61, %v4098_v6  ;;  %v4127_v1 = vunpack.c.0.s8 %v4126_v40 }
 0xa04   :  { %4054 = vrot.lane.b32.xlu0 %v4053_v47, %s4970_s29 }
 0xa05   :  { %v4130_v13 = vsub.s32 %v4127_v1, %v5098_v0 }
 0xa06   :  { %4091 = vrot.lane.b32.xlu1 %v4090_v29, %s4970_s29 }
 0xa08   :  { %4063 = vrot.lane.b32.xlu0 %v4062_v36, %s4971_s30 }
 0xa0a   :  { %4101 = vrot.lane.b32.xlu1 %v4100_v4, %s4971_s30 }
 0xa66   :  { %v3988_v7 = vpop.permute.xlu0 %3987 }
 0xa68   :  { %v4006_v45 = vpop.permute.xlu1 %4005 }
 0xa69   :  { %v4110_v15 = vsel %vm4104_vm7, %v3996_v30, %v4006_v45 }
 0xa6a   :  { %v3970_v2 = vpop.permute.xlu0 %3969 }
 0xa6b   :  { %v4105_v56 = vsel %vm4104_vm7, %v3961_v50, %v3970_v2 }
 0xa6c   :  { %v4016_v37 = vpop.permute.xlu1 %4015 }
 0xa6d   :  { %v4111_v34 = vsel %vm4106_vm8, %v4110_v15, %v4016_v37 }
 0xa6e   :  { %v3979_v62 = vpop.permute.xlu0 %3978 }
 0xa6f   :  { %v4107_v49 = vsel %vm4106_vm8, %v4105_v56, %v3979_v62 }
 0xa70   :  { %v4026_v32 = vpop.permute.xlu1 %4025  ;;  %v4109_v43 = vsel %vm4108_vm9, %v4107_v49, %v3988_v7 }
 0xa71   :  { %v4112_v60 = vsel %vm4108_vm9, %v4111_v34, %v4026_v32 }
 0xa72   :  { %v4123_v23 = vcombine.low %v4109_v43, %v4112_v60  ;;  %v4046_v35 = vpop.permute.xlu0 %4045 }
 0xa73   :  { %v4113_v21 = vsel %vm4104_vm7, %v4037_v9, %v4046_v35 }
 0xa74   :  { %v4082_v26 = vpop.permute.xlu1 %4081  ;;  %v4131_v11 = vrot.slane %v4123_v23, %v4130_v13 }
 0xa75   :  { %v4116_v18 = vsel %vm4104_vm7, %v4072_v27, %v4082_v26 }
 0xa76   :  { %v4055_v57 = vpop.permute.xlu0 %4054 }
 0xa77   :  { %v4114_v63 = vsel %vm4106_vm8, %v4113_v21, %v4055_v57 }
 0xa78   :  { %v4092_v46 = vpop.permute.xlu1 %4091 }
 0xa79   :  { %v4117_v30 = vsel %vm4106_vm8, %v4116_v18, %v4092_v46 }
 0xa7a   :  { %v4064_v3 = vpop.permute.xlu0 %4063 }
 0xa7b   :  { %v4115_v14 = vsel %vm4108_vm9, %v4114_v63, %v4064_v3 }
 0xa7c   :  { %v4102_v39 = vpop.permute.xlu1 %4101 }
 0xa7d   :  { %v4118_v28 = vsel %vm4108_vm9, %v4117_v30, %v4102_v39 }
 0xa7e   :  { %v4124_v55 = vcombine.low %v4115_v14, %v4118_v28 }
 0xa80   :  { %v4138_v16 = vrot.slane %v4124_v55, %v4130_v13 }
 0xa82   :  { %v4139_v50 = vcombine.low %v4131_v11, %v4138_v16  ;;  %v4140_v22 = vcombine.high %v4131_v11, %v4138_v16 }
 0xa84   :  { %v4147_v12 = vrot.slane %v4139_v50, %v4130_v13  ;;  %v4154_v51 = vrot.slane %v4140_v22, %v4130_v13 }
 0xa86   :  { %v4155_v48 = vcombine.high %v4147_v12, %v4147_v12  ;;  %v4156_v0 = vcombine.high %v4154_v51, %v4154_v51  ;;  %4165 = vst.msk [vmem:[%s6820_s9] sm:$0xf] %vm4163_vm10, %v4147_v12  ;;  %4166 = vst.msk [vmem:[%s6820_s9 + $0x4] sm:$0xf] %vm4163_vm10, %v4154_v51 }
 0xa88   :  { %4167 = vst.msk [vmem:[%s6820_s9 + $0x8] sm:$0xf] %vm4163_vm10, %v4155_v48  ;;  %4168 = vst.msk [vmem:[%s6820_s9 + $0xc] sm:$0xf] %vm4163_vm10, %v4156_v0 }

</bundles_post_ra>
